<compile_context>
chip_gen: v5e
topology: v5e:2x2
jax: 0.10.0
libtpu: 0.0.40
codegen_flags: <defaults>
</compile_context>

<pallas_src>
import jax
import jax.numpy as jnp
from jax.experimental import pallas as pl
from jax.experimental.pallas import tpu as pltpu

SELU_ALPHA = 1.6732632423543772
SELU_SCALE = 1.0507009873554805

IN_FEATURES = 2208
K_PAD = 2304          # 18 * 128 — lane/MXU-aligned K for dens1 (zero-padded)
HIDDEN1 = 512
HIDDEN2 = 128
NB_OUT = 28
OUT_PAD = 128         # lane-dense final store; real logits are [:, :28]

TB_MAX = 256          # batch-tile rows when gridding over large batches
VMEM_LIMIT_BYTES = 16 * 1024 * 1024  # ~2x working set; well under v7x's 64 MiB


def _selu(x):
    # scale * (x if x > 0 else alpha * (exp(x) - 1))
    return SELU_SCALE * jnp.where(x > 0, x, SELU_ALPHA * (jnp.exp(x) - 1.0))


def _round_up(n, m):
    return (n + m - 1) // m * m


def mlp_kernel(x_ref, w1_ref, b1_ref, w2_ref, b2_ref, w3_ref, b3_ref, o_ref):
    # dens1: bf16 x bf16 on the MXU, f32 accumulation, f32 bias + SELU
    h = jnp.dot(x_ref[...], w1_ref[...], preferred_element_type=jnp.float32)
    h = _selu(h + b1_ref[...])
    # TODO(synk): dropout(p=0.25) is identity in eval mode; training-mode RNG mask not implemented.
    h = h.astype(jnp.bfloat16)
    # dens2 + SELU
    h = jnp.dot(h, w2_ref[...], preferred_element_type=jnp.float32)
    h = _selu(h + b2_ref[...])
    h = h.astype(jnp.bfloat16)
    # dens3 (logits, lane-padded to 128)
    out = jnp.dot(h, w3_ref[...], preferred_element_type=jnp.float32)
    o_ref[...] = (out + b3_ref[...]).astype(o_ref.dtype)


def _pad_cast_x(x, padded_batch):
    batch = x.shape[0]
    x = jnp.pad(x, ((0, padded_batch - batch), (0, K_PAD - IN_FEATURES)))
    return x.astype(jnp.bfloat16)


def my_densenet_dens(x, params):
    """params must come from prepare_params (bf16 weights, padded, f32 biases)."""
    w1, b1, w2, b2, w3, b3 = params
    batch = x.shape[0]
    tb = min(_round_up(batch, 8), TB_MAX)
    padded_batch = _round_up(batch, tb)
    grid = (padded_batch // tb,)
    xp = _pad_cast_x(x, padded_batch)

    cost = pl.CostEstimate(
        flops=2 * padded_batch * (K_PAD * HIDDEN1 + HIDDEN1 * HIDDEN2 + HIDDEN2 * OUT_PAD),
        transcendentals=padded_batch * (HIDDEN1 + HIDDEN2),
        bytes_accessed=(xp.size * 2
                        + sum(int(p.size) * p.dtype.itemsize for p in params)
                        + padded_batch * OUT_PAD * 4),
    )

    out = pl.pallas_call(
        mlp_kernel,
        out_shape=jax.ShapeDtypeStruct((padded_batch, OUT_PAD), jnp.float32),
        grid=grid,
        in_specs=[
            pl.BlockSpec((tb, K_PAD), lambda i: (i, 0)),        # x: tiled over batch
            pl.BlockSpec((K_PAD, HIDDEN1), lambda i: (0, 0)),   # weights/biases stay
            pl.BlockSpec((1, HIDDEN1), lambda i: (0, 0)),       #   resident across
            pl.BlockSpec((HIDDEN1, HIDDEN2), lambda i: (0, 0)), #   grid steps
            pl.BlockSpec((1, HIDDEN2), lambda i: (0, 0)),
            pl.BlockSpec((HIDDEN2, OUT_PAD), lambda i: (0, 0)),
            pl.BlockSpec((1, OUT_PAD), lambda i: (0, 0)),
        ],
        out_specs=pl.BlockSpec((tb, OUT_PAD), lambda i: (i, 0)),
        compiler_params=pltpu.CompilerParams(
            dimension_semantics=("parallel",),   # v7x: 2 TCs split the batch grid
            vmem_limit_bytes=VMEM_LIMIT_BYTES,
        ),
        cost_estimate=cost,
    )(xp, w1, b1, w2, b2, w3, b3)
    return out[:batch, :NB_OUT]


def init_params(key):
    """Deterministic init mimicking nn.Linear's uniform(-1/sqrt(fan_in), 1/sqrt(fan_in)).

    Weights are stored as [in_features, out_features] (transpose of PyTorch's
    nn.Linear layout) so the kernel computes a plain x @ W + b.
    """
    ks = jax.random.split(key, 6)

    def linear(kw, kb, fan_in, fan_out):
        bound = 1.0 / jnp.sqrt(float(fan_in))
        w = jax.random.uniform(kw, (fan_in, fan_out), jnp.float32, -bound, bound)
        b = jax.random.uniform(kb, (1, fan_out), jnp.float32, -bound, bound)
        return w, b

    w1, b1 = linear(ks[0], ks[1], IN_FEATURES, HIDDEN1)
    w2, b2 = linear(ks[2], ks[3], HIDDEN1, HIDDEN2)
    w3, b3 = linear(ks[4], ks[5], HIDDEN2, NB_OUT)
    return (w1, b1, w2, b2, w3, b3)


def prepare_params(raw):
    """Pad to aligned shapes and cast weights to bf16 (biases stay f32)."""
    w1, b1, w2, b2, w3, b3 = raw
    w1p = jnp.pad(w1, ((0, K_PAD - IN_FEATURES), (0, 0))).astype(jnp.bfloat16)
    w2p = w2.astype(jnp.bfloat16)
    w3p = jnp.pad(w3, ((0, 0), (0, OUT_PAD - NB_OUT))).astype(jnp.bfloat16)
    b3p = jnp.pad(b3, ((0, 0), (0, OUT_PAD - NB_OUT)))
    return (w1p, b1, w2p, b2, w3p, b3p)


def reference(x, prepped):
    """Pure-JAX mirror of the kernel's mixed-precision computation."""
    w1, b1, w2, b2, w3, b3 = prepped
    xb = jnp.pad(x, ((0, 0), (0, K_PAD - IN_FEATURES)))
    xb = xb.astype(jnp.bfloat16).astype(jnp.float32)
    h = _selu(xb @ w1.astype(jnp.float32) + b1)
    h = h.astype(jnp.bfloat16).astype(jnp.float32)
    h = _selu(h @ w2.astype(jnp.float32) + b2)
    h = h.astype(jnp.bfloat16).astype(jnp.float32)
    out = h @ w3.astype(jnp.float32) + b3
    return out[:, :NB_OUT]


if __name__ == "__main__":
    key = jax.random.PRNGKey(0)
    k_x, k_p = jax.random.split(key)
    batch = 8
    x = jax.random.normal(k_x, (batch, IN_FEATURES), jnp.float32)
    params = prepare_params(init_params(k_p))

    out = my_densenet_dens(x, params)
    out = jax.block_until_ready(out)

    ref = reference(x, params)
    assert out.shape == (batch, NB_OUT), out.shape
    max_err = float(jnp.max(jnp.abs(out - ref)))
    assert jnp.allclose(out, ref, atol=2e-2, rtol=2e-2), max_err
    print("KERNEL_OK")
</pallas_src>

<mosaic_0001>
module attributes {stable_mosaic.version = 11 : i64} {
  func.func @mlp_kernel(%arg0: i32, %arg1: memref<8x2304xbf16, #tpu.memory_space<vmem>>, %arg2: memref<2304x512xbf16, #tpu.memory_space<vmem>>, %arg3: memref<1x512xf32, #tpu.memory_space<vmem>>, %arg4: memref<512x128xbf16, #tpu.memory_space<vmem>>, %arg5: memref<1x128xf32, #tpu.memory_space<vmem>>, %arg6: memref<128x128xbf16, #tpu.memory_space<vmem>>, %arg7: memref<1x128xf32, #tpu.memory_space<vmem>>, %arg8: memref<8x128xf32, #tpu.memory_space<vmem>>) attributes {dimension_semantics = [#tpu.dimension_semantics<parallel>], iteration_bounds = array<i64: 1>, scalar_prefetch = 0 : i64, scratch_operands = 0 : i64, tpu.core_type = #tpu.core_type<tc>, window_params = [{transform_indices = @transform_0, window_bounds = array<i64: 8, 2304>}, {pipeline_mode = #tpu.pipeline_mode<synchronous>, transform_indices = @transform_1, window_bounds = array<i64: 2304, 512>}, {pipeline_mode = #tpu.pipeline_mode<synchronous>, transform_indices = @transform_2, window_bounds = array<i64: 1, 512>}, {pipeline_mode = #tpu.pipeline_mode<synchronous>, transform_indices = @transform_3, window_bounds = array<i64: 512, 128>}, {pipeline_mode = #tpu.pipeline_mode<synchronous>, transform_indices = @transform_4, window_bounds = array<i64: 1, 128>}, {pipeline_mode = #tpu.pipeline_mode<synchronous>, transform_indices = @transform_5, window_bounds = array<i64: 128, 128>}, {pipeline_mode = #tpu.pipeline_mode<synchronous>, transform_indices = @transform_6, window_bounds = array<i64: 1, 128>}, {transform_indices = @transform_7, window_bounds = array<i64: 8, 128>}]} {
    %c0 = arith.constant 0 : index
    %c0_0 = arith.constant 0 : index
    %0 = vector.load %arg1[%c0, %c0_0] : memref<8x2304xbf16, #tpu.memory_space<vmem>>, vector<8x2304xbf16>
    %c0_1 = arith.constant 0 : index
    %c0_2 = arith.constant 0 : index
    %1 = vector.load %arg2[%c0_1, %c0_2] : memref<2304x512xbf16, #tpu.memory_space<vmem>>, vector<2304x512xbf16>
    %cst = arith.constant dense<0.000000e+00> : vector<8x512xf32>
    %2 = tpu.matmul %0, %1, %cst {dimension_numbers = #tpu.dot_dimension_numbers<[1], [0], [0], [1], [0, 0, 1, 1], [], []>} : vector<8x2304xbf16>, vector<2304x512xbf16>, vector<8x512xf32> -> vector<8x512xf32>
    %c0_3 = arith.constant 0 : index
    %c0_4 = arith.constant 0 : index
    %3 = vector.load %arg3[%c0_3, %c0_4] : memref<1x512xf32, #tpu.memory_space<vmem>>, vector<1x512xf32>
    %4 = vector.broadcast %3 : vector<1x512xf32> to vector<8x512xf32>
    %5 = arith.addf %2, %4 : vector<8x512xf32>
    %cst_5 = arith.constant 0.000000e+00 : f32
    %6 = vector.broadcast %cst_5 : f32 to vector<8x512xf32>
    %7 = arith.cmpf ogt, %5, %6 : vector<8x512xf32>
    %8 = math.exp %5 : vector<8x512xf32>
    %cst_6 = arith.constant 1.000000e+00 : f32
    %9 = vector.broadcast %cst_6 : f32 to vector<8x512xf32>
    %10 = arith.subf %8, %9 : vector<8x512xf32>
    %cst_7 = arith.constant 1.67326319 : f32
    %11 = vector.broadcast %cst_7 : f32 to vector<8x512xf32>
    %12 = arith.mulf %11, %10 : vector<8x512xf32>
    %13 = arith.select %7, %5, %12 : vector<8x512xi1>, vector<8x512xf32>
    %cst_8 = arith.constant 1.05070102 : f32
    %14 = vector.broadcast %cst_8 : f32 to vector<8x512xf32>
    %15 = arith.mulf %14, %13 : vector<8x512xf32>
    %16 = arith.truncf %15 : vector<8x512xf32> to vector<8x512xbf16>
    %c0_9 = arith.constant 0 : index
    %c0_10 = arith.constant 0 : index
    %17 = vector.load %arg4[%c0_9, %c0_10] : memref<512x128xbf16, #tpu.memory_space<vmem>>, vector<512x128xbf16>
    %cst_11 = arith.constant dense<0.000000e+00> : vector<8x128xf32>
    %18 = tpu.matmul %16, %17, %cst_11 {dimension_numbers = #tpu.dot_dimension_numbers<[1], [0], [0], [1], [0, 0, 1, 1], [], []>} : vector<8x512xbf16>, vector<512x128xbf16>, vector<8x128xf32> -> vector<8x128xf32>
    %c0_12 = arith.constant 0 : index
    %c0_13 = arith.constant 0 : index
    %19 = vector.load %arg5[%c0_12, %c0_13] : memref<1x128xf32, #tpu.memory_space<vmem>>, vector<1x128xf32>
    %20 = vector.broadcast %19 : vector<1x128xf32> to vector<8x128xf32>
    %21 = arith.addf %18, %20 : vector<8x128xf32>
    %cst_14 = arith.constant 0.000000e+00 : f32
    %22 = vector.broadcast %cst_14 : f32 to vector<8x128xf32>
    %23 = arith.cmpf ogt, %21, %22 : vector<8x128xf32>
    %24 = math.exp %21 : vector<8x128xf32>
    %cst_15 = arith.constant 1.000000e+00 : f32
    %25 = vector.broadcast %cst_15 : f32 to vector<8x128xf32>
    %26 = arith.subf %24, %25 : vector<8x128xf32>
    %cst_16 = arith.constant 1.67326319 : f32
    %27 = vector.broadcast %cst_16 : f32 to vector<8x128xf32>
    %28 = arith.mulf %27, %26 : vector<8x128xf32>
    %29 = arith.select %23, %21, %28 : vector<8x128xi1>, vector<8x128xf32>
    %cst_17 = arith.constant 1.05070102 : f32
    %30 = vector.broadcast %cst_17 : f32 to vector<8x128xf32>
    %31 = arith.mulf %30, %29 : vector<8x128xf32>
    %32 = arith.truncf %31 : vector<8x128xf32> to vector<8x128xbf16>
    %c0_18 = arith.constant 0 : index
    %c0_19 = arith.constant 0 : index
    %33 = vector.load %arg6[%c0_18, %c0_19] : memref<128x128xbf16, #tpu.memory_space<vmem>>, vector<128x128xbf16>
    %cst_20 = arith.constant dense<0.000000e+00> : vector<8x128xf32>
    %34 = tpu.matmul %32, %33, %cst_20 {dimension_numbers = #tpu.dot_dimension_numbers<[1], [0], [0], [1], [0, 0, 1, 1], [], []>} : vector<8x128xbf16>, vector<128x128xbf16>, vector<8x128xf32> -> vector<8x128xf32>
    %c0_21 = arith.constant 0 : index
    %c0_22 = arith.constant 0 : index
    %35 = vector.load %arg7[%c0_21, %c0_22] : memref<1x128xf32, #tpu.memory_space<vmem>>, vector<1x128xf32>
    %36 = vector.broadcast %35 : vector<1x128xf32> to vector<8x128xf32>
    %37 = arith.addf %34, %36 : vector<8x128xf32>
    %c0_23 = arith.constant 0 : index
    %c0_24 = arith.constant 0 : index
    %38 = vector.load %arg8[%c0_23, %c0_24] : memref<8x128xf32, #tpu.memory_space<vmem>>, vector<8x128xf32>
    tpu.vector_store %arg8[%c0_23, %c0_24], %37 {strides = array<i32>} : memref<8x128xf32, #tpu.memory_space<vmem>>, vector<8x128xf32>,
    return
  }
  func.func @transform_0(%arg0: i32) -> (i32, i32) {
    %c0_i32 = arith.constant 0 : i32
    %c0_i32_0 = arith.constant 0 : i32
    return %arg0, %c0_i32 : i32, i32
  }
  func.func @transform_1(%arg0: i32) -> (i32, i32) {
    %c0_i32 = arith.constant 0 : i32
    %c0_i32_0 = arith.constant 0 : i32
    %c0_i32_1 = arith.constant 0 : i32
    return %c0_i32, %c0_i32_0 : i32, i32
  }
  func.func @transform_2(%arg0: i32) -> (i32, i32) {
    %c0_i32 = arith.constant 0 : i32
    %c0_i32_0 = arith.constant 0 : i32
    %c0_i32_1 = arith.constant 0 : i32
    return %c0_i32, %c0_i32_0 : i32, i32
  }
  func.func @transform_3(%arg0: i32) -> (i32, i32) {
    %c0_i32 = arith.constant 0 : i32
    %c0_i32_0 = arith.constant 0 : i32
    %c0_i32_1 = arith.constant 0 : i32
    return %c0_i32, %c0_i32_0 : i32, i32
  }
  func.func @transform_4(%arg0: i32) -> (i32, i32) {
    %c0_i32 = arith.constant 0 : i32
    %c0_i32_0 = arith.constant 0 : i32
    %c0_i32_1 = arith.constant 0 : i32
    return %c0_i32, %c0_i32_0 : i32, i32
  }
  func.func @transform_5(%arg0: i32) -> (i32, i32) {
    %c0_i32 = arith.constant 0 : i32
    %c0_i32_0 = arith.constant 0 : i32
    %c0_i32_1 = arith.constant 0 : i32
    return %c0_i32, %c0_i32_0 : i32, i32
  }
  func.func @transform_6(%arg0: i32) -> (i32, i32) {
    %c0_i32 = arith.constant 0 : i32
    %c0_i32_0 = arith.constant 0 : i32
    %c0_i32_1 = arith.constant 0 : i32
    return %c0_i32, %c0_i32_0 : i32, i32
  }
  func.func @transform_7(%arg0: i32) -> (i32, i32) {
    %c0_i32 = arith.constant 0 : i32
    %c0_i32_0 = arith.constant 0 : i32
    return %arg0, %c0_i32 : i32, i32
  }
}

</mosaic_0001>

<bundles_post_ra>
// kernel: tpu_custom_call.1
= control target key start
LH: loop header
LB: loop body
LE: loop exit
PB: predicated region body
PF: predicated region fallthrough
CT: control target
= control target key end

     0   :  { %12 = vsyncpa [#allocation3], 0  ;;  %s8618_s0 = inlined_call_operand.hbm [shape: bf16[8,2304], index: 0, kind: input, shape index: {}]   ;;  %s8619_s1 = inlined_call_operand.hbm [shape: bf16[2304,512], index: 1, kind: input, shape index: {}]   ;;  %s8620_s2 = inlined_call_operand.hbm [shape: f32[1,512], index: 2, kind: input, shape index: {}]   ;;  %s8621_s3 = inlined_call_operand.hbm [shape: bf16[512,128], index: 3, kind: input, shape index: {}]   ;;  %s8622_s4 = inlined_call_operand.hbm [shape: f32[1,128], index: 4, kind: input, shape index: {}]   ;;  %s8623_s5 = inlined_call_operand.hbm [shape: bf16[128,128], index: 5, kind: input, shape index: {}]   ;;  %s8624_s6 = inlined_call_operand.hbm [shape: f32[1,128], index: 6, kind: input, shape index: {}]   ;;  %s8625_s7 = inlined_call_operand.hbm [shape: f32[8,128], index: 7, kind: output, shape index: {}]  }
   0x1   :  { %13 = vsyncpa [#allocation6], 0 }
   0x2   :  { %14 = vsyncpa [#allocation9], 0 }
   0x3   :  { %15 = vsyncpa [#allocation12], 0  ;;  %s32_s26 = sshll.u32 %s8619_s1, 4  ;;  %s33_s26 = int_to_ptr.hbm [resolvable:$true] %s32_s26 }
   0x4   :  { %16 = vsyncpa [#allocation4], 0  ;;  %s8370_s27 = smov [#allocation5]   ;;  %s56_s8 = sshll.u32 %s8621_s3, 4  ;;  %s57_s8 = int_to_ptr.hbm [resolvable:$true] %s56_s8 }
   0x5   :  { %s34_s28 = sshll.u32 %s8370_s27, 4  ;;  %s8371_s9 = smov 256   ;;  %s35_s28 = int_to_ptr.vmem [resolvable:$true] %s34_s28 }
   0x6   :  { %s8372_s10 = smov 16   ;;  %s8373_s11 = smov [#allocation8]  }
   0x7   :  { %40 = dma.hbm_to_vmem [thread:$0]  %s33_s26, 73728, %s35_s28, [#allocation6], %s8371_s9, %s8371_s9, %s8372_s10  }
   0x8   :  { %s58_s12 = sshll.u32 %s8373_s11, 4  ;;  %s8374_s13 = smov 64   ;;  %s59_s12 = int_to_ptr.vmem [resolvable:$true] %s58_s12 }
   0x9   :  { %s8375_s14 = smov 4   ;;  %s80_s16 = sshll.u32 %s8623_s5, 4  ;;  %s81_s16 = int_to_ptr.hbm [resolvable:$true] %s80_s16 }
   0xa   :  { %64 = dma.hbm_to_vmem [thread:$0]  %s57_s8, 4096, %s59_s12, [#allocation9], %s8374_s13, %s8374_s13, %s8375_s14  }
   0xb   :  { %s8376_s17 = smov [#allocation11]   ;;  %s22_s20 = sshll.u32 %s8618_s0, 4  ;;  %s23_s20 = int_to_ptr.hbm [resolvable:$true] %s22_s20 }
   0xc   :  { %s82_s18 = sshll.u32 %s8376_s17, 4  ;;  %s8377_s21 = smov [#allocation2]   ;;  %s83_s18 = int_to_ptr.vmem [resolvable:$true] %s82_s18 }
   0xd   :  { %88 = dma.hbm_to_vmem [thread:$0]  %s81_s16, 1024, %s83_s18, [#allocation12], %s8374_s13, %s8374_s13, %s8375_s14  }
   0xe   :  { %s24_s22 = sshll.u32 %s8377_s21, 4  ;;  %s46_s25 = sshll.u32 %s8620_s2, 4  ;;  %s25_s22 = int_to_ptr.vmem [resolvable:$true] %s24_s22  ;;  %s47_s25 = int_to_ptr.hbm [resolvable:$true] %s46_s25 }
   0xf   :  { %27 = dma.hbm_to_vmem [thread:$0]  %s23_s20, 1152, %s25_s22, [#allocation3]  }
  0x10   :  { %s70_s27 = sshll.u32 %s8622_s4, 4  ;;  %s8378_s28 = smov [#allocation7]   ;;  %s71_s27 = int_to_ptr.hbm [resolvable:$true] %s70_s27 }
  0x11   :  { %s48_s29 = sshll.u32 %s8378_s28, 4  ;;  %s8379_s0 = smov [#allocation10]   ;;  %s49_s29 = int_to_ptr.vmem [resolvable:$true] %s48_s29 }
  0x12   :  { %51 = dma.hbm_to_vmem [thread:$0]  %s47_s25, 64, %s49_s29, [#allocation6]  }
  0x13   :  { %s72_s30 = sshll.u32 %s8379_s0, 4  ;;  %s94_s10 = sshll.u32 %s8624_s6, 4  ;;  %s73_s30 = int_to_ptr.vmem [resolvable:$true] %s72_s30  ;;  %s95_s10 = int_to_ptr.hbm [resolvable:$true] %s94_s10 }
  0x14   :  { %75 = dma.hbm_to_vmem [thread:$0]  %s71_s27, 16, %s73_s30, [#allocation9]  }
  0x15   :  { %s8380_s2 = smov [#allocation13]  }
  0x16   :  { %s96_s11 = sshll.u32 %s8380_s2, 4  ;;  %s97_s11 = int_to_ptr.vmem [resolvable:$true] %s96_s11 }
  0x17   :  { %99 = dma.hbm_to_vmem [thread:$0]  %s95_s10, 16, %s97_s11, [#allocation12]  }
  0x18   :  { %8360 = dma.done.wait [#allocation3], 1152  }
  0x19   :  { %8361 = vsyncadd [#allocation3], 4294966144 }
  0x1a   :  { %8362 = dma.done.wait [#allocation6], 73792  }
  0x1b   :  { %8363 = vsyncadd [#allocation6], 4294893504 }
  0x1c   :  { %8364 = dma.done.wait [#allocation9], 4112  }
  0x1d   :  { %8365 = vsyncadd [#allocation9], 4294963184 }
  0x1e   :  { %8366 = dma.done.wait [#allocation12], 1040  }
  0x1f   :  { %8367 = vsyncadd [#allocation12], 4294966256  ;;  %v5170_v0 = vld [vmem:[#allocation5 + $0xe0] sm:$0xf]  ;;  %v7555_v1 = vld [vmem:[#allocation5 + $0xec] sm:$0xf0] }
  0x20   :  { %v5298_v2 = vld [vmem:[#allocation5 + $0x1e0] sm:$0xf]  ;;  %v5171_v3 = vor.u32 %v7555_v1, %v5170_v0  ;;  %v7587_v4 = vld [vmem:[#allocation5 + $0x1ec] sm:$0xf0]  ;;  %s8381_s4 = smov [#allocation14]   ;;  %s5043_s14 = sshll.u32 %s8625_s7, 4  ;;  %s5044_s14 = int_to_ptr.hbm [resolvable:$true] %s5043_s14 }
  0x21   :  { %v5426_v5 = vld [vmem:[#allocation5 + $0x2e0] sm:$0xf]  ;;  %v7619_v6 = vld [vmem:[#allocation5 + $0x2ec] sm:$0xf0]  ;;  %v5299_v7 = vor.u32 %v7587_v4, %v5298_v2  ;;  %s5041_s6 = sshll.u32 %s8381_s4, 4  ;;  %s5042_s6 = int_to_ptr.vmem [resolvable:$true] %s5041_s6 }
  0x22   :  { %v5427_v8 = vor.u32 %v7619_v6, %v5426_v5  ;;  %v5554_v9 = vld [vmem:[#allocation5 + $0x3e0] sm:$0xf]  ;;  %v7651_v10 = vld [vmem:[#allocation5 + $0x3ec] sm:$0xf0]  ;;  %3666 = vmatpush.bf16.msra.mxu0 %v5171_v3 }
  0x23   :  { %v5154_v11 = vld [vmem:[#allocation5 + $0xc0] sm:$0xf]  ;;  %v5555_v12 = vor.u32 %v7651_v10, %v5554_v9  ;;  %v7551_v13 = vld [vmem:[#allocation5 + $0xcc] sm:$0xf0]  ;;  %3679 = vmatpush.bf16.msra.mxu1 %v5299_v7 }
  0x24   :  { %v5282_v14 = vld [vmem:[#allocation5 + $0x1c0] sm:$0xf]  ;;  %v7583_v15 = vld [vmem:[#allocation5 + $0x1cc] sm:$0xf0]  ;;  %3692 = vmatpush.bf16.msra.mxu2 %v5427_v8  ;;  %v5155_v16 = vor.u32 %v7551_v13, %v5154_v11 }
  0x25   :  { %v5283_v17 = vor.u32 %v7583_v15, %v5282_v14  ;;  %v5410_v18 = vld [vmem:[#allocation5 + $0x2c0] sm:$0xf]  ;;  %v7615_v19 = vld [vmem:[#allocation5 + $0x2cc] sm:$0xf0]  ;;  %3705 = vmatpush.bf16.msra.mxu3 %v5555_v12 }
  0x26   :  { %v5538_v20 = vld [vmem:[#allocation5 + $0x3c0] sm:$0xf]  ;;  %v5411_v21 = vor.u32 %v7615_v19, %v5410_v18  ;;  %v7647_v22 = vld [vmem:[#allocation5 + $0x3cc] sm:$0xf0]  ;;  %3667 = vmatpush.bf16.msra.mxu0 %v5155_v16 }
  0x27   :  { %v5138_v23 = vld [vmem:[#allocation5 + $0xa0] sm:$0xf]  ;;  %v7547_v24 = vld [vmem:[#allocation5 + $0xac] sm:$0xf0]  ;;  %v5539_v25 = vor.u32 %v7647_v22, %v5538_v20  ;;  %3680 = vmatpush.bf16.msra.mxu1 %v5283_v17 }
  0x28   :  { %v5266_v26 = vld [vmem:[#allocation5 + $0x1a0] sm:$0xf]  ;;  %v7579_v27 = vld [vmem:[#allocation5 + $0x1ac] sm:$0xf0]  ;;  %v5139_v29 = vor.u32 %v7547_v24, %v5138_v23  ;;  %3693 = vmatpush.bf16.msra.mxu2 %v5411_v21 }
  0x29   :  { %v5394_v28 = vld [vmem:[#allocation5 + $0x2a0] sm:$0xf]  ;;  %v7611_v30 = vld [vmem:[#allocation5 + $0x2ac] sm:$0xf0]  ;;  %v5267_v33 = vor.u32 %v7579_v27, %v5266_v26  ;;  %3706 = vmatpush.bf16.msra.mxu3 %v5539_v25 }
  0x2a   :  { %v5522_v31 = vld [vmem:[#allocation5 + $0x3a0] sm:$0xf]  ;;  %v7643_v32 = vld [vmem:[#allocation5 + $0x3ac] sm:$0xf0]  ;;  %v5395_v34 = vor.u32 %v7611_v30, %v5394_v28  ;;  %3668 = vmatpush.bf16.msra.mxu0 %v5139_v29 }
  0x2b   :  { %v5122_v35 = vld [vmem:[#allocation5 + $0x80] sm:$0xf]  ;;  %v7543_v36 = vld [vmem:[#allocation5 + $0x8c] sm:$0xf0]  ;;  %v5523_v38 = vor.u32 %v7643_v32, %v5522_v31  ;;  %3681 = vmatpush.bf16.msra.mxu1 %v5267_v33 }
  0x2c   :  { %v5250_v37 = vld [vmem:[#allocation5 + $0x180] sm:$0xf]  ;;  %v7575_v39 = vld [vmem:[#allocation5 + $0x18c] sm:$0xf0]  ;;  %v5123_v44 = vor.u32 %v7543_v36, %v5122_v35  ;;  %3694 = vmatpush.bf16.msra.mxu2 %v5395_v34 }
  0x2d   :  { %v5378_v40 = vld [vmem:[#allocation5 + $0x280] sm:$0xf]  ;;  %v7607_v41 = vld [vmem:[#allocation5 + $0x28c] sm:$0xf0]  ;;  %v5251_v45 = vor.u32 %v7575_v39, %v5250_v37  ;;  %3707 = vmatpush.bf16.msra.mxu3 %v5523_v38 }
  0x2e   :  { %v5506_v42 = vld [vmem:[#allocation5 + $0x380] sm:$0xf]  ;;  %v7639_v43 = vld [vmem:[#allocation5 + $0x38c] sm:$0xf0]  ;;  %v5379_v46 = vor.u32 %v7607_v41, %v5378_v40  ;;  %3669 = vmatpush.bf16.msra.mxu0 %v5123_v44 }
  0x2f   :  { %v5106_v47 = vld [vmem:[#allocation5 + $0x60] sm:$0xf]  ;;  %v7539_v48 = vld [vmem:[#allocation5 + $0x6c] sm:$0xf0]  ;;  %v5507_v50 = vor.u32 %v7639_v43, %v5506_v42  ;;  %3682 = vmatpush.bf16.msra.mxu1 %v5251_v45 }
  0x30   :  { %v5234_v49 = vld [vmem:[#allocation5 + $0x160] sm:$0xf]  ;;  %v7571_v51 = vld [vmem:[#allocation5 + $0x16c] sm:$0xf0]  ;;  %v5107_v56 = vor.u32 %v7539_v48, %v5106_v47  ;;  %3695 = vmatpush.bf16.msra.mxu2 %v5379_v46 }
  0x31   :  { %v5362_v52 = vld [vmem:[#allocation5 + $0x260] sm:$0xf]  ;;  %v7603_v53 = vld [vmem:[#allocation5 + $0x26c] sm:$0xf0]  ;;  %v5235_v57 = vor.u32 %v7571_v51, %v5234_v49  ;;  %3708 = vmatpush.bf16.msra.mxu3 %v5507_v50 }
  0x32   :  { %v5490_v54 = vld [vmem:[#allocation5 + $0x360] sm:$0xf]  ;;  %v7635_v55 = vld [vmem:[#allocation5 + $0x36c] sm:$0xf0]  ;;  %v5363_v58 = vor.u32 %v7603_v53, %v5362_v52  ;;  %3670 = vmatpush.bf16.msra.mxu0 %v5107_v56 }
  0x33   :  { %v5090_v59 = vld [vmem:[#allocation5 + $0x40] sm:$0xf]  ;;  %v7535_v60 = vld [vmem:[#allocation5 + $0x4c] sm:$0xf0]  ;;  %v5491_v62 = vor.u32 %v7635_v55, %v5490_v54  ;;  %3683 = vmatpush.bf16.msra.mxu1 %v5235_v57 }
  0x34   :  { %v5218_v61 = vld [vmem:[#allocation5 + $0x140] sm:$0xf]  ;;  %v7567_v63 = vld [vmem:[#allocation5 + $0x14c] sm:$0xf0]  ;;  %v5091_v4 = vor.u32 %v7535_v60, %v5090_v59  ;;  %3696 = vmatpush.bf16.msra.mxu2 %v5363_v58 }
  0x35   :  { %v5346_v0 = vld [vmem:[#allocation5 + $0x240] sm:$0xf]  ;;  %v7599_v1 = vld [vmem:[#allocation5 + $0x24c] sm:$0xf0]  ;;  %v5219_v5 = vor.u32 %v7567_v63, %v5218_v61  ;;  %3709 = vmatpush.bf16.msra.mxu3 %v5491_v62 }
  0x36   :  { %v5474_v2 = vld [vmem:[#allocation5 + $0x340] sm:$0xf]  ;;  %v7631_v3 = vld [vmem:[#allocation5 + $0x34c] sm:$0xf0]  ;;  %v5347_v6 = vor.u32 %v7599_v1, %v5346_v0  ;;  %3671 = vmatpush.bf16.msra.mxu0 %v5091_v4 }
  0x37   :  { %v5074_v7 = vld [vmem:[#allocation5 + $0x20] sm:$0xf]  ;;  %v7531_v8 = vld [vmem:[#allocation5 + $0x2c] sm:$0xf0]  ;;  %v5475_v10 = vor.u32 %v7631_v3, %v5474_v2  ;;  %3684 = vmatpush.bf16.msra.mxu1 %v5219_v5  ;;  %v128_v3 = vld [vmem:[#allocation2] sm:$0xff] }
  0x38   :  { %v5202_v9 = vld [vmem:[#allocation5 + $0x120] sm:$0xf]  ;;  %v7563_v11 = vld [vmem:[#allocation5 + $0x12c] sm:$0xf0]  ;;  %v5075_v16 = vor.u32 %v7531_v8, %v5074_v7  ;;  %3697 = vmatpush.bf16.msra.mxu2 %v5347_v6 }
  0x39   :  { %v5330_v12 = vld [vmem:[#allocation5 + $0x220] sm:$0xf]  ;;  %v7595_v13 = vld [vmem:[#allocation5 + $0x22c] sm:$0xf0]  ;;  %v5203_v19 = vor.u32 %v7563_v11, %v5202_v9  ;;  %3710 = vmatpush.bf16.msra.mxu3 %v5475_v10  ;;  %v732_v9 = vunpack.c.l.b16 %v128_v3 }
  0x3a   :  { %v5458_v14 = vld [vmem:[#allocation5 + $0x320] sm:$0xf]  ;;  %v7627_v15 = vld [vmem:[#allocation5 + $0x32c] sm:$0xf0]  ;;  %v5331_v20 = vor.u32 %v7595_v13, %v5330_v12  ;;  %3672 = vmatpush.bf16.msra.mxu0 %v5075_v16 }
  0x3b   :  { %v5058_v17 = vld [vmem:[#allocation5] sm:$0xf]  ;;  %v7527_v18 = vld [vmem:[#allocation5 + $0xc] sm:$0xf0]  ;;  %v5459_v24 = vor.u32 %v7627_v15, %v5458_v14  ;;  %3685 = vmatpush.bf16.msra.mxu1 %v5203_v19  ;;  %v733_v15 = vunpack.c.h.b16 %v128_v3  ;;  %v8445_v19 = vpack.c.b16 %v732_v9, %v732_v9 }
  0x3c   :  { %v5186_v21 = vld [vmem:[#allocation5 + $0x100] sm:$0xf]  ;;  %v7559_v22 = vld [vmem:[#allocation5 + $0x10c] sm:$0xf0]  ;;  %v5059_v31 = vor.u32 %v7527_v18, %v5058_v17  ;;  %3698 = vmatpush.bf16.msra.mxu2 %v5331_v20 }
  0x3d   :  { %v5314_v23 = vld [vmem:[#allocation5 + $0x200] sm:$0xf]  ;;  %v7591_v25 = vld [vmem:[#allocation5 + $0x20c] sm:$0xf0]  ;;  %v5187_v35 = vor.u32 %v7559_v22, %v5186_v21  ;;  %3711 = vmatpush.bf16.msra.mxu3 %v5459_v24  ;;  %v8449_v22 = vpack.c.b16 %v733_v15, %v733_v15 }
  0x3e   :  { %v5442_v26 = vld [vmem:[#allocation5 + $0x300] sm:$0xf]  ;;  %v7623_v27 = vld [vmem:[#allocation5 + $0x30c] sm:$0xf0]  ;;  %v5315_v36 = vor.u32 %v7591_v25, %v5314_v23  ;;  %3673 = vmatpush.bf16.msra.mxu0 %v5059_v31 }
  0x3f   :  { %v5682_v28 = vld [vmem:[#allocation5 + $0x4e0] sm:$0xf]  ;;  %v7683_v29 = vld [vmem:[#allocation5 + $0x4ec] sm:$0xf0]  ;;  %v5443_v39 = vor.u32 %v7623_v27, %v5442_v26  ;;  %3686 = vmatpush.bf16.msra.mxu1 %v5187_v35 }
  0x40   :  { %v5810_v30 = vld [vmem:[#allocation5 + $0x5e0] sm:$0xf]  ;;  %v7715_v32 = vld [vmem:[#allocation5 + $0x5ec] sm:$0xf0]  ;;  %v5683_v40 = vor.u32 %v7683_v29, %v5682_v28  ;;  %3699 = vmatpush.bf16.msra.mxu2 %v5315_v36 }
  0x41   :  { %v5938_v33 = vld [vmem:[#allocation5 + $0x6e0] sm:$0xf]  ;;  %v7747_v34 = vld [vmem:[#allocation5 + $0x6ec] sm:$0xf0]  ;;  %v5811_v41 = vor.u32 %v7715_v32, %v5810_v30  ;;  %3712 = vmatpush.bf16.msra.mxu3 %v5443_v39  ;;  %3674 = vmatmul.bf16.vlgmr.msra.gmra.mxu0 %v8445_v19 }
  0x42   :  { %v6066_v37 = vld [vmem:[#allocation5 + $0x7e0] sm:$0xf]  ;;  %v7779_v38 = vld [vmem:[#allocation5 + $0x7ec] sm:$0xf0]  ;;  %v5939_v42 = vor.u32 %v7747_v34, %v5938_v33  ;;  %3718 = vmatpush.bf16.msrb.mxu0 %v5683_v40  ;;  %3687 = vmatmul.bf16.vlgmr.msra.gmra.mxu1 %v8449_v22 }
  0x43   :  { %v5666_v43 = vld [vmem:[#allocation5 + $0x4c0] sm:$0xf]  ;;  %v7679_v44 = vld [vmem:[#allocation5 + $0x4cc] sm:$0xf0]  ;;  %v6067_v46 = vor.u32 %v7779_v38, %v6066_v37  ;;  %3731 = vmatpush.bf16.msrb.mxu1 %v5811_v41 }
  0x44   :  { %v5794_v45 = vld [vmem:[#allocation5 + $0x5c0] sm:$0xf]  ;;  %v7711_v47 = vld [vmem:[#allocation5 + $0x5cc] sm:$0xf0]  ;;  %v5667_v52 = vor.u32 %v7679_v44, %v5666_v43  ;;  %3744 = vmatpush.bf16.msrb.mxu2 %v5939_v42 }
  0x45   :  { %v5922_v48 = vld [vmem:[#allocation5 + $0x6c0] sm:$0xf]  ;;  %v7743_v49 = vld [vmem:[#allocation5 + $0x6cc] sm:$0xf0]  ;;  %v5795_v54 = vor.u32 %v7711_v47, %v5794_v45  ;;  %3757 = vmatpush.bf16.msrb.mxu3 %v6067_v46 }
  0x46   :  { %v6050_v50 = vld [vmem:[#allocation5 + $0x7c0] sm:$0xf]  ;;  %v7775_v51 = vld [vmem:[#allocation5 + $0x7cc] sm:$0xf0]  ;;  %v5923_v55 = vor.u32 %v7743_v49, %v5922_v48  ;;  %3719 = vmatpush.bf16.msrb.mxu0 %v5667_v52 }
  0x47   :  { %v5650_v53 = vld [vmem:[#allocation5 + $0x4a0] sm:$0xf]  ;;  %v7675_v56 = vld [vmem:[#allocation5 + $0x4ac] sm:$0xf0]  ;;  %v6051_v59 = vor.u32 %v7775_v51, %v6050_v50  ;;  %3732 = vmatpush.bf16.msrb.mxu1 %v5795_v54 }
  0x48   :  { %v5778_v57 = vld [vmem:[#allocation5 + $0x5a0] sm:$0xf]  ;;  %v7707_v58 = vld [vmem:[#allocation5 + $0x5ac] sm:$0xf0]  ;;  %v5651_v0 = vor.u32 %v7675_v56, %v5650_v53  ;;  %3745 = vmatpush.bf16.msrb.mxu2 %v5923_v55 }
  0x49   :  { %v5906_v60 = vld [vmem:[#allocation5 + $0x6a0] sm:$0xf]  ;;  %v7739_v61 = vld [vmem:[#allocation5 + $0x6ac] sm:$0xf0]  ;;  %v5779_v1 = vor.u32 %v7707_v58, %v5778_v57  ;;  %3758 = vmatpush.bf16.msrb.mxu3 %v6051_v59 }
  0x4a   :  { %v6034_v62 = vld [vmem:[#allocation5 + $0x7a0] sm:$0xf]  ;;  %v7771_v63 = vld [vmem:[#allocation5 + $0x7ac] sm:$0xf0]  ;;  %v5907_v4 = vor.u32 %v7739_v61, %v5906_v60  ;;  %3720 = vmatpush.bf16.msrb.mxu0 %v5651_v0 }
  0x4b   :  { %v129_v2 = vld [vmem:[#allocation2 + $0x8] sm:$0xff]  ;;  %v7671_v6 = vld [vmem:[#allocation5 + $0x48c] sm:$0xf0]  ;;  %v6035_v11 = vor.u32 %v7771_v63, %v6034_v62  ;;  %3733 = vmatpush.bf16.msrb.mxu1 %v5779_v1 }
  0x4c   :  { %v5634_v5 = vld [vmem:[#allocation5 + $0x480] sm:$0xf]  ;;  %v734_v8 = vunpack.c.l.b16 %v129_v2  ;;  %v735_v10 = vunpack.c.h.b16 %v129_v2  ;;  %v7703_v12 = vld [vmem:[#allocation5 + $0x58c] sm:$0xf0]  ;;  %3746 = vmatpush.bf16.msrb.mxu2 %v5907_v4 }
  0x4d   :  { %v5762_v7 = vld [vmem:[#allocation5 + $0x580] sm:$0xf]  ;;  %v7735_v14 = vld [vmem:[#allocation5 + $0x68c] sm:$0xf0]  ;;  %v5635_v21 = vor.u32 %v7671_v6, %v5634_v5  ;;  %3759 = vmatpush.bf16.msrb.mxu3 %v6035_v11 }
  0x4e   :  { %v5890_v13 = vld [vmem:[#allocation5 + $0x680] sm:$0xf]  ;;  %v7767_v17 = vld [vmem:[#allocation5 + $0x78c] sm:$0xf0]  ;;  %v8443_v18 = vpack.c.b16 %v734_v8, %v734_v8  ;;  %v8447_v20 = vpack.c.b16 %v735_v10, %v735_v10  ;;  %v5763_v23 = vor.u32 %v7703_v12, %v5762_v7  ;;  %v130_v7 = vld [vmem:[#allocation2 + $0x10] sm:$0xff] }
  0x4f   :  { %v6018_v16 = vld [vmem:[#allocation5 + $0x780] sm:$0xf]  ;;  %v5891_v24 = vor.u32 %v7735_v14, %v5890_v13  ;;  %v7667_v26 = vld [vmem:[#allocation5 + $0x46c] sm:$0xf0]  ;;  %3721 = vmatpush.bf16.msrb.mxu0 %v5635_v21 }
  0x50   :  { %v5618_v25 = vld [vmem:[#allocation5 + $0x460] sm:$0xf]  ;;  %v6019_v28 = vor.u32 %v7767_v17, %v6018_v16  ;;  %v7699_v29 = vld [vmem:[#allocation5 + $0x56c] sm:$0xf0]  ;;  %3700 = vmatmul.bf16.vlgmr.msra.gmra.mxu2 %v8443_v18  ;;  %3713 = vmatmul.bf16.vlgmr.msra.gmra.mxu3 %v8447_v20 }
  0x51   :  { %v5746_v27 = vld [vmem:[#allocation5 + $0x560] sm:$0xf]  ;;  %v7731_v31 = vld [vmem:[#allocation5 + $0x66c] sm:$0xf0]  ;;  %v5619_v34 = vor.u32 %v7667_v26, %v5618_v25  ;;  %3734 = vmatpush.bf16.msrb.mxu1 %v5763_v23  ;;  %3747 = vmatpush.bf16.msrb.mxu2 %v5891_v24  ;;  %v736_v24 = vunpack.c.l.b16 %v130_v7 }
  0x52   :  { %v5874_v30 = vld [vmem:[#allocation5 + $0x660] sm:$0xf]  ;;  %v7763_v33 = vld [vmem:[#allocation5 + $0x76c] sm:$0xf0]  ;;  %v5747_v35 = vor.u32 %v7699_v29, %v5746_v27  ;;  %3760 = vmatpush.bf16.msrb.mxu3 %v6019_v28  ;;  %v737_v28 = vunpack.c.h.b16 %v130_v7 }
  0x53   :  { %v6002_v32 = vld [vmem:[#allocation5 + $0x760] sm:$0xf]  ;;  %v5875_v36 = vor.u32 %v7731_v31, %v5874_v30  ;;  %v7663_v38 = vld [vmem:[#allocation5 + $0x44c] sm:$0xf0]  ;;  %3722 = vmatpush.bf16.msrb.mxu0 %v5619_v34 }
  0x54   :  { %v5602_v37 = vld [vmem:[#allocation5 + $0x440] sm:$0xf]  ;;  %v6003_v40 = vor.u32 %v7763_v33, %v6002_v32  ;;  %v7695_v41 = vld [vmem:[#allocation5 + $0x54c] sm:$0xf0] }
  0x55   :  { %v5730_v39 = vld [vmem:[#allocation5 + $0x540] sm:$0xf]  ;;  %v7727_v43 = vld [vmem:[#allocation5 + $0x64c] sm:$0xf0]  ;;  %v5603_v46 = vor.u32 %v7663_v38, %v5602_v37  ;;  %3735 = vmatpush.bf16.msrb.mxu1 %v5747_v35  ;;  %3748 = vmatpush.bf16.msrb.mxu2 %v5875_v36 }
  0x56   :  { %v5858_v42 = vld [vmem:[#allocation5 + $0x640] sm:$0xf]  ;;  %v7759_v45 = vld [vmem:[#allocation5 + $0x74c] sm:$0xf0]  ;;  %v5731_v47 = vor.u32 %v7695_v41, %v5730_v39  ;;  %3761 = vmatpush.bf16.msrb.mxu3 %v6003_v40  ;;  %v8457_v41 = vpack.c.b16 %v736_v24, %v736_v24 }
  0x57   :  { %v5986_v44 = vld [vmem:[#allocation5 + $0x740] sm:$0xf]  ;;  %v5859_v48 = vor.u32 %v7727_v43, %v5858_v42  ;;  %v7659_v50 = vld [vmem:[#allocation5 + $0x42c] sm:$0xf0]  ;;  %3723 = vmatpush.bf16.msrb.mxu0 %v5603_v46 }
  0x58   :  { %v5586_v49 = vld [vmem:[#allocation5 + $0x420] sm:$0xf]  ;;  %v5987_v52 = vor.u32 %v7759_v45, %v5986_v44  ;;  %v7691_v53 = vld [vmem:[#allocation5 + $0x52c] sm:$0xf0]  ;;  %v8461_v44 = vpack.c.b16 %v737_v28, %v737_v28 }
  0x59   :  { %v5714_v51 = vld [vmem:[#allocation5 + $0x520] sm:$0xf]  ;;  %v7723_v55 = vld [vmem:[#allocation5 + $0x62c] sm:$0xf0]  ;;  %v5587_v59 = vor.u32 %v7659_v50, %v5586_v49  ;;  %3736 = vmatpush.bf16.msrb.mxu1 %v5731_v47  ;;  %3749 = vmatpush.bf16.msrb.mxu2 %v5859_v48 }
  0x5a   :  { %v5842_v54 = vld [vmem:[#allocation5 + $0x620] sm:$0xf]  ;;  %v7755_v57 = vld [vmem:[#allocation5 + $0x72c] sm:$0xf0]  ;;  %v5715_v63 = vor.u32 %v7691_v53, %v5714_v51  ;;  %3762 = vmatpush.bf16.msrb.mxu3 %v5987_v52 }
  0x5b   :  { %v5970_v56 = vld [vmem:[#allocation5 + $0x720] sm:$0xf]  ;;  %v7655_v60 = vld [vmem:[#allocation5 + $0x40c] sm:$0xf0]  ;;  %v5843_v0 = vor.u32 %v7723_v55, %v5842_v54  ;;  %3724 = vmatpush.bf16.msrb.mxu0 %v5587_v59 }
  0x5c   :  { %v5570_v58 = vld [vmem:[#allocation5 + $0x400] sm:$0xf]  ;;  %v7687_v62 = vld [vmem:[#allocation5 + $0x50c] sm:$0xf0]  ;;  %v5971_v4 = vor.u32 %v7755_v57, %v5970_v56 }
  0x5d   :  { %v5698_v61 = vld [vmem:[#allocation5 + $0x500] sm:$0xf]  ;;  %v7719_v2 = vld [vmem:[#allocation5 + $0x60c] sm:$0xf0]  ;;  %v5571_v11 = vor.u32 %v7655_v60, %v5570_v58  ;;  %3737 = vmatpush.bf16.msrb.mxu1 %v5715_v63  ;;  %3750 = vmatpush.bf16.msrb.mxu2 %v5843_v0 }
  0x5e   :  { %v5826_v1 = vld [vmem:[#allocation5 + $0x600] sm:$0xf]  ;;  %v131_v3 = vld [vmem:[#allocation2 + $0x18] sm:$0xff]  ;;  %v5699_v16 = vor.u32 %v7687_v62, %v5698_v61  ;;  %3763 = vmatpush.bf16.msrb.mxu3 %v5971_v4 }
  0x5f   :  { %v5954_v5 = vld [vmem:[#allocation5 + $0x700] sm:$0xf]  ;;  %v7751_v6 = vld [vmem:[#allocation5 + $0x70c] sm:$0xf0]  ;;  %v738_v15 = vunpack.c.l.b16 %v131_v3  ;;  %v5827_v17 = vor.u32 %v7719_v2, %v5826_v1  ;;  %v739_v25 = vunpack.c.h.b16 %v131_v3  ;;  %3725 = vmatpush.bf16.msrb.mxu0 %v5571_v11 }
  0x60   :  { %v6194_v8 = vld [vmem:[#allocation5 + $0x8e0] sm:$0xf]  ;;  %v7811_v9 = vld [vmem:[#allocation5 + $0x8ec] sm:$0xf0]  ;;  %v5955_v26 = vor.u32 %v7751_v6, %v5954_v5 }
  0x61   :  { %v6322_v10 = vld [vmem:[#allocation5 + $0x9e0] sm:$0xf]  ;;  %v7843_v12 = vld [vmem:[#allocation5 + $0x9ec] sm:$0xf0]  ;;  %v6195_v27 = vor.u32 %v7811_v9, %v6194_v8  ;;  %v8455_v38 = vpack.c.b16 %v738_v15, %v738_v15  ;;  %3738 = vmatpush.bf16.msrb.mxu1 %v5699_v16  ;;  %3751 = vmatpush.bf16.msrb.mxu2 %v5827_v17  ;;  %v8459_v42 = vpack.c.b16 %v739_v25, %v739_v25 }
  0x62   :  { %v6450_v13 = vld [vmem:[#allocation5 + $0xae0] sm:$0xf]  ;;  %v7875_v14 = vld [vmem:[#allocation5 + $0xaec] sm:$0xf0]  ;;  %v6323_v29 = vor.u32 %v7843_v12, %v6322_v10  ;;  %3764 = vmatpush.bf16.msrb.mxu3 %v5955_v26  ;;  %3726 = vmatmul.bf16.vlgmr.msrb.gmra.mxu0 %v8457_v41 }
  0x63   :  { %v6578_v21 = vld [vmem:[#allocation5 + $0xbe0] sm:$0xf]  ;;  %v7907_v23 = vld [vmem:[#allocation5 + $0xbec] sm:$0xf0]  ;;  %v6451_v30 = vor.u32 %v7875_v14, %v6450_v13  ;;  %3770 = vmatpush.bf16.msra.mxu0 %v6195_v27 }
  0x64   :  { %v6178_v31 = vld [vmem:[#allocation5 + $0x8c0] sm:$0xf]  ;;  %v7807_v32 = vld [vmem:[#allocation5 + $0x8cc] sm:$0xf0]  ;;  %v6579_v34 = vor.u32 %v7907_v23, %v6578_v21  ;;  %3752 = vmatmul.bf16.vlgmr.msrb.gmra.mxu2 %v8455_v38  ;;  %3739 = vmatmul.bf16.vlgmr.msrb.gmra.mxu1 %v8461_v44 }
  0x65   :  { %v6306_v33 = vld [vmem:[#allocation5 + $0x9c0] sm:$0xf]  ;;  %v7839_v35 = vld [vmem:[#allocation5 + $0x9cc] sm:$0xf0]  ;;  %v6179_v43 = vor.u32 %v7807_v32, %v6178_v31  ;;  %3783 = vmatpush.bf16.msra.mxu1 %v6323_v29  ;;  %3796 = vmatpush.bf16.msra.mxu2 %v6451_v30 }
  0x66   :  { %v6434_v36 = vld [vmem:[#allocation5 + $0xac0] sm:$0xf]  ;;  %v7871_v37 = vld [vmem:[#allocation5 + $0xacc] sm:$0xf0]  ;;  %v6307_v45 = vor.u32 %v7839_v35, %v6306_v33  ;;  %3809 = vmatpush.bf16.msra.mxu3 %v6579_v34 }
  0x67   :  { %v6562_v39 = vld [vmem:[#allocation5 + $0xbc0] sm:$0xf]  ;;  %v7903_v40 = vld [vmem:[#allocation5 + $0xbcc] sm:$0xf0]  ;;  %v6435_v46 = vor.u32 %v7871_v37, %v6434_v36  ;;  %3765 = vmatmul.bf16.vlgmr.msrb.gmra.mxu3 %v8459_v42  ;;  %3771 = vmatpush.bf16.msra.mxu0 %v6179_v43 }
  0x68   :  { %v6162_v47 = vld [vmem:[#allocation5 + $0x8a0] sm:$0xf]  ;;  %v7803_v48 = vld [vmem:[#allocation5 + $0x8ac] sm:$0xf0]  ;;  %v6563_v50 = vor.u32 %v7903_v40, %v6562_v39 }
  0x69   :  { %v6290_v49 = vld [vmem:[#allocation5 + $0x9a0] sm:$0xf]  ;;  %v7835_v51 = vld [vmem:[#allocation5 + $0x9ac] sm:$0xf0]  ;;  %v6163_v56 = vor.u32 %v7803_v48, %v6162_v47  ;;  %3784 = vmatpush.bf16.msra.mxu1 %v6307_v45  ;;  %3797 = vmatpush.bf16.msra.mxu2 %v6435_v46 }
  0x6a   :  { %v6418_v52 = vld [vmem:[#allocation5 + $0xaa0] sm:$0xf]  ;;  %v7867_v53 = vld [vmem:[#allocation5 + $0xaac] sm:$0xf0]  ;;  %v6291_v57 = vor.u32 %v7835_v51, %v6290_v49  ;;  %3810 = vmatpush.bf16.msra.mxu3 %v6563_v50 }
  0x6b   :  { %v6546_v54 = vld [vmem:[#allocation5 + $0xba0] sm:$0xf]  ;;  %v7899_v55 = vld [vmem:[#allocation5 + $0xbac] sm:$0xf0]  ;;  %v6419_v58 = vor.u32 %v7867_v53, %v6418_v52  ;;  %3772 = vmatpush.bf16.msra.mxu0 %v6163_v56 }
  0x6c   :  { %v6146_v59 = vld [vmem:[#allocation5 + $0x880] sm:$0xf]  ;;  %v7799_v60 = vld [vmem:[#allocation5 + $0x88c] sm:$0xf0]  ;;  %v6547_v62 = vor.u32 %v7899_v55, %v6546_v54 }
  0x6d   :  { %v6274_v61 = vld [vmem:[#allocation5 + $0x980] sm:$0xf]  ;;  %v7831_v63 = vld [vmem:[#allocation5 + $0x98c] sm:$0xf0]  ;;  %v6147_v4 = vor.u32 %v7799_v60, %v6146_v59  ;;  %3785 = vmatpush.bf16.msra.mxu1 %v6291_v57  ;;  %3798 = vmatpush.bf16.msra.mxu2 %v6419_v58  ;;  %v132_v57 = vld [vmem:[#allocation2 + $0x20] sm:$0xff] }
  0x6e   :  { %v6402_v0 = vld [vmem:[#allocation5 + $0xa80] sm:$0xf]  ;;  %v7863_v1 = vld [vmem:[#allocation5 + $0xa8c] sm:$0xf0]  ;;  %v6275_v5 = vor.u32 %v7831_v63, %v6274_v61  ;;  %3811 = vmatpush.bf16.msra.mxu3 %v6547_v62 }
  0x6f   :  { %v6530_v2 = vld [vmem:[#allocation5 + $0xb80] sm:$0xf]  ;;  %v7895_v3 = vld [vmem:[#allocation5 + $0xb8c] sm:$0xf0]  ;;  %v6403_v6 = vor.u32 %v7863_v1, %v6402_v0  ;;  %3773 = vmatpush.bf16.msra.mxu0 %v6147_v4 }
  0x70   :  { %v6130_v7 = vld [vmem:[#allocation5 + $0x860] sm:$0xf]  ;;  %v7795_v8 = vld [vmem:[#allocation5 + $0x86c] sm:$0xf0]  ;;  %v6531_v10 = vor.u32 %v7895_v3, %v6530_v2 }
  0x71   :  { %v6258_v9 = vld [vmem:[#allocation5 + $0x960] sm:$0xf]  ;;  %v7827_v11 = vld [vmem:[#allocation5 + $0x96c] sm:$0xf0]  ;;  %v6131_v16 = vor.u32 %v7795_v8, %v6130_v7  ;;  %3786 = vmatpush.bf16.msra.mxu1 %v6275_v5  ;;  %3799 = vmatpush.bf16.msra.mxu2 %v6403_v6  ;;  %v740_v5 = vunpack.c.l.b16 %v132_v57 }
  0x72   :  { %v6386_v12 = vld [vmem:[#allocation5 + $0xa60] sm:$0xf]  ;;  %v7859_v13 = vld [vmem:[#allocation5 + $0xa6c] sm:$0xf0]  ;;  %v6259_v17 = vor.u32 %v7827_v11, %v6258_v9  ;;  %3812 = vmatpush.bf16.msra.mxu3 %v6531_v10  ;;  %v741_v11 = vunpack.c.h.b16 %v132_v57 }
  0x73   :  { %v6514_v14 = vld [vmem:[#allocation5 + $0xb60] sm:$0xf]  ;;  %v7891_v15 = vld [vmem:[#allocation5 + $0xb6c] sm:$0xf0]  ;;  %v6387_v21 = vor.u32 %v7859_v13, %v6386_v12  ;;  %3774 = vmatpush.bf16.msra.mxu0 %v6131_v16 }
  0x74   :  { %v6114_v23 = vld [vmem:[#allocation5 + $0x840] sm:$0xf]  ;;  %v7791_v24 = vld [vmem:[#allocation5 + $0x84c] sm:$0xf0]  ;;  %v6515_v26 = vor.u32 %v7891_v15, %v6514_v14 }
  0x75   :  { %v6242_v25 = vld [vmem:[#allocation5 + $0x940] sm:$0xf]  ;;  %v7823_v27 = vld [vmem:[#allocation5 + $0x94c] sm:$0xf0]  ;;  %v6115_v32 = vor.u32 %v7791_v24, %v6114_v23  ;;  %3787 = vmatpush.bf16.msra.mxu1 %v6259_v17  ;;  %3800 = vmatpush.bf16.msra.mxu2 %v6387_v21 }
  0x76   :  { %v6370_v28 = vld [vmem:[#allocation5 + $0xa40] sm:$0xf]  ;;  %v7855_v29 = vld [vmem:[#allocation5 + $0xa4c] sm:$0xf0]  ;;  %v6243_v35 = vor.u32 %v7823_v27, %v6242_v25  ;;  %3813 = vmatpush.bf16.msra.mxu3 %v6515_v26  ;;  %v8467_v25 = vpack.c.b16 %v740_v5, %v740_v5 }
  0x77   :  { %v6498_v30 = vld [vmem:[#allocation5 + $0xb40] sm:$0xf]  ;;  %v7887_v31 = vld [vmem:[#allocation5 + $0xb4c] sm:$0xf0]  ;;  %v6371_v36 = vor.u32 %v7855_v29, %v6370_v28  ;;  %3775 = vmatpush.bf16.msra.mxu0 %v6115_v32 }
  0x78   :  { %v6098_v33 = vld [vmem:[#allocation5 + $0x820] sm:$0xf]  ;;  %v7787_v34 = vld [vmem:[#allocation5 + $0x82c] sm:$0xf0]  ;;  %v6499_v43 = vor.u32 %v7887_v31, %v6498_v30  ;;  %v8471_v30 = vpack.c.b16 %v741_v11, %v741_v11 }
  0x79   :  { %v6226_v37 = vld [vmem:[#allocation5 + $0x920] sm:$0xf]  ;;  %v7819_v39 = vld [vmem:[#allocation5 + $0x92c] sm:$0xf0]  ;;  %v6099_v49 = vor.u32 %v7787_v34, %v6098_v33  ;;  %3788 = vmatpush.bf16.msra.mxu1 %v6243_v35  ;;  %3801 = vmatpush.bf16.msra.mxu2 %v6371_v36 }
  0x7a   :  { %v6354_v40 = vld [vmem:[#allocation5 + $0xa20] sm:$0xf]  ;;  %v7851_v45 = vld [vmem:[#allocation5 + $0xa2c] sm:$0xf0]  ;;  %v6227_v53 = vor.u32 %v7819_v39, %v6226_v37  ;;  %3814 = vmatpush.bf16.msra.mxu3 %v6499_v43 }
  0x7b   :  { %v6482_v46 = vld [vmem:[#allocation5 + $0xb20] sm:$0xf]  ;;  %v7883_v47 = vld [vmem:[#allocation5 + $0xb2c] sm:$0xf0]  ;;  %v6355_v54 = vor.u32 %v7851_v45, %v6354_v40  ;;  %3776 = vmatpush.bf16.msra.mxu0 %v6099_v49 }
  0x7c   :  { %v6082_v48 = vld [vmem:[#allocation5 + $0x800] sm:$0xf]  ;;  %v7783_v50 = vld [vmem:[#allocation5 + $0x80c] sm:$0xf0]  ;;  %v6483_v58 = vor.u32 %v7883_v47, %v6482_v46 }
  0x7d   :  { %v6210_v51 = vld [vmem:[#allocation5 + $0x900] sm:$0xf]  ;;  %v7815_v52 = vld [vmem:[#allocation5 + $0x90c] sm:$0xf0]  ;;  %v6083_v1 = vor.u32 %v7783_v50, %v6082_v48  ;;  %3789 = vmatpush.bf16.msra.mxu1 %v6227_v53  ;;  %3802 = vmatpush.bf16.msra.mxu2 %v6355_v54 }
  0x7e   :  { %v6338_v55 = vld [vmem:[#allocation5 + $0xa00] sm:$0xf]  ;;  %v7847_v56 = vld [vmem:[#allocation5 + $0xa0c] sm:$0xf0]  ;;  %v6211_v6 = vor.u32 %v7815_v52, %v6210_v51  ;;  %3815 = vmatpush.bf16.msra.mxu3 %v6483_v58 }
  0x7f   :  { %v6466_v59 = vld [vmem:[#allocation5 + $0xb00] sm:$0xf]  ;;  %v7879_v60 = vld [vmem:[#allocation5 + $0xb0c] sm:$0xf0]  ;;  %v6339_v7 = vor.u32 %v7847_v56, %v6338_v55  ;;  %3777 = vmatpush.bf16.msra.mxu0 %v6083_v1 }
  0x80   :  { %v133_v61 = vld [vmem:[#allocation2 + $0x28] sm:$0xff]  ;;  %v7939_v63 = vld [vmem:[#allocation5 + $0xcec] sm:$0xf0]  ;;  %v6467_v12 = vor.u32 %v7879_v60, %v6466_v59 }
  0x81   :  { %v6706_v62 = vld [vmem:[#allocation5 + $0xce0] sm:$0xf]  ;;  %v7971_v2 = vld [vmem:[#allocation5 + $0xdec] sm:$0xf0]  ;;  %v742_v10 = vunpack.c.l.b16 %v133_v61  ;;  %v743_v14 = vunpack.c.h.b16 %v133_v61  ;;  %3790 = vmatpush.bf16.msra.mxu1 %v6211_v6  ;;  %3803 = vmatpush.bf16.msra.mxu2 %v6339_v7 }
  0x82   :  { %v6834_v0 = vld [vmem:[#allocation5 + $0xde0] sm:$0xf]  ;;  %v8003_v4 = vld [vmem:[#allocation5 + $0xeec] sm:$0xf0]  ;;  %v6707_v13 = vor.u32 %v7939_v63, %v6706_v62  ;;  %3816 = vmatpush.bf16.msra.mxu3 %v6467_v12  ;;  %3778 = vmatmul.bf16.vlgmr.msra.gmra.mxu0 %v8467_v25 }
  0x83   :  { %v6962_v3 = vld [vmem:[#allocation5 + $0xee0] sm:$0xf]  ;;  %v8035_v9 = vld [vmem:[#allocation5 + $0xfec] sm:$0xf0]  ;;  %v6835_v15 = vor.u32 %v7971_v2, %v6834_v0  ;;  %v8469_v29 = vpack.c.b16 %v742_v10, %v742_v10  ;;  %v8473_v33 = vpack.c.b16 %v743_v14, %v743_v14 }
  0x84   :  { %v7090_v8 = vld [vmem:[#allocation5 + $0xfe0] sm:$0xf]  ;;  %v6963_v16 = vor.u32 %v8003_v4, %v6962_v3  ;;  %v7935_v21 = vld [vmem:[#allocation5 + $0xccc] sm:$0xf0]  ;;  %3822 = vmatpush.bf16.msrb.mxu0 %v6707_v13  ;;  %3791 = vmatmul.bf16.vlgmr.msra.gmra.mxu1 %v8471_v30 }
  0x85   :  { %v6690_v17 = vld [vmem:[#allocation5 + $0xcc0] sm:$0xf]  ;;  %v7091_v24 = vor.u32 %v8035_v9, %v7090_v8  ;;  %v7967_v26 = vld [vmem:[#allocation5 + $0xdcc] sm:$0xf0]  ;;  %3835 = vmatpush.bf16.msrb.mxu1 %v6835_v15  ;;  %3804 = vmatmul.bf16.vlgmr.msra.gmra.mxu2 %v8469_v29 }
  0x86   :  { %v6818_v23 = vld [vmem:[#allocation5 + $0xdc0] sm:$0xf]  ;;  %v7999_v28 = vld [vmem:[#allocation5 + $0xecc] sm:$0xf0]  ;;  %v6691_v34 = vor.u32 %v7935_v21, %v6690_v17  ;;  %3848 = vmatpush.bf16.msrb.mxu2 %v6963_v16  ;;  %3817 = vmatmul.bf16.vlgmr.msra.gmra.mxu3 %v8473_v33 }
  0x87   :  { %v6946_v27 = vld [vmem:[#allocation5 + $0xec0] sm:$0xf]  ;;  %v8031_v32 = vld [vmem:[#allocation5 + $0xfcc] sm:$0xf0]  ;;  %v6819_v35 = vor.u32 %v7967_v26, %v6818_v23  ;;  %3861 = vmatpush.bf16.msrb.mxu3 %v7091_v24 }
  0x88   :  { %v7074_v31 = vld [vmem:[#allocation5 + $0xfc0] sm:$0xf]  ;;  %v6947_v36 = vor.u32 %v7999_v28, %v6946_v27  ;;  %v7931_v39 = vld [vmem:[#allocation5 + $0xcac] sm:$0xf0]  ;;  %3823 = vmatpush.bf16.msrb.mxu0 %v6691_v34 }
  0x89   :  { %v6674_v37 = vld [vmem:[#allocation5 + $0xca0] sm:$0xf]  ;;  %v7075_v43 = vor.u32 %v8031_v32, %v7074_v31  ;;  %v7963_v45 = vld [vmem:[#allocation5 + $0xdac] sm:$0xf0]  ;;  %3836 = vmatpush.bf16.msrb.mxu1 %v6819_v35 }
  0x8a   :  { %v6802_v40 = vld [vmem:[#allocation5 + $0xda0] sm:$0xf]  ;;  %v7995_v47 = vld [vmem:[#allocation5 + $0xeac] sm:$0xf0]  ;;  %v6675_v50 = vor.u32 %v7931_v39, %v6674_v37  ;;  %3849 = vmatpush.bf16.msrb.mxu2 %v6947_v36 }
  0x8b   :  { %v6930_v46 = vld [vmem:[#allocation5 + $0xea0] sm:$0xf]  ;;  %v8027_v49 = vld [vmem:[#allocation5 + $0xfac] sm:$0xf0]  ;;  %v6803_v51 = vor.u32 %v7963_v45, %v6802_v40  ;;  %3862 = vmatpush.bf16.msrb.mxu3 %v7075_v43 }
  0x8c   :  { %v7058_v48 = vld [vmem:[#allocation5 + $0xfa0] sm:$0xf]  ;;  %v6931_v52 = vor.u32 %v7995_v47, %v6930_v46  ;;  %v7927_v54 = vld [vmem:[#allocation5 + $0xc8c] sm:$0xf0]  ;;  %3824 = vmatpush.bf16.msrb.mxu0 %v6675_v50 }
  0x8d   :  { %v6658_v53 = vld [vmem:[#allocation5 + $0xc80] sm:$0xf]  ;;  %v7059_v56 = vor.u32 %v8027_v49, %v7058_v48  ;;  %v7959_v57 = vld [vmem:[#allocation5 + $0xd8c] sm:$0xf0]  ;;  %3837 = vmatpush.bf16.msrb.mxu1 %v6803_v51 }
  0x8e   :  { %v6786_v55 = vld [vmem:[#allocation5 + $0xd80] sm:$0xf]  ;;  %v7991_v59 = vld [vmem:[#allocation5 + $0xe8c] sm:$0xf0]  ;;  %v6659_v62 = vor.u32 %v7927_v54, %v6658_v53  ;;  %3850 = vmatpush.bf16.msrb.mxu2 %v6931_v52 }
  0x8f   :  { %v6914_v58 = vld [vmem:[#allocation5 + $0xe80] sm:$0xf]  ;;  %v8023_v61 = vld [vmem:[#allocation5 + $0xf8c] sm:$0xf0]  ;;  %v6787_v63 = vor.u32 %v7959_v57, %v6786_v55  ;;  %3863 = vmatpush.bf16.msrb.mxu3 %v7059_v56  ;;  %v134_v55 = vld [vmem:[#allocation2 + $0x30] sm:$0xff] }
  0x90   :  { %v7042_v60 = vld [vmem:[#allocation5 + $0xf80] sm:$0xf]  ;;  %v6915_v0 = vor.u32 %v7991_v59, %v6914_v58  ;;  %v7923_v2 = vld [vmem:[#allocation5 + $0xc6c] sm:$0xf0]  ;;  %3825 = vmatpush.bf16.msrb.mxu0 %v6659_v62 }
  0x91   :  { %v6642_v1 = vld [vmem:[#allocation5 + $0xc60] sm:$0xf]  ;;  %v7043_v4 = vor.u32 %v8023_v61, %v7042_v60  ;;  %v7955_v5 = vld [vmem:[#allocation5 + $0xd6c] sm:$0xf0]  ;;  %3838 = vmatpush.bf16.msrb.mxu1 %v6787_v63 }
  0x92   :  { %v6770_v3 = vld [vmem:[#allocation5 + $0xd60] sm:$0xf]  ;;  %v7987_v7 = vld [vmem:[#allocation5 + $0xe6c] sm:$0xf0]  ;;  %v6643_v10 = vor.u32 %v7923_v2, %v6642_v1  ;;  %3851 = vmatpush.bf16.msrb.mxu2 %v6915_v0  ;;  %v7553_v1 = vld [vmem:[#allocation5 + $0xe4] sm:$0xf] }
  0x93   :  { %v6898_v6 = vld [vmem:[#allocation5 + $0xe60] sm:$0xf]  ;;  %v8019_v9 = vld [vmem:[#allocation5 + $0xf6c] sm:$0xf0]  ;;  %v6771_v11 = vor.u32 %v7955_v5, %v6770_v3  ;;  %3864 = vmatpush.bf16.msrb.mxu3 %v7043_v4  ;;  %v5172_v2 = vld [vmem:[#allocation5 + $0xf0] sm:$0xf0]  ;;  %v744_v3 = vunpack.c.l.b16 %v134_v55 }
  0x94   :  { %v7026_v8 = vld [vmem:[#allocation5 + $0xf60] sm:$0xf]  ;;  %v6899_v12 = vor.u32 %v7987_v7, %v6898_v6  ;;  %v7919_v14 = vld [vmem:[#allocation5 + $0xc4c] sm:$0xf0]  ;;  %3826 = vmatpush.bf16.msrb.mxu0 %v6643_v10  ;;  %v7585_v6 = vld [vmem:[#allocation5 + $0x1e4] sm:$0xf] }
  0x95   :  { %v6626_v13 = vld [vmem:[#allocation5 + $0xc40] sm:$0xf]  ;;  %v7027_v16 = vor.u32 %v8019_v9, %v7026_v8  ;;  %v7951_v17 = vld [vmem:[#allocation5 + $0xd4c] sm:$0xf0]  ;;  %3839 = vmatpush.bf16.msrb.mxu1 %v6771_v11  ;;  %v5300_v7 = vld [vmem:[#allocation5 + $0x1f0] sm:$0xf0]  ;;  %v745_v9 = vunpack.c.h.b16 %v134_v55 }
  0x96   :  { %v6754_v15 = vld [vmem:[#allocation5 + $0xd40] sm:$0xf]  ;;  %v7983_v23 = vld [vmem:[#allocation5 + $0xe4c] sm:$0xf0]  ;;  %v6627_v27 = vor.u32 %v7919_v14, %v6626_v13  ;;  %3852 = vmatpush.bf16.msrb.mxu2 %v6899_v12  ;;  %v5175_v14 = vor.u32 %v7553_v1, %v5172_v2 }
  0x97   :  { %v6882_v21 = vld [vmem:[#allocation5 + $0xe40] sm:$0xf]  ;;  %v8015_v26 = vld [vmem:[#allocation5 + $0xf4c] sm:$0xf0]  ;;  %v6755_v28 = vor.u32 %v7951_v17, %v6754_v15  ;;  %3865 = vmatpush.bf16.msrb.mxu3 %v7027_v16 }
  0x98   :  { %v7010_v24 = vld [vmem:[#allocation5 + $0xf40] sm:$0xf]  ;;  %v6883_v31 = vor.u32 %v7983_v23, %v6882_v21  ;;  %v7915_v34 = vld [vmem:[#allocation5 + $0xc2c] sm:$0xf0]  ;;  %3827 = vmatpush.bf16.msrb.mxu0 %v6627_v27  ;;  %v5303_v21 = vor.u32 %v7585_v6, %v5300_v7  ;;  %v8479_v23 = vpack.c.b16 %v744_v3, %v744_v3  ;;  %v5156_v27 = vld [vmem:[#allocation5 + $0xd0] sm:$0xf0] }
  0x99   :  { %v6610_v32 = vld [vmem:[#allocation5 + $0xc20] sm:$0xf]  ;;  %v7011_v36 = vor.u32 %v8015_v26, %v7010_v24  ;;  %v7947_v37 = vld [vmem:[#allocation5 + $0xd2c] sm:$0xf0]  ;;  %3840 = vmatpush.bf16.msrb.mxu1 %v6755_v28  ;;  %v7549_v26 = vld [vmem:[#allocation5 + $0xc4] sm:$0xf] }
  0x9a   :  { %v6738_v35 = vld [vmem:[#allocation5 + $0xd20] sm:$0xf]  ;;  %v7979_v40 = vld [vmem:[#allocation5 + $0xe2c] sm:$0xf0]  ;;  %v6611_v47 = vor.u32 %v7915_v34, %v6610_v32  ;;  %3853 = vmatpush.bf16.msrb.mxu2 %v6883_v31  ;;  %v8483_v31 = vpack.c.b16 %v745_v9, %v745_v9  ;;  %v7581_v32 = vld [vmem:[#allocation5 + $0x1c4] sm:$0xf] }
  0x9b   :  { %v6866_v39 = vld [vmem:[#allocation5 + $0xe20] sm:$0xf]  ;;  %v8011_v45 = vld [vmem:[#allocation5 + $0xf2c] sm:$0xf0]  ;;  %v6739_v51 = vor.u32 %v7947_v37, %v6738_v35  ;;  %3866 = vmatpush.bf16.msrb.mxu3 %v7011_v36  ;;  %v5284_v34 = vld [vmem:[#allocation5 + $0x1d0] sm:$0xf0] }
  0x9c   :  { %v6994_v43 = vld [vmem:[#allocation5 + $0xf20] sm:$0xf]  ;;  %v7911_v48 = vld [vmem:[#allocation5 + $0xc0c] sm:$0xf0]  ;;  %v6867_v52 = vor.u32 %v7979_v40, %v6866_v39  ;;  %3828 = vmatpush.bf16.msrb.mxu0 %v6611_v47  ;;  %v5159_v39 = vor.u32 %v7549_v26, %v5156_v27  ;;  %v5108_v9 = vld [vmem:[#allocation5 + $0x70] sm:$0xf0] }
  0x9d   :  { %v6594_v46 = vld [vmem:[#allocation5 + $0xc00] sm:$0xf]  ;;  %v7943_v50 = vld [vmem:[#allocation5 + $0xd0c] sm:$0xf0]  ;;  %v6995_v56 = vor.u32 %v8011_v45, %v6994_v43  ;;  %3841 = vmatpush.bf16.msrb.mxu1 %v6739_v51  ;;  %v5268_v51 = vld [vmem:[#allocation5 + $0x1b0] sm:$0xf0] }
  0x9e   :  { %v6722_v49 = vld [vmem:[#allocation5 + $0xd00] sm:$0xf]  ;;  %v7975_v54 = vld [vmem:[#allocation5 + $0xe0c] sm:$0xf0]  ;;  %v6595_v63 = vor.u32 %v7911_v48, %v6594_v46  ;;  %3854 = vmatpush.bf16.msrb.mxu2 %v6867_v52  ;;  %v5287_v46 = vor.u32 %v7581_v32, %v5284_v34  ;;  %v7545_v48 = vld [vmem:[#allocation5 + $0xa4] sm:$0xf] }
  0x9f   :  { %v6850_v53 = vld [vmem:[#allocation5 + $0xe00] sm:$0xf]  ;;  %v8007_v58 = vld [vmem:[#allocation5 + $0xf0c] sm:$0xf0]  ;;  %v6723_v4 = vor.u32 %v7943_v50, %v6722_v49  ;;  %3867 = vmatpush.bf16.msrb.mxu3 %v6995_v56  ;;  %v5140_v49 = vld [vmem:[#allocation5 + $0xb0] sm:$0xf0] }
  0xa0   :  { %v6978_v57 = vld [vmem:[#allocation5 + $0xf00] sm:$0xf]  ;;  %v135_v59 = vld [vmem:[#allocation2 + $0x38] sm:$0xff]  ;;  %v6851_v5 = vor.u32 %v7975_v54, %v6850_v53  ;;  %3829 = vmatpush.bf16.msrb.mxu0 %v6595_v63  ;;  %v7577_v50 = vld [vmem:[#allocation5 + $0x1a4] sm:$0xf]  ;;  %v5143_v54 = vor.u32 %v7545_v48, %v5140_v49 }
  0xa1   :  { %v7218_v60 = vld [vmem:[#allocation5 + $0x10e0] sm:$0xf]  ;;  %v8067_v61 = vld [vmem:[#allocation5 + $0x10ec] sm:$0xf0]  ;;  %v746_v8 = vunpack.c.l.b16 %v135_v59  ;;  %v6979_v10 = vor.u32 %v8007_v58, %v6978_v57  ;;  %v747_v12 = vunpack.c.h.b16 %v135_v59  ;;  %3842 = vmatpush.bf16.msrb.mxu1 %v6723_v4  ;;  %v5271_v58 = vor.u32 %v7577_v50, %v5268_v51  ;;  %v5252_v63 = vld [vmem:[#allocation5 + $0x190] sm:$0xf0] }
  0xa2   :  { %v7346_v62 = vld [vmem:[#allocation5 + $0x11e0] sm:$0xf]  ;;  %v8099_v0 = vld [vmem:[#allocation5 + $0x11ec] sm:$0xf0]  ;;  %v7219_v11 = vor.u32 %v8067_v61, %v7218_v60  ;;  %3855 = vmatpush.bf16.msrb.mxu2 %v6851_v5  ;;  %v7541_v60 = vld [vmem:[#allocation5 + $0x84] sm:$0xf] }
  0xa3   :  { %v7347_v13 = vor.u32 %v8099_v0, %v7346_v62  ;;  %v7202_v15 = vld [vmem:[#allocation5 + $0x10c0] sm:$0xf]  ;;  %v8063_v16 = vld [vmem:[#allocation5 + $0x10cc] sm:$0xf0]  ;;  %v8481_v28 = vpack.c.b16 %v746_v8, %v746_v8  ;;  %3868 = vmatpush.bf16.msrb.mxu3 %v6979_v10  ;;  %v8485_v35 = vpack.c.b16 %v747_v12, %v747_v12  ;;  %3830 = vmatmul.bf16.vlgmr.msrb.gmra.mxu0 %v8479_v23  ;;  %v5124_v61 = vld [vmem:[#allocation5 + $0x90] sm:$0xf0] }
  0xa4   :  { %v7330_v17 = vld [vmem:[#allocation5 + $0x11c0] sm:$0xf]  ;;  %v8095_v24 = vld [vmem:[#allocation5 + $0x11cc] sm:$0xf0]  ;;  %3874 = vmatpush.bf16.msra.mxu0 %v7219_v11  ;;  %v7203_v36 = vor.u32 %v8063_v16, %v7202_v15  ;;  %3843 = vmatmul.bf16.vlgmr.msrb.gmra.mxu1 %v8483_v31  ;;  %v7573_v62 = vld [vmem:[#allocation5 + $0x184] sm:$0xf]  ;;  %v5127_v2 = vor.u32 %v7541_v60, %v5124_v61 }
  0xa5   :  { %3887 = vmatpush.bf16.msra.mxu1 %v7347_v13  ;;  %v7331_v37 = vor.u32 %v8095_v24, %v7330_v17  ;;  %v7186_v40 = vld [vmem:[#allocation5 + $0x10a0] sm:$0xf]  ;;  %v8059_v43 = vld [vmem:[#allocation5 + $0x10ac] sm:$0xf0]  ;;  %3856 = vmatmul.bf16.vlgmr.msrb.gmra.mxu2 %v8481_v28  ;;  %v5255_v6 = vor.u32 %v7573_v62, %v5252_v63  ;;  %v7537_v8 = vld [vmem:[#allocation5 + $0x64] sm:$0xf] }
  0xa6   :  { %3900 = vmatpush.bf16.msra.mxu2 %v5175_v14  ;;  %v7314_v45 = vld [vmem:[#allocation5 + $0x11a0] sm:$0xf]  ;;  %v8091_v47 = vld [vmem:[#allocation5 + $0x11ac] sm:$0xf0]  ;;  %3869 = vmatmul.bf16.vlgmr.msrb.gmra.mxu3 %v8485_v35  ;;  %v7187_v52 = vor.u32 %v8059_v43, %v7186_v40  ;;  %v7569_v10 = vld [vmem:[#allocation5 + $0x164] sm:$0xf]  ;;  %v5111_v14 = vor.u32 %v7537_v8, %v5108_v9 }
  0xa7   :  { %3913 = vmatpush.bf16.msra.mxu3 %v5303_v21  ;;  %v7315_v53 = vor.u32 %v8091_v47, %v7314_v45  ;;  %v7170_v55 = vld [vmem:[#allocation5 + $0x1080] sm:$0xf]  ;;  %v8055_v56 = vld [vmem:[#allocation5 + $0x108c] sm:$0xf0]  ;;  %v5236_v11 = vld [vmem:[#allocation5 + $0x170] sm:$0xf0] }
  0xa8   :  { %3875 = vmatpush.bf16.msra.mxu0 %v7203_v36  ;;  %v7298_v57 = vld [vmem:[#allocation5 + $0x1180] sm:$0xf]  ;;  %v8087_v59 = vld [vmem:[#allocation5 + $0x118c] sm:$0xf0]  ;;  %v7171_v0 = vor.u32 %v8055_v56, %v7170_v55  ;;  %v5239_v21 = vor.u32 %v7569_v10, %v5236_v11  ;;  %v7533_v26 = vld [vmem:[#allocation5 + $0x44] sm:$0xf] }
  0xa9   :  { %3888 = vmatpush.bf16.msra.mxu1 %v7331_v37  ;;  %v7299_v1 = vor.u32 %v8087_v59, %v7298_v57  ;;  %v7154_v3 = vld [vmem:[#allocation5 + $0x1060] sm:$0xf]  ;;  %v8051_v4 = vld [vmem:[#allocation5 + $0x106c] sm:$0xf0]  ;;  %v5092_v27 = vld [vmem:[#allocation5 + $0x50] sm:$0xf0] }
  0xaa   :  { %3901 = vmatpush.bf16.msra.mxu2 %v5159_v39  ;;  %v7282_v5 = vld [vmem:[#allocation5 + $0x1160] sm:$0xf]  ;;  %v8083_v7 = vld [vmem:[#allocation5 + $0x116c] sm:$0xf0]  ;;  %v7155_v12 = vor.u32 %v8051_v4, %v7154_v3  ;;  %v7565_v32 = vld [vmem:[#allocation5 + $0x144] sm:$0xf]  ;;  %v5095_v39 = vor.u32 %v7533_v26, %v5092_v27 }
  0xab   :  { %3914 = vmatpush.bf16.msra.mxu3 %v5287_v46  ;;  %v7283_v13 = vor.u32 %v8083_v7, %v7282_v5  ;;  %v7138_v15 = vld [vmem:[#allocation5 + $0x1040] sm:$0xf]  ;;  %v8047_v16 = vld [vmem:[#allocation5 + $0x104c] sm:$0xf0]  ;;  %v5220_v34 = vld [vmem:[#allocation5 + $0x150] sm:$0xf0] }
  0xac   :  { %3876 = vmatpush.bf16.msra.mxu0 %v7187_v52  ;;  %v7266_v17 = vld [vmem:[#allocation5 + $0x1140] sm:$0xf]  ;;  %v8079_v24 = vld [vmem:[#allocation5 + $0x114c] sm:$0xf0]  ;;  %v7139_v36 = vor.u32 %v8047_v16, %v7138_v15  ;;  %v5223_v46 = vor.u32 %v7565_v32, %v5220_v34  ;;  %v7529_v48 = vld [vmem:[#allocation5 + $0x24] sm:$0xf] }
  0xad   :  { %3889 = vmatpush.bf16.msra.mxu1 %v7315_v53  ;;  %v7267_v37 = vor.u32 %v8079_v24, %v7266_v17  ;;  %v7122_v40 = vld [vmem:[#allocation5 + $0x1020] sm:$0xf]  ;;  %v8043_v43 = vld [vmem:[#allocation5 + $0x102c] sm:$0xf0]  ;;  %v5076_v49 = vld [vmem:[#allocation5 + $0x30] sm:$0xf0] }
  0xae   :  { %3902 = vmatpush.bf16.msra.mxu2 %v5143_v54  ;;  %v7250_v45 = vld [vmem:[#allocation5 + $0x1120] sm:$0xf]  ;;  %v8075_v47 = vld [vmem:[#allocation5 + $0x112c] sm:$0xf0]  ;;  %v7561_v50 = vld [vmem:[#allocation5 + $0x124] sm:$0xf]  ;;  %v7123_v52 = vor.u32 %v8043_v43, %v7122_v40  ;;  %v5079_v57 = vor.u32 %v7529_v48, %v5076_v49 }
  0xaf   :  { %3915 = vmatpush.bf16.msra.mxu3 %v5271_v58  ;;  %v5204_v51 = vld [vmem:[#allocation5 + $0x130] sm:$0xf0]  ;;  %v7106_v53 = vld [vmem:[#allocation5 + $0x1000] sm:$0xf]  ;;  %v8039_v54 = vld [vmem:[#allocation5 + $0x100c] sm:$0xf0]  ;;  %v7251_v56 = vor.u32 %v8075_v47, %v7250_v45 }
  0xb0   :  { %3877 = vmatpush.bf16.msra.mxu0 %v7171_v0  ;;  %v7234_v55 = vld [vmem:[#allocation5 + $0x1100] sm:$0xf]  ;;  %v8071_v58 = vld [vmem:[#allocation5 + $0x110c] sm:$0xf0]  ;;  %v7525_v59 = vld [vmem:[#allocation5 + $0x4] sm:$0xf]  ;;  %v5207_v61 = vor.u32 %v7561_v50, %v5204_v51  ;;  %v7107_v4 = vor.u32 %v8039_v54, %v7106_v53 }
  0xb1   :  { %3890 = vmatpush.bf16.msra.mxu1 %v7299_v1  ;;  %v136_v60 = vld [vmem:[#allocation2 + $0x40] sm:$0xff]  ;;  %v5060_v62 = vld [vmem:[#allocation5 + $0x10] sm:$0xf0]  ;;  %v7557_v63 = vld [vmem:[#allocation5 + $0x104] sm:$0xf]  ;;  %v7235_v9 = vor.u32 %v8071_v58, %v7234_v55 }
  0xb2   :  { %3903 = vmatpush.bf16.msra.mxu2 %v5127_v2  ;;  %v5188_v0 = vld [vmem:[#allocation5 + $0x110] sm:$0xf0]  ;;  %v7617_v1 = vld [vmem:[#allocation5 + $0x2e4] sm:$0xf]  ;;  %v748_v8 = vunpack.c.l.b16 %v136_v60  ;;  %v5063_v10 = vor.u32 %v7525_v59, %v5060_v62 }
  0xb3   :  { %3916 = vmatpush.bf16.msra.mxu3 %v5255_v6  ;;  %v5428_v2 = vld [vmem:[#allocation5 + $0x2f0] sm:$0xf0]  ;;  %v7649_v3 = vld [vmem:[#allocation5 + $0x3e4] sm:$0xf] }
  0xb4   :  { %3878 = vmatpush.bf16.msra.mxu0 %v7155_v12  ;;  %v5556_v5 = vld [vmem:[#allocation5 + $0x3f0] sm:$0xf0]  ;;  %v7681_v6 = vld [vmem:[#allocation5 + $0x4e4] sm:$0xf]  ;;  %v5431_v15 = vor.u32 %v7617_v1, %v5428_v2  ;;  %v8491_v32 = vpack.c.b16 %v748_v8, %v748_v8 }
  0xb5   :  { %3891 = vmatpush.bf16.msra.mxu1 %v7283_v13  ;;  %v5684_v7 = vld [vmem:[#allocation5 + $0x4f0] sm:$0xf0]  ;;  %v7713_v11 = vld [vmem:[#allocation5 + $0x5e4] sm:$0xf]  ;;  %v749_v13 = vunpack.c.h.b16 %v136_v60  ;;  %v5559_v16 = vor.u32 %v7649_v3, %v5556_v5 }
  0xb6   :  { %3904 = vmatpush.bf16.msra.mxu2 %v5111_v14  ;;  %v5812_v12 = vld [vmem:[#allocation5 + $0x5f0] sm:$0xf0]  ;;  %v5191_v14 = vor.u32 %v7557_v63, %v5188_v0  ;;  %v5687_v17 = vor.u32 %v7681_v6, %v5684_v7  ;;  %v7645_v26 = vld [vmem:[#allocation5 + $0x3c4] sm:$0xf] }
  0xb7   :  { %3917 = vmatpush.bf16.msra.mxu3 %v5239_v21  ;;  %v7613_v21 = vld [vmem:[#allocation5 + $0x2c4] sm:$0xf]  ;;  %v5412_v24 = vld [vmem:[#allocation5 + $0x2d0] sm:$0xf0]  ;;  %v5815_v27 = vor.u32 %v7713_v11, %v5812_v12 }
  0xb8   :  { %3879 = vmatpush.bf16.msra.mxu0 %v7139_v36  ;;  %v5540_v34 = vld [vmem:[#allocation5 + $0x3d0] sm:$0xf0]  ;;  %v7677_v36 = vld [vmem:[#allocation5 + $0x4c4] sm:$0xf]  ;;  %v5415_v45 = vor.u32 %v7613_v21, %v5412_v24 }
  0xb9   :  { %3892 = vmatpush.bf16.msra.mxu1 %v7267_v37  ;;  %v5668_v37 = vld [vmem:[#allocation5 + $0x4d0] sm:$0xf0]  ;;  %v7709_v40 = vld [vmem:[#allocation5 + $0x5c4] sm:$0xf] }
  0xba   :  { %3905 = vmatpush.bf16.msra.mxu2 %v5095_v39  ;;  %v8493_v39 = vpack.c.b16 %v749_v13, %v749_v13  ;;  %v5796_v43 = vld [vmem:[#allocation5 + $0x5d0] sm:$0xf0]  ;;  %v5671_v47 = vor.u32 %v7677_v36, %v5668_v37  ;;  %v7609_v48 = vld [vmem:[#allocation5 + $0x2a4] sm:$0xf] }
  0xbb   :  { %3918 = vmatpush.bf16.msra.mxu3 %v5223_v46  ;;  %v5543_v46 = vor.u32 %v7645_v26, %v5540_v34  ;;  %v5396_v49 = vld [vmem:[#allocation5 + $0x2b0] sm:$0xf0]  ;;  %v7641_v50 = vld [vmem:[#allocation5 + $0x3a4] sm:$0xf]  ;;  %v5799_v51 = vor.u32 %v7709_v40, %v5796_v43 }
  0xbc   :  { %3880 = vmatpush.bf16.msra.mxu0 %v7123_v52  ;;  %v5524_v52 = vld [vmem:[#allocation5 + $0x3b0] sm:$0xf0]  ;;  %v7673_v53 = vld [vmem:[#allocation5 + $0x4a4] sm:$0xf] }
  0xbd   :  { %3893 = vmatpush.bf16.msra.mxu1 %v7251_v56  ;;  %v5652_v54 = vld [vmem:[#allocation5 + $0x4b0] sm:$0xf0]  ;;  %v7705_v55 = vld [vmem:[#allocation5 + $0x5a4] sm:$0xf]  ;;  %v5527_v58 = vor.u32 %v7641_v50, %v5524_v52 }
  0xbe   :  { %3906 = vmatpush.bf16.msra.mxu2 %v5079_v57  ;;  %v5780_v56 = vld [vmem:[#allocation5 + $0x5b0] sm:$0xf0]  ;;  %v5399_v57 = vor.u32 %v7609_v48, %v5396_v49  ;;  %v5655_v59 = vor.u32 %v7673_v53, %v5652_v54  ;;  %v7605_v60 = vld [vmem:[#allocation5 + $0x284] sm:$0xf]  ;;  %v3675_v50 = vpop.f32.mrf.mxu0 }
  0xbf   :  { %3919 = vmatpush.bf16.msra.mxu3 %v5207_v61  ;;  %v5380_v61 = vld [vmem:[#allocation5 + $0x290] sm:$0xf0]  ;;  %v7637_v62 = vld [vmem:[#allocation5 + $0x384] sm:$0xf]  ;;  %v5783_v63 = vor.u32 %v7705_v55, %v5780_v56 }
  0xc0   :  { %3881 = vmatpush.bf16.msra.mxu0 %v7107_v4  ;;  %v5508_v0 = vld [vmem:[#allocation5 + $0x390] sm:$0xf0]  ;;  %v7669_v1 = vld [vmem:[#allocation5 + $0x484] sm:$0xf]  ;;  %v5383_v5 = vor.u32 %v7605_v60, %v5380_v61 }
  0xc1   :  { %3894 = vmatpush.bf16.msra.mxu1 %v7235_v9  ;;  %v5636_v2 = vld [vmem:[#allocation5 + $0x490] sm:$0xf0]  ;;  %v7701_v3 = vld [vmem:[#allocation5 + $0x584] sm:$0xf]  ;;  %v5511_v7 = vor.u32 %v7637_v62, %v5508_v0 }
  0xc2   :  { %3907 = vmatpush.bf16.msra.mxu2 %v5063_v10  ;;  %v5764_v4 = vld [vmem:[#allocation5 + $0x590] sm:$0xf0]  ;;  %v7601_v6 = vld [vmem:[#allocation5 + $0x264] sm:$0xf]  ;;  %v5639_v8 = vor.u32 %v7669_v1, %v5636_v2 }
  0xc3   :  { %3920 = vmatpush.bf16.msra.mxu3 %v5191_v14  ;;  %3882 = vmatmul.bf16.vlgmr.msra.gmra.mxu0 %v8491_v32  ;;  %v5364_v9 = vld [vmem:[#allocation5 + $0x270] sm:$0xf0]  ;;  %v7633_v10 = vld [vmem:[#allocation5 + $0x364] sm:$0xf]  ;;  %v5767_v12 = vor.u32 %v7701_v3, %v5764_v4 }
  0xc4   :  { %3926 = vmatpush.bf16.msrb.mxu0 %v5431_v15  ;;  %3895 = vmatmul.bf16.vlgmr.msra.gmra.mxu1 %v8493_v39  ;;  %v5492_v11 = vld [vmem:[#allocation5 + $0x370] sm:$0xf0]  ;;  %v7665_v13 = vld [vmem:[#allocation5 + $0x464] sm:$0xf]  ;;  %v713_v15 = vld [vmem:[#allocation7] sm:$0xf]  ;;  %v5367_v21 = vor.u32 %v7601_v6, %v5364_v9 }
  0xc5   :  { %3939 = vmatpush.bf16.msrb.mxu1 %v5559_v16  ;;  %3908 = vmatmul.bf16.vlgmr.msra.gmra.mxu2 %v8445_v19  ;;  %v5620_v14 = vld [vmem:[#allocation5 + $0x470] sm:$0xf0]  ;;  %v7697_v16 = vld [vmem:[#allocation5 + $0x564] sm:$0xf]  ;;  %v5495_v26 = vor.u32 %v7633_v10, %v5492_v11  ;;  %v715_v37 = vperm.slane %v713_v15, 0 }
  0xc6   :  { %3952 = vmatpush.bf16.msrb.mxu2 %v5687_v17  ;;  %3921 = vmatmul.bf16.vlgmr.msra.gmra.mxu3 %v8449_v22  ;;  %v5748_v17 = vld [vmem:[#allocation5 + $0x570] sm:$0xf0]  ;;  %v7597_v24 = vld [vmem:[#allocation5 + $0x244] sm:$0xf] }
  0xc7   :  { %3965 = vmatpush.bf16.msrb.mxu3 %v5815_v27  ;;  %v5623_v27 = vor.u32 %v7665_v13, %v5620_v14  ;;  %v5348_v34 = vld [vmem:[#allocation5 + $0x250] sm:$0xf0]  ;;  %v7629_v36 = vld [vmem:[#allocation5 + $0x344] sm:$0xf]  ;;  %v5751_v40 = vor.u32 %v7697_v16, %v5748_v17  ;;  %v3676_v56 = vadd.f32 %v3675_v50, %v715_v37  ;;  %v3677_v37 = vpop.f32.mrf.mxu0 }
  0xc8   :  { %3927 = vmatpush.bf16.msrb.mxu0 %v5415_v45  ;;  %v5476_v43 = vld [vmem:[#allocation5 + $0x350] sm:$0xf0]  ;;  %v7661_v45 = vld [vmem:[#allocation5 + $0x444] sm:$0xf]  ;;  %v5351_v49 = vor.u32 %v7597_v24, %v5348_v34 }
  0xc9   :  { %3940 = vmatpush.bf16.msrb.mxu1 %v5543_v46  ;;  %v5604_v46 = vld [vmem:[#allocation5 + $0x450] sm:$0xf0]  ;;  %v7593_v53 = vld [vmem:[#allocation5 + $0x224] sm:$0xf] }
  0xca   :  { %3953 = vmatpush.bf16.msrb.mxu2 %v5671_v47  ;;  %v7693_v47 = vld [vmem:[#allocation5 + $0x544] sm:$0xf]  ;;  %v5732_v48 = vld [vmem:[#allocation5 + $0x550] sm:$0xf0]  ;;  %v5607_v52 = vor.u32 %v7661_v45, %v5604_v46 }
  0xcb   :  { %3966 = vmatpush.bf16.msrb.mxu3 %v5799_v51  ;;  %v5479_v51 = vor.u32 %v7629_v36, %v5476_v43  ;;  %v5332_v54 = vld [vmem:[#allocation5 + $0x230] sm:$0xf0]  ;;  %v7625_v55 = vld [vmem:[#allocation5 + $0x324] sm:$0xf] }
  0xcc   :  { %3928 = vmatpush.bf16.msrb.mxu0 %v5399_v57  ;;  %v3688_v57 = vpop.f32.mrf.mxu1  ;;  %v7657_v60 = vld [vmem:[#allocation5 + $0x424] sm:$0xf]  ;;  %v5588_v61 = vld [vmem:[#allocation5 + $0x430] sm:$0xf0]  ;;  %v5335_v1 = vor.u32 %v7593_v53, %v5332_v54 }
  0xcd   :  { %3941 = vmatpush.bf16.msrb.mxu1 %v5527_v58  ;;  %v5735_v58 = vor.u32 %v7693_v47, %v5732_v48  ;;  %v7689_v62 = vld [vmem:[#allocation5 + $0x524] sm:$0xf]  ;;  %v3689_v0 = vadd.f32 %v3688_v57, %v3676_v56  ;;  %v5316_v3 = vld [vmem:[#allocation5 + $0x210] sm:$0xf0] }
  0xce   :  { %3954 = vmatpush.bf16.msrb.mxu2 %v5655_v59  ;;  %v5460_v59 = vld [vmem:[#allocation5 + $0x330] sm:$0xf0]  ;;  %v7589_v2 = vld [vmem:[#allocation5 + $0x204] sm:$0xf] }
  0xcf   :  { %3967 = vmatpush.bf16.msrb.mxu3 %v5783_v63  ;;  %v5716_v63 = vld [vmem:[#allocation5 + $0x530] sm:$0xf0]  ;;  %v5463_v4 = vor.u32 %v7625_v55, %v5460_v59  ;;  %v7621_v6 = vld [vmem:[#allocation5 + $0x304] sm:$0xf]  ;;  %v5319_v24 = vor.u32 %v7589_v2, %v5316_v3 }
  0xd0   :  { %3929 = vmatpush.bf16.msrb.mxu0 %v5383_v5  ;;  %v5591_v5 = vor.u32 %v7657_v60, %v5588_v61  ;;  %v5719_v10 = vor.u32 %v7689_v62, %v5716_v63  ;;  %v5572_v11 = vld [vmem:[#allocation5 + $0x410] sm:$0xf0]  ;;  %v7745_v16 = vld [vmem:[#allocation5 + $0x6e4] sm:$0xf] }
  0xd1   :  { %3942 = vmatpush.bf16.msrb.mxu1 %v5511_v7  ;;  %v5444_v7 = vld [vmem:[#allocation5 + $0x310] sm:$0xf0]  ;;  %v7841_v45 = vld [vmem:[#allocation5 + $0x9e4] sm:$0xf] }
  0xd2   :  { %3955 = vmatpush.bf16.msrb.mxu2 %v5639_v8  ;;  %v7653_v8 = vld [vmem:[#allocation5 + $0x404] sm:$0xf]  ;;  %v5700_v13 = vld [vmem:[#allocation5 + $0x510] sm:$0xf0] }
  0xd3   :  { %3968 = vmatpush.bf16.msrb.mxu3 %v5767_v12  ;;  %v3701_v9 = vpop.f32.mrf.mxu2  ;;  %v7685_v12 = vld [vmem:[#allocation5 + $0x504] sm:$0xf]  ;;  %v3714_v15 = vpop.f32.mrf.mxu3  ;;  %v5940_v17 = vld [vmem:[#allocation5 + $0x6f0] sm:$0xf0]  ;;  %v5575_v43 = vor.u32 %v7653_v8, %v5572_v11 }
  0xd4   :  { %3930 = vmatpush.bf16.msrb.mxu0 %v5367_v21  ;;  %v3702_v14 = vadd.f32 %v3701_v9, %v3689_v0  ;;  %v7777_v21 = vld [vmem:[#allocation5 + $0x7e4] sm:$0xf]  ;;  %v6196_v34 = vld [vmem:[#allocation5 + $0x8f0] sm:$0xf0]  ;;  %v3690_v47 = vpop.f32.mrf.mxu1  ;;  %v5703_v48 = vor.u32 %v7685_v12, %v5700_v13 }
  0xd5   :  { %3943 = vmatpush.bf16.msrb.mxu1 %v5495_v26  ;;  %v6068_v26 = vld [vmem:[#allocation5 + $0x7f0] sm:$0xf0]  ;;  %v7773_v54 = vld [vmem:[#allocation5 + $0x7c4] sm:$0xf] }
  0xd6   :  { %3956 = vmatpush.bf16.msrb.mxu2 %v5623_v27  ;;  %v7809_v27 = vld [vmem:[#allocation5 + $0x8e4] sm:$0xf]  ;;  %v8499_v36 = vadd.f32 %v3714_v15, %v3702_v14  ;;  %v6324_v46 = vld [vmem:[#allocation5 + $0x9f0] sm:$0xf0]  ;;  %v6071_v50 = vor.u32 %v7777_v21, %v6068_v26 }
  0xd7   :  { %3969 = vmatpush.bf16.msrb.mxu3 %v5751_v40  ;;  %v5447_v40 = vor.u32 %v7621_v6, %v5444_v7  ;;  %v5924_v53 = vld [vmem:[#allocation5 + $0x6d0] sm:$0xf0]  ;;  %v6327_v55 = vor.u32 %v7841_v45, %v6324_v46  ;;  %v7805_v57 = vld [vmem:[#allocation5 + $0x8c4] sm:$0xf] }
  0xd8   :  { %3931 = vmatpush.bf16.msrb.mxu0 %v5351_v49  ;;  %v5943_v49 = vor.u32 %v7745_v16, %v5940_v17  ;;  %v6052_v56 = vld [vmem:[#allocation5 + $0x7d0] sm:$0xf0]  ;;  %v7837_v59 = vld [vmem:[#allocation5 + $0x9c4] sm:$0xf] }
  0xd9   :  { %3944 = vmatpush.bf16.msrb.mxu1 %v5479_v51  ;;  %v6199_v51 = vor.u32 %v7809_v27, %v6196_v34  ;;  %v6308_v60 = vld [vmem:[#allocation5 + $0x9d0] sm:$0xf0]  ;;  %v6055_v0 = vor.u32 %v7773_v54, %v6052_v56  ;;  %v7737_v2 = vld [vmem:[#allocation5 + $0x6a4] sm:$0xf] }
  0xda   :  { %3957 = vmatpush.bf16.msrb.mxu2 %v5607_v52  ;;  %v7741_v52 = vld [vmem:[#allocation5 + $0x6c4] sm:$0xf]  ;;  %v5908_v3 = vld [vmem:[#allocation5 + $0x6b0] sm:$0xf0] }
  0xdb   :  { %3970 = vmatpush.bf16.msrb.mxu3 %v5735_v58  ;;  %v6180_v58 = vld [vmem:[#allocation5 + $0x8d0] sm:$0xf0]  ;;  %v3703_v61 = vpop.f32.mrf.mxu2  ;;  %v5927_v62 = vor.u32 %v7741_v52, %v5924_v53  ;;  %v3716_v63 = vpop.f32.mrf.mxu3  ;;  %v7801_v7 = vld [vmem:[#allocation5 + $0x8a4] sm:$0xf]  ;;  %v5911_v11 = vor.u32 %v7737_v2, %v5908_v3 }
  0xdc   :  { %3932 = vmatpush.bf16.msrb.mxu0 %v5335_v1  ;;  %v6183_v1 = vor.u32 %v7805_v57, %v6180_v58  ;;  %v6036_v6 = vld [vmem:[#allocation5 + $0x7b0] sm:$0xf0]  ;;  %v7833_v9 = vld [vmem:[#allocation5 + $0x9a4] sm:$0xf] }
  0xdd   :  { %3945 = vmatpush.bf16.msrb.mxu1 %v5463_v4  ;;  %v7769_v4 = vld [vmem:[#allocation5 + $0x7a4] sm:$0xf]  ;;  %v6164_v8 = vld [vmem:[#allocation5 + $0x8b0] sm:$0xf0] }
  0xde   :  { %3958 = vmatpush.bf16.msrb.mxu2 %v5591_v5  ;;  %v6311_v5 = vor.u32 %v7837_v59, %v6308_v60  ;;  %v6039_v12 = vor.u32 %v7769_v4, %v6036_v6  ;;  %v6167_v13 = vor.u32 %v7801_v7, %v6164_v8  ;;  %v7733_v14 = vld [vmem:[#allocation5 + $0x684] sm:$0xf]  ;;  %v5892_v15 = vld [vmem:[#allocation5 + $0x690] sm:$0xf0] }
  0xdf   :  { %3971 = vmatpush.bf16.msrb.mxu3 %v5719_v10  ;;  %v6292_v10 = vld [vmem:[#allocation5 + $0x9b0] sm:$0xf0]  ;;  %v7765_v16 = vld [vmem:[#allocation5 + $0x784] sm:$0xf]  ;;  %v5895_v37 = vor.u32 %v7733_v14, %v5892_v15 }
  0xe0   :  { %3933 = vmatpush.bf16.msrb.mxu0 %v5319_v24  ;;  %v6295_v17 = vor.u32 %v7833_v9, %v6292_v10  ;;  %v6020_v21 = vld [vmem:[#allocation5 + $0x790] sm:$0xf0]  ;;  %v7797_v24 = vld [vmem:[#allocation5 + $0x884] sm:$0xf] }
  0xe1   :  { %3946 = vmatpush.bf16.msrb.mxu1 %v5447_v40  ;;  %v6148_v26 = vld [vmem:[#allocation5 + $0x890] sm:$0xf0]  ;;  %v7829_v27 = vld [vmem:[#allocation5 + $0x984] sm:$0xf]  ;;  %v3727_v40 = vpop.f32.mrf.mxu0 }
  0xe2   :  { %3959 = vmatpush.bf16.msrb.mxu2 %v5575_v43  ;;  %v6276_v34 = vld [vmem:[#allocation5 + $0x990] sm:$0xf0]  ;;  %v6023_v43 = vor.u32 %v7765_v16, %v6020_v21  ;;  %v6151_v45 = vor.u32 %v7797_v24, %v6148_v26  ;;  %v7729_v46 = vld [vmem:[#allocation5 + $0x664] sm:$0xf] }
  0xe3   :  { %3972 = vmatpush.bf16.msrb.mxu3 %v5703_v48  ;;  %3934 = vmatmul.bf16.vlgmr.msrb.gmra.mxu0 %v8443_v18  ;;  %v5876_v47 = vld [vmem:[#allocation5 + $0x670] sm:$0xf0]  ;;  %v7761_v48 = vld [vmem:[#allocation5 + $0x764] sm:$0xf] }
  0xe4   :  { %3978 = vmatpush.bf16.msra.mxu0 %v5943_v49  ;;  %3947 = vmatmul.bf16.vlgmr.msrb.gmra.mxu1 %v8447_v20  ;;  %v3728_v49 = vadd.f32 %v3727_v40, %v8499_v36  ;;  %v6004_v52 = vld [vmem:[#allocation5 + $0x770] sm:$0xf0]  ;;  %v7793_v53 = vld [vmem:[#allocation5 + $0x864] sm:$0xf]  ;;  %v5879_v58 = vor.u32 %v7729_v46, %v5876_v47 }
  0xe5   :  { %3991 = vmatpush.bf16.msra.mxu1 %v6071_v50  ;;  %3960 = vmatmul.bf16.vlgmr.msrb.gmra.mxu2 %v8457_v41  ;;  %v3740_v50 = vpop.f32.mrf.mxu1  ;;  %v6132_v54 = vld [vmem:[#allocation5 + $0x870] sm:$0xf0]  ;;  %v6007_v59 = vor.u32 %v7761_v48, %v6004_v52  ;;  %v7725_v61 = vld [vmem:[#allocation5 + $0x644] sm:$0xf] }
  0xe6   :  { %4004 = vmatpush.bf16.msra.mxu2 %v6199_v51  ;;  %3973 = vmatmul.bf16.vlgmr.msrb.gmra.mxu3 %v8461_v44  ;;  %v6279_v51 = vor.u32 %v7829_v27, %v6276_v34  ;;  %v6260_v56 = vld [vmem:[#allocation5 + $0x970] sm:$0xf0]  ;;  %v3741_v57 = vadd.f32 %v3740_v50, %v3728_v49  ;;  %v6135_v60 = vor.u32 %v7793_v53, %v6132_v54  ;;  %v7757_v63 = vld [vmem:[#allocation5 + $0x744] sm:$0xf] }
  0xe7   :  { %4017 = vmatpush.bf16.msra.mxu3 %v6327_v55  ;;  %v7825_v55 = vld [vmem:[#allocation5 + $0x964] sm:$0xf]  ;;  %v6116_v3 = vld [vmem:[#allocation5 + $0x850] sm:$0xf0] }
  0xe8   :  { %3979 = vmatpush.bf16.msra.mxu0 %v5927_v62  ;;  %v5860_v62 = vld [vmem:[#allocation5 + $0x650] sm:$0xf0]  ;;  %v6263_v36 = vor.u32 %v7825_v55, %v6260_v56  ;;  %v7789_v2 = vld [vmem:[#allocation5 + $0x844] sm:$0xf] }
  0xe9   :  { %3992 = vmatpush.bf16.msra.mxu1 %v6055_v0  ;;  %v3753_v0 = vpop.f32.mrf.mxu2  ;;  %v7821_v6 = vld [vmem:[#allocation5 + $0x944] sm:$0xf]  ;;  %v6244_v7 = vld [vmem:[#allocation5 + $0x950] sm:$0xf0]  ;;  %v5863_v8 = vor.u32 %v7725_v61, %v5860_v62  ;;  %v3729_v10 = vpop.f32.mrf.mxu0 }
  0xea   :  { %4005 = vmatpush.bf16.msra.mxu2 %v6183_v1  ;;  %v5988_v1 = vld [vmem:[#allocation5 + $0x750] sm:$0xf0]  ;;  %v3754_v4 = vadd.f32 %v3753_v0, %v3741_v57  ;;  %v7753_v15 = vld [vmem:[#allocation5 + $0x724] sm:$0xf] }
  0xeb   :  { %4018 = vmatpush.bf16.msra.mxu3 %v6311_v5  ;;  %v3766_v5 = vpop.f32.mrf.mxu3  ;;  %v5844_v14 = vld [vmem:[#allocation5 + $0x630] sm:$0xf0]  ;;  %v7785_v24 = vld [vmem:[#allocation5 + $0x824] sm:$0xf] }
  0xec   :  { %3980 = vmatpush.bf16.msra.mxu0 %v5911_v11  ;;  %v8506_v9 = vadd.f32 %v3766_v5, %v3754_v4  ;;  %v5991_v11 = vor.u32 %v7757_v63, %v5988_v1  ;;  %v5972_v21 = vld [vmem:[#allocation5 + $0x730] sm:$0xf0]  ;;  %v7817_v27 = vld [vmem:[#allocation5 + $0x924] sm:$0xf] }
  0xed   :  { %3993 = vmatpush.bf16.msra.mxu1 %v6039_v12  ;;  %v6119_v12 = vor.u32 %v7789_v2, %v6116_v3  ;;  %v3742_v16 = vpop.f32.mrf.mxu1  ;;  %v6100_v26 = vld [vmem:[#allocation5 + $0x830] sm:$0xf0]  ;;  %v7717_v40 = vld [vmem:[#allocation5 + $0x604] sm:$0xf] }
  0xee   :  { %4006 = vmatpush.bf16.msra.mxu2 %v6167_v13  ;;  %v7721_v13 = vld [vmem:[#allocation5 + $0x624] sm:$0xf]  ;;  %v6228_v34 = vld [vmem:[#allocation5 + $0x930] sm:$0xf0]  ;;  %v6103_v46 = vor.u32 %v7785_v24, %v6100_v26 }
  0xef   :  { %4019 = vmatpush.bf16.msra.mxu3 %v6295_v17  ;;  %v6247_v17 = vor.u32 %v7821_v6, %v6244_v7  ;;  %v7749_v47 = vld [vmem:[#allocation5 + $0x704] sm:$0xf]  ;;  %v5956_v48 = vld [vmem:[#allocation5 + $0x710] sm:$0xf0] }
  0xf0   :  { %3981 = vmatpush.bf16.msra.mxu0 %v5895_v37  ;;  %v5847_v37 = vor.u32 %v7721_v13, %v5844_v14  ;;  %v7781_v49 = vld [vmem:[#allocation5 + $0x804] sm:$0xf]  ;;  %v6084_v52 = vld [vmem:[#allocation5 + $0x810] sm:$0xf0]  ;;  %v5959_v63 = vor.u32 %v7749_v47, %v5956_v48 }
  0xf1   :  { %3994 = vmatpush.bf16.msra.mxu1 %v6023_v43  ;;  %v5828_v43 = vld [vmem:[#allocation5 + $0x610] sm:$0xf0]  ;;  %v3755_v50 = vpop.f32.mrf.mxu2  ;;  %v7813_v53 = vld [vmem:[#allocation5 + $0x904] sm:$0xf]  ;;  %v6087_v0 = vor.u32 %v7781_v49, %v6084_v52 }
  0xf2   :  { %4007 = vmatpush.bf16.msra.mxu2 %v6151_v45  ;;  %v5975_v45 = vor.u32 %v7753_v15, %v5972_v21  ;;  %v6212_v54 = vld [vmem:[#allocation5 + $0x910] sm:$0xf0]  ;;  %v7873_v56 = vld [vmem:[#allocation5 + $0xae4] sm:$0xf] }
  0xf3   :  { %4020 = vmatpush.bf16.msra.mxu3 %v6279_v51  ;;  %v6231_v51 = vor.u32 %v7817_v27, %v6228_v34  ;;  %v3768_v55 = vpop.f32.mrf.mxu3  ;;  %v6452_v57 = vld [vmem:[#allocation5 + $0xaf0] sm:$0xf0]  ;;  %v7937_v61 = vld [vmem:[#allocation5 + $0xce4] sm:$0xf]  ;;  %v6215_v2 = vor.u32 %v7813_v53, %v6212_v54 }
  0xf4   :  { %3982 = vmatpush.bf16.msra.mxu0 %v5879_v58  ;;  %v7905_v58 = vld [vmem:[#allocation5 + $0xbe4] sm:$0xf]  ;;  %v6708_v62 = vld [vmem:[#allocation5 + $0xcf0] sm:$0xf0]  ;;  %v6455_v3 = vor.u32 %v7873_v56, %v6452_v57 }
  0xf5   :  { %3995 = vmatpush.bf16.msra.mxu1 %v6007_v59  ;;  %v5831_v59 = vor.u32 %v7717_v40, %v5828_v43  ;;  %v6836_v1 = vld [vmem:[#allocation5 + $0xdf0] sm:$0xf0]  ;;  %v6711_v5 = vor.u32 %v7937_v61, %v6708_v62  ;;  %v7869_v6 = vld [vmem:[#allocation5 + $0xac4] sm:$0xf] }
  0xf6   :  { %4008 = vmatpush.bf16.msra.mxu2 %v6135_v60  ;;  %v6580_v60 = vld [vmem:[#allocation5 + $0xbf0] sm:$0xf0]  ;;  %v7965_v14 = vld [vmem:[#allocation5 + $0xdc4] sm:$0xf] }
  0xf7   :  { %4021 = vmatpush.bf16.msra.mxu3 %v6263_v36  ;;  %v7969_v36 = vld [vmem:[#allocation5 + $0xde4] sm:$0xf]  ;;  %v6583_v4 = vor.u32 %v7905_v58, %v6580_v60  ;;  %v6436_v7 = vld [vmem:[#allocation5 + $0xad0] sm:$0xf0] }
  0xf8   :  { %3983 = vmatpush.bf16.msra.mxu0 %v5863_v8  ;;  %v7901_v8 = vld [vmem:[#allocation5 + $0xbc4] sm:$0xf]  ;;  %v6839_v10 = vor.u32 %v7969_v36, %v6836_v1  ;;  %v6692_v13 = vld [vmem:[#allocation5 + $0xcd0] sm:$0xf0]  ;;  %v6439_v16 = vor.u32 %v7869_v6, %v6436_v7 }
  0xf9   :  { %3996 = vmatpush.bf16.msra.mxu1 %v5991_v11  ;;  %v6564_v11 = vld [vmem:[#allocation5 + $0xbd0] sm:$0xf0]  ;;  %v7865_v24 = vld [vmem:[#allocation5 + $0xaa4] sm:$0xf] }
  0xfa   :  { %4009 = vmatpush.bf16.msra.mxu2 %v6119_v12  ;;  %v7933_v12 = vld [vmem:[#allocation5 + $0xcc4] sm:$0xf]  ;;  %v6820_v15 = vld [vmem:[#allocation5 + $0xdd0] sm:$0xf0] }
  0xfb   :  { %4022 = vmatpush.bf16.msra.mxu3 %v6247_v17  ;;  %v6567_v17 = vor.u32 %v7901_v8, %v6564_v11  ;;  %v6695_v21 = vor.u32 %v7933_v12, %v6692_v13  ;;  %v6420_v26 = vld [vmem:[#allocation5 + $0xab0] sm:$0xf0]  ;;  %v7897_v27 = vld [vmem:[#allocation5 + $0xba4] sm:$0xf]  ;;  %v6823_v34 = vor.u32 %v7965_v14, %v6820_v15 }
  0xfc   :  { %3984 = vmatpush.bf16.msra.mxu0 %v5847_v37  ;;  %v6548_v37 = vld [vmem:[#allocation5 + $0xbb0] sm:$0xf0]  ;;  %v7929_v40 = vld [vmem:[#allocation5 + $0xca4] sm:$0xf]  ;;  %v6423_v47 = vor.u32 %v7865_v24, %v6420_v26 }
  0xfd   :  { %3997 = vmatpush.bf16.msra.mxu1 %v5975_v45  ;;  %v6676_v43 = vld [vmem:[#allocation5 + $0xcb0] sm:$0xf0]  ;;  %v7961_v45 = vld [vmem:[#allocation5 + $0xda4] sm:$0xf]  ;;  %v6551_v48 = vor.u32 %v7897_v27, %v6548_v37 }
  0xfe   :  { %4010 = vmatpush.bf16.msra.mxu2 %v6103_v46  ;;  %v6804_v46 = vld [vmem:[#allocation5 + $0xdb0] sm:$0xf0]  ;;  %v6679_v49 = vor.u32 %v7929_v40, %v6676_v43  ;;  %v7861_v50 = vld [vmem:[#allocation5 + $0xa84] sm:$0xf] }
  0xff   :  { %4023 = vmatpush.bf16.msra.mxu3 %v6231_v51  ;;  %v6404_v51 = vld [vmem:[#allocation5 + $0xa90] sm:$0xf0]  ;;  %v7893_v52 = vld [vmem:[#allocation5 + $0xb84] sm:$0xf]  ;;  %v6807_v53 = vor.u32 %v7961_v45, %v6804_v46  ;;  %v3779_v57 = vpop.f32.mrf.mxu0 }
 0x100   :  { %3985 = vmatpush.bf16.msra.mxu0 %v5831_v59  ;;  %v6532_v54 = vld [vmem:[#allocation5 + $0xb90] sm:$0xf0]  ;;  %v7925_v55 = vld [vmem:[#allocation5 + $0xc84] sm:$0xf]  ;;  %v3780_v60 = vadd.f32 %v3779_v57, %v8506_v9  ;;  %v6407_v61 = vor.u32 %v7861_v50, %v6404_v51 }
 0x101   :  { %3998 = vmatpush.bf16.msra.mxu1 %v5959_v63  ;;  %v6660_v56 = vld [vmem:[#allocation5 + $0xc90] sm:$0xf0]  ;;  %v7957_v58 = vld [vmem:[#allocation5 + $0xd84] sm:$0xf]  ;;  %v3792_v62 = vpop.f32.mrf.mxu1  ;;  %v6535_v63 = vor.u32 %v7893_v52, %v6532_v54 }
 0x102   :  { %4011 = vmatpush.bf16.msra.mxu2 %v6087_v0  ;;  %v6788_v59 = vld [vmem:[#allocation5 + $0xd90] sm:$0xf0]  ;;  %v6663_v0 = vor.u32 %v7925_v55, %v6660_v56  ;;  %v7857_v36 = vld [vmem:[#allocation5 + $0xa64] sm:$0xf] }
 0x103   :  { %4024 = vmatpush.bf16.msra.mxu3 %v6215_v2  ;;  %3986 = vmatmul.bf16.vlgmr.msra.gmra.mxu0 %v8455_v38  ;;  %v6388_v1 = vld [vmem:[#allocation5 + $0xa70] sm:$0xf0]  ;;  %v7889_v2 = vld [vmem:[#allocation5 + $0xb64] sm:$0xf] }
 0x104   :  { %4030 = vmatpush.bf16.msrb.mxu0 %v6455_v3  ;;  %3999 = vmatmul.bf16.vlgmr.msra.gmra.mxu1 %v8459_v42  ;;  %v6791_v3 = vor.u32 %v7957_v58, %v6788_v59  ;;  %v7921_v6 = vld [vmem:[#allocation5 + $0xc64] sm:$0xf]  ;;  %v6644_v7 = vld [vmem:[#allocation5 + $0xc70] sm:$0xf0]  ;;  %v6391_v11 = vor.u32 %v7857_v36, %v6388_v1 }
 0x105   :  { %4043 = vmatpush.bf16.msrb.mxu1 %v6583_v4  ;;  %4012 = vmatmul.bf16.vlgmr.msra.gmra.mxu2 %v8467_v25  ;;  %v3793_v4 = vadd.f32 %v3792_v62, %v3780_v60  ;;  %v7953_v8 = vld [vmem:[#allocation5 + $0xd64] sm:$0xf]  ;;  %v6647_v12 = vor.u32 %v7921_v6, %v6644_v7  ;;  %v6372_v14 = vld [vmem:[#allocation5 + $0xa50] sm:$0xf0] }
 0x106   :  { %4056 = vmatpush.bf16.msrb.mxu2 %v6711_v5  ;;  %4025 = vmatmul.bf16.vlgmr.msra.gmra.mxu3 %v8471_v30  ;;  %v6516_v5 = vld [vmem:[#allocation5 + $0xb70] sm:$0xf0]  ;;  %v7853_v13 = vld [vmem:[#allocation5 + $0xa44] sm:$0xf] }
 0x107   :  { %4069 = vmatpush.bf16.msrb.mxu3 %v6839_v10  ;;  %v6772_v10 = vld [vmem:[#allocation5 + $0xd70] sm:$0xf0]  ;;  %v6519_v9 = vor.u32 %v7889_v2, %v6516_v5  ;;  %v7885_v15 = vld [vmem:[#allocation5 + $0xb44] sm:$0xf]  ;;  %v3781_v43 = vpop.f32.mrf.mxu0  ;;  %v6375_v45 = vor.u32 %v7853_v13, %v6372_v14 }
 0x108   :  { %4031 = vmatpush.bf16.msrb.mxu0 %v6439_v16  ;;  %v6775_v16 = vor.u32 %v7953_v8, %v6772_v10  ;;  %v7917_v24 = vld [vmem:[#allocation5 + $0xc44] sm:$0xf]  ;;  %v6628_v26 = vld [vmem:[#allocation5 + $0xc50] sm:$0xf0] }
 0x109   :  { %4044 = vmatpush.bf16.msrb.mxu1 %v6567_v17  ;;  %v3805_v17 = vpop.f32.mrf.mxu2  ;;  %v7949_v37 = vld [vmem:[#allocation5 + $0xd44] sm:$0xf]  ;;  %v6756_v40 = vld [vmem:[#allocation5 + $0xd50] sm:$0xf0]  ;;  %v3794_v46 = vpop.f32.mrf.mxu1 }
 0x10a   :  { %4057 = vmatpush.bf16.msrb.mxu2 %v6695_v21  ;;  %v6500_v21 = vld [vmem:[#allocation5 + $0xb50] sm:$0xf0]  ;;  %v3806_v27 = vadd.f32 %v3805_v17, %v3793_v4  ;;  %v7849_v50 = vld [vmem:[#allocation5 + $0xa24] sm:$0xf] }
 0x10b   :  { %4070 = vmatpush.bf16.msrb.mxu3 %v6823_v34  ;;  %v3818_v34 = vpop.f32.mrf.mxu3  ;;  %v6356_v51 = vld [vmem:[#allocation5 + $0xa30] sm:$0xf0]  ;;  %v7881_v52 = vld [vmem:[#allocation5 + $0xb24] sm:$0xf] }
 0x10c   :  { %4032 = vmatpush.bf16.msrb.mxu0 %v6423_v47  ;;  %v8513_v47 = vadd.f32 %v3818_v34, %v3806_v27  ;;  %v6484_v54 = vld [vmem:[#allocation5 + $0xb30] sm:$0xf0]  ;;  %v7913_v55 = vld [vmem:[#allocation5 + $0xc24] sm:$0xf]  ;;  %v6359_v59 = vor.u32 %v7849_v50, %v6356_v51 }
 0x10d   :  { %4045 = vmatpush.bf16.msrb.mxu1 %v6551_v48  ;;  %v6503_v48 = vor.u32 %v7885_v15, %v6500_v21  ;;  %v6612_v56 = vld [vmem:[#allocation5 + $0xc30] sm:$0xf0]  ;;  %v7945_v57 = vld [vmem:[#allocation5 + $0xd24] sm:$0xf]  ;;  %v6487_v62 = vor.u32 %v7881_v52, %v6484_v54 }
 0x10e   :  { %4058 = vmatpush.bf16.msrb.mxu2 %v6679_v49  ;;  %v6631_v49 = vor.u32 %v7917_v24, %v6628_v26  ;;  %v6740_v58 = vld [vmem:[#allocation5 + $0xd30] sm:$0xf0]  ;;  %v7845_v60 = vld [vmem:[#allocation5 + $0xa04] sm:$0xf] }
 0x10f   :  { %4071 = vmatpush.bf16.msrb.mxu3 %v6807_v53  ;;  %v6759_v53 = vor.u32 %v7949_v37, %v6756_v40  ;;  %v6468_v36 = vld [vmem:[#allocation5 + $0xb10] sm:$0xf0]  ;;  %v7909_v1 = vld [vmem:[#allocation5 + $0xc04] sm:$0xf]  ;;  %v6743_v2 = vor.u32 %v7945_v57, %v6740_v58 }
 0x110   :  { %4033 = vmatpush.bf16.msrb.mxu0 %v6407_v61  ;;  %v6340_v61 = vld [vmem:[#allocation5 + $0xa10] sm:$0xf0]  ;;  %v7941_v4 = vld [vmem:[#allocation5 + $0xd04] sm:$0xf] }
 0x111   :  { %4046 = vmatpush.bf16.msrb.mxu1 %v6535_v63  ;;  %v6615_v63 = vor.u32 %v7913_v55, %v6612_v56  ;;  %v6724_v5 = vld [vmem:[#allocation5 + $0xd10] sm:$0xf0]  ;;  %v3807_v6 = vpop.f32.mrf.mxu2  ;;  %v8001_v7 = vld [vmem:[#allocation5 + $0xee4] sm:$0xf] }
 0x112   :  { %4059 = vmatpush.bf16.msrb.mxu2 %v6663_v0  ;;  %v7877_v0 = vld [vmem:[#allocation5 + $0xb04] sm:$0xf]  ;;  %v6964_v8 = vld [vmem:[#allocation5 + $0xef0] sm:$0xf0]  ;;  %v6727_v24 = vor.u32 %v7941_v4, %v6724_v5 }
 0x113   :  { %4072 = vmatpush.bf16.msrb.mxu3 %v6791_v3  ;;  %v6596_v3 = vld [vmem:[#allocation5 + $0xc10] sm:$0xf0]  ;;  %v8033_v10 = vld [vmem:[#allocation5 + $0xfe4] sm:$0xf]  ;;  %v6471_v15 = vor.u32 %v7877_v0, %v6468_v36  ;;  %v6967_v26 = vor.u32 %v8001_v7, %v6964_v8 }
 0x114   :  { %4034 = vmatpush.bf16.msrb.mxu0 %v6391_v11  ;;  %v3820_v11 = vpop.f32.mrf.mxu3  ;;  %v8065_v13 = vld [vmem:[#allocation5 + $0x10e4] sm:$0xf]  ;;  %v7220_v14 = vld [vmem:[#allocation5 + $0x10f0] sm:$0xf0] }
 0x115   :  { %4047 = vmatpush.bf16.msrb.mxu1 %v6519_v9  ;;  %v6343_v9 = vor.u32 %v7845_v60, %v6340_v61  ;;  %v8097_v17 = vld [vmem:[#allocation5 + $0x11e4] sm:$0xf]  ;;  %v7348_v21 = vld [vmem:[#allocation5 + $0x11f0] sm:$0xf0]  ;;  %v7223_v34 = vor.u32 %v8065_v13, %v7220_v14 }
 0x116   :  { %4060 = vmatpush.bf16.msrb.mxu2 %v6647_v12  ;;  %v7092_v12 = vld [vmem:[#allocation5 + $0xff0] sm:$0xf0]  ;;  %v7997_v37 = vld [vmem:[#allocation5 + $0xec4] sm:$0xf] }
 0x117   :  { %4073 = vmatpush.bf16.msrb.mxu3 %v6775_v16  ;;  %v6599_v16 = vor.u32 %v7909_v1, %v6596_v3  ;;  %v7095_v27 = vor.u32 %v8033_v10, %v7092_v12  ;;  %v6948_v40 = vld [vmem:[#allocation5 + $0xed0] sm:$0xf0]  ;;  %v8029_v43 = vld [vmem:[#allocation5 + $0xfc4] sm:$0xf] }
 0x118   :  { %4035 = vmatpush.bf16.msrb.mxu0 %v6375_v45  ;;  %v7351_v45 = vor.u32 %v8097_v17, %v7348_v21  ;;  %v7076_v46 = vld [vmem:[#allocation5 + $0xfd0] sm:$0xf0]  ;;  %v8093_v50 = vld [vmem:[#allocation5 + $0x11c4] sm:$0xf]  ;;  %v6951_v52 = vor.u32 %v7997_v37, %v6948_v40 }
 0x119   :  { %4048 = vmatpush.bf16.msrb.mxu1 %v6503_v48  ;;  %v8061_v48 = vld [vmem:[#allocation5 + $0x10c4] sm:$0xf]  ;;  %v7332_v51 = vld [vmem:[#allocation5 + $0x11d0] sm:$0xf0] }
 0x11a   :  { %4061 = vmatpush.bf16.msrb.mxu2 %v6631_v49  ;;  %v7204_v49 = vld [vmem:[#allocation5 + $0x10d0] sm:$0xf0]  ;;  %v7993_v55 = vld [vmem:[#allocation5 + $0xea4] sm:$0xf]  ;;  %v7335_v58 = vor.u32 %v8093_v50, %v7332_v51 }
 0x11b   :  { %4074 = vmatpush.bf16.msrb.mxu3 %v6759_v53  ;;  %v7079_v53 = vor.u32 %v8029_v43, %v7076_v46  ;;  %v7207_v54 = vor.u32 %v8061_v48, %v7204_v49  ;;  %v6932_v56 = vld [vmem:[#allocation5 + $0xeb0] sm:$0xf0]  ;;  %v8025_v57 = vld [vmem:[#allocation5 + $0xfa4] sm:$0xf] }
 0x11c   :  { %4036 = vmatpush.bf16.msrb.mxu0 %v6359_v59  ;;  %v7060_v59 = vld [vmem:[#allocation5 + $0xfb0] sm:$0xf0]  ;;  %v8057_v60 = vld [vmem:[#allocation5 + $0x10a4] sm:$0xf]  ;;  %v6935_v0 = vor.u32 %v7993_v55, %v6932_v56 }
 0x11d   :  { %4049 = vmatpush.bf16.msrb.mxu1 %v6487_v62  ;;  %v7188_v61 = vld [vmem:[#allocation5 + $0x10b0] sm:$0xf0]  ;;  %v8089_v62 = vld [vmem:[#allocation5 + $0x11a4] sm:$0xf]  ;;  %v7063_v36 = vor.u32 %v8025_v57, %v7060_v59 }
 0x11e   :  { %4062 = vmatpush.bf16.msrb.mxu2 %v6615_v63  ;;  %v7316_v63 = vld [vmem:[#allocation5 + $0x11b0] sm:$0xf0]  ;;  %v7191_v1 = vor.u32 %v8057_v60, %v7188_v61  ;;  %v8021_v4 = vld [vmem:[#allocation5 + $0xf84] sm:$0xf] }
 0x11f   :  { %4075 = vmatpush.bf16.msrb.mxu3 %v6743_v2  ;;  %v7989_v2 = vld [vmem:[#allocation5 + $0xe84] sm:$0xf]  ;;  %v6916_v3 = vld [vmem:[#allocation5 + $0xe90] sm:$0xf0]  ;;  %v7319_v5 = vor.u32 %v8089_v62, %v7316_v63 }
 0x120   :  { %4037 = vmatpush.bf16.msrb.mxu0 %v6343_v9  ;;  %v7044_v6 = vld [vmem:[#allocation5 + $0xf90] sm:$0xf0]  ;;  %v8053_v7 = vld [vmem:[#allocation5 + $0x1084] sm:$0xf]  ;;  %v3831_v10 = vpop.f32.mrf.mxu0  ;;  %v6919_v13 = vor.u32 %v7989_v2, %v6916_v3 }
 0x121   :  { %4050 = vmatpush.bf16.msrb.mxu1 %v6471_v15  ;;  %v7172_v8 = vld [vmem:[#allocation5 + $0x1090] sm:$0xf0]  ;;  %v8085_v11 = vld [vmem:[#allocation5 + $0x1184] sm:$0xf]  ;;  %v3832_v12 = vadd.f32 %v3831_v10, %v8513_v47  ;;  %v3844_v14 = vpop.f32.mrf.mxu1  ;;  %v7047_v15 = vor.u32 %v8021_v4, %v7044_v6 }
 0x122   :  { %4063 = vmatpush.bf16.msrb.mxu2 %v6599_v16  ;;  %v7300_v9 = vld [vmem:[#allocation5 + $0x1190] sm:$0xf0]  ;;  %v7175_v16 = vor.u32 %v8053_v7, %v7172_v8  ;;  %v7985_v17 = vld [vmem:[#allocation5 + $0xe64] sm:$0xf] }
 0x123   :  { %4076 = vmatpush.bf16.msrb.mxu3 %v6727_v24  ;;  %4038 = vmatmul.bf16.vlgmr.msrb.gmra.mxu0 %v8469_v29  ;;  %v6900_v21 = vld [vmem:[#allocation5 + $0xe70] sm:$0xf0]  ;;  %v8017_v24 = vld [vmem:[#allocation5 + $0xf64] sm:$0xf] }
 0x124   :  { %4082 = vmatpush.bf16.msra.mxu0 %v6967_v26  ;;  %4051 = vmatmul.bf16.vlgmr.msrb.gmra.mxu1 %v8473_v33  ;;  %v7303_v26 = vor.u32 %v8085_v11, %v7300_v9  ;;  %v8049_v37 = vld [vmem:[#allocation5 + $0x1064] sm:$0xf]  ;;  %v7156_v40 = vld [vmem:[#allocation5 + $0x1070] sm:$0xf0]  ;;  %v6903_v46 = vor.u32 %v7985_v17, %v6900_v21 }
 0x125   :  { %4095 = vmatpush.bf16.msra.mxu1 %v7095_v27  ;;  %4064 = vmatmul.bf16.vlgmr.msrb.gmra.mxu2 %v8479_v23  ;;  %v3845_v27 = vadd.f32 %v3844_v14, %v3832_v12  ;;  %v8081_v43 = vld [vmem:[#allocation5 + $0x1164] sm:$0xf]  ;;  %v7159_v48 = vor.u32 %v8049_v37, %v7156_v40  ;;  %v6884_v50 = vld [vmem:[#allocation5 + $0xe50] sm:$0xf0]  ;;  %v5178_v40 = vld [vmem:[#allocation5 + $0xe8] sm:$0xf] }
 0x126   :  { %4108 = vmatpush.bf16.msra.mxu2 %v7223_v34  ;;  %4077 = vmatmul.bf16.vlgmr.msrb.gmra.mxu3 %v8483_v31  ;;  %v7028_v34 = vld [vmem:[#allocation5 + $0xf70] sm:$0xf0]  ;;  %v7981_v49 = vld [vmem:[#allocation5 + $0xe44] sm:$0xf] }
 0x127   :  { %4121 = vmatpush.bf16.msra.mxu3 %v7351_v45  ;;  %v7284_v45 = vld [vmem:[#allocation5 + $0x1170] sm:$0xf0]  ;;  %v7031_v47 = vor.u32 %v8017_v24, %v7028_v34  ;;  %v8013_v51 = vld [vmem:[#allocation5 + $0xf44] sm:$0xf]  ;;  %v6887_v62 = vor.u32 %v7981_v49, %v6884_v50  ;;  %v5434_v49 = vld [vmem:[#allocation5 + $0x2e8] sm:$0xf] }
 0x128   :  { %4083 = vmatpush.bf16.msra.mxu0 %v6951_v52  ;;  %v7287_v52 = vor.u32 %v8081_v43, %v7284_v45  ;;  %v8045_v55 = vld [vmem:[#allocation5 + $0x1044] sm:$0xf]  ;;  %v7140_v56 = vld [vmem:[#allocation5 + $0x1050] sm:$0xf0]  ;;  %v3833_v61 = vpop.f32.mrf.mxu0  ;;  %v7556_v43 = vld [vmem:[#allocation5 + $0xf4] sm:$0xf0] }
 0x129   :  { %4096 = vmatpush.bf16.msra.mxu1 %v7079_v53  ;;  %v3857_v53 = vpop.f32.mrf.mxu2  ;;  %v8077_v59 = vld [vmem:[#allocation5 + $0x1144] sm:$0xf]  ;;  %v7268_v60 = vld [vmem:[#allocation5 + $0x1150] sm:$0xf0]  ;;  %v3846_v63 = vpop.f32.mrf.mxu1  ;;  %v5306_v45 = vld [vmem:[#allocation5 + $0x1e8] sm:$0xf] }
 0x12a   :  { %4109 = vmatpush.bf16.msra.mxu2 %v7207_v54  ;;  %v7012_v54 = vld [vmem:[#allocation5 + $0xf50] sm:$0xf0]  ;;  %v3858_v57 = vadd.f32 %v3857_v53, %v3845_v27  ;;  %v7977_v2 = vld [vmem:[#allocation5 + $0xe24] sm:$0xf]  ;;  %v7620_v50 = vld [vmem:[#allocation5 + $0x2f4] sm:$0xf0] }
 0x12b   :  { %4122 = vmatpush.bf16.msra.mxu3 %v7335_v58  ;;  %v3870_v58 = vpop.f32.mrf.mxu3  ;;  %v6868_v3 = vld [vmem:[#allocation5 + $0xe30] sm:$0xf0]  ;;  %v8009_v4 = vld [vmem:[#allocation5 + $0xf24] sm:$0xf]  ;;  %v5562_v53 = vld [vmem:[#allocation5 + $0x3e8] sm:$0xf] }
 0x12c   :  { %4084 = vmatpush.bf16.msra.mxu0 %v6935_v0  ;;  %v8520_v0 = vadd.f32 %v3870_v58, %v3858_v57  ;;  %v6996_v6 = vld [vmem:[#allocation5 + $0xf30] sm:$0xf0]  ;;  %v8041_v7 = vld [vmem:[#allocation5 + $0x1024] sm:$0xf]  ;;  %v6871_v9 = vor.u32 %v7977_v2, %v6868_v3  ;;  %v5435_v58 = vor.u32 %v7620_v50, %v5434_v49  ;;  %v5290_v61 = vld [vmem:[#allocation5 + $0x1c8] sm:$0xf] }
 0x12d   :  { %4097 = vmatpush.bf16.msra.mxu1 %v7063_v36  ;;  %v7015_v36 = vor.u32 %v8013_v51, %v7012_v54  ;;  %v7124_v8 = vld [vmem:[#allocation5 + $0x1030] sm:$0xf0]  ;;  %v8073_v10 = vld [vmem:[#allocation5 + $0x1124] sm:$0xf]  ;;  %v6999_v14 = vor.u32 %v8009_v4, %v6996_v6  ;;  %v7652_v54 = vld [vmem:[#allocation5 + $0x3f4] sm:$0xf0] }
 0x12e   :  { %4110 = vmatpush.bf16.msra.mxu2 %v7191_v1  ;;  %v7143_v1 = vor.u32 %v8045_v55, %v7140_v56  ;;  %v7252_v11 = vld [vmem:[#allocation5 + $0x1130] sm:$0xf0]  ;;  %v7973_v12 = vld [vmem:[#allocation5 + $0xe04] sm:$0xf]  ;;  %v5179_v56 = vor.u32 %v7556_v43, %v5178_v40  ;;  %v7584_v63 = vld [vmem:[#allocation5 + $0x1d4] sm:$0xf0] }
 0x12f   :  { %4123 = vmatpush.bf16.msra.mxu3 %v7319_v5  ;;  %v7271_v5 = vor.u32 %v8077_v59, %v7268_v60  ;;  %v6980_v17 = vld [vmem:[#allocation5 + $0xf10] sm:$0xf0]  ;;  %v8037_v21 = vld [vmem:[#allocation5 + $0x1004] sm:$0xf]  ;;  %v7255_v24 = vor.u32 %v8073_v10, %v7252_v11  ;;  %v5162_v59 = vld [vmem:[#allocation5 + $0xc8] sm:$0xf] }
 0x130   :  { %4085 = vmatpush.bf16.msra.mxu0 %v6919_v13  ;;  %v6852_v13 = vld [vmem:[#allocation5 + $0xe10] sm:$0xf0]  ;;  %v8069_v27 = vld [vmem:[#allocation5 + $0x1104] sm:$0xf]  ;;  %v7552_v60 = vld [vmem:[#allocation5 + $0xd4] sm:$0xf0] }
 0x131   :  { %4098 = vmatpush.bf16.msra.mxu1 %v7047_v15  ;;  %v7127_v15 = vor.u32 %v8041_v7, %v7124_v8  ;;  %v7236_v34 = vld [vmem:[#allocation5 + $0x1110] sm:$0xf0]  ;;  %v3859_v37 = vpop.f32.mrf.mxu2  ;;  %v5546_v2 = vld [vmem:[#allocation5 + $0x3c8] sm:$0xf]  ;;  %v7648_v3 = vld [vmem:[#allocation5 + $0x3d4] sm:$0xf0]  ;;  %v5163_v4 = vor.u32 %v7552_v60, %v5162_v59 }
 0x132   :  { %4111 = vmatpush.bf16.msra.mxu2 %v7175_v16  ;;  %v8005_v16 = vld [vmem:[#allocation5 + $0xf04] sm:$0xf]  ;;  %v7239_v55 = vor.u32 %v8069_v27, %v7236_v34  ;;  %v5146_v7 = vld [vmem:[#allocation5 + $0xa8] sm:$0xf]  ;;  %v7548_v8 = vld [vmem:[#allocation5 + $0xb4] sm:$0xf0]  ;;  %v5547_v11 = vor.u32 %v7648_v3, %v5546_v2 }
 0x133   :  { %4124 = vmatpush.bf16.msra.mxu3 %v7303_v26  ;;  %v7108_v26 = vld [vmem:[#allocation5 + $0x1010] sm:$0xf0]  ;;  %v6983_v51 = vor.u32 %v8005_v16, %v6980_v17  ;;  %v5274_v10 = vld [vmem:[#allocation5 + $0x1a8] sm:$0xf]  ;;  %v5147_v16 = vor.u32 %v7548_v8, %v5146_v7  ;;  %v7576_v37 = vld [vmem:[#allocation5 + $0x194] sm:$0xf0] }
 0x134   :  { %4086 = vmatpush.bf16.msra.mxu0 %v6903_v46  ;;  %v3872_v46 = vpop.f32.mrf.mxu3  ;;  %v5258_v27 = vld [vmem:[#allocation5 + $0x188] sm:$0xf]  ;;  %v7608_v43 = vld [vmem:[#allocation5 + $0x294] sm:$0xf0] }
 0x135   :  { %4099 = vmatpush.bf16.msra.mxu1 %v7031_v47  ;;  %v6855_v47 = vor.u32 %v7973_v12, %v6852_v13  ;;  %v5402_v12 = vld [vmem:[#allocation5 + $0x2a8] sm:$0xf]  ;;  %v7612_v13 = vld [vmem:[#allocation5 + $0x2b4] sm:$0xf0] }
 0x136   :  { %4112 = vmatpush.bf16.msra.mxu2 %v7159_v48  ;;  %v7588_v48 = vld [vmem:[#allocation5 + $0x1f4] sm:$0xf0]  ;;  %v5386_v40 = vld [vmem:[#allocation5 + $0x288] sm:$0xf] }
 0x137   :  { %4125 = vmatpush.bf16.msra.mxu3 %v7287_v52  ;;  %v7111_v52 = vor.u32 %v8037_v21, %v7108_v26  ;;  %v5307_v57 = vor.u32 %v7588_v48, %v5306_v45  ;;  %v5403_v21 = vor.u32 %v7612_v13, %v5402_v12  ;;  %v7544_v26 = vld [vmem:[#allocation5 + $0x94] sm:$0xf0]  ;;  %v5514_v46 = vld [vmem:[#allocation5 + $0x388] sm:$0xf] }
 0x138   :  { %4087 = vmatpush.bf16.msra.mxu0 %v6887_v62  ;;  %v5563_v62 = vor.u32 %v7652_v54, %v5562_v53  ;;  %v5114_v53 = vld [vmem:[#allocation5 + $0x68] sm:$0xf]  ;;  %v7540_v54 = vld [vmem:[#allocation5 + $0x74] sm:$0xf0] }
 0x139   :  { %4100 = vmatpush.bf16.msra.mxu1 %v7015_v36  ;;  %v5418_v36 = vld [vmem:[#allocation5 + $0x2c8] sm:$0xf]  ;;  %v7604_v60 = vld [vmem:[#allocation5 + $0x274] sm:$0xf0] }
 0x13a   :  { %4113 = vmatpush.bf16.msra.mxu2 %v7143_v1  ;;  %v7616_v1 = vld [vmem:[#allocation5 + $0x2d4] sm:$0xf0]  ;;  %v5370_v59 = vld [vmem:[#allocation5 + $0x268] sm:$0xf] }
 0x13b   :  { %4126 = vmatpush.bf16.msra.mxu3 %v7271_v5  ;;  %v5291_v5 = vor.u32 %v7584_v63, %v5290_v61  ;;  %v5419_v6 = vor.u32 %v7616_v1, %v5418_v36  ;;  %v5498_v61 = vld [vmem:[#allocation5 + $0x368] sm:$0xf]  ;;  %v8165_v63 = vld [vmem:[#allocation7] sm:$0xf]  ;;  %v5115_v36 = vor.u32 %v7540_v54, %v5114_v53  ;;  %v5371_v2 = vor.u32 %v7604_v60, %v5370_v59  ;;  %v7568_v7 = vld [vmem:[#allocation5 + $0x154] sm:$0xf0] }
 0x13c   :  { %4088 = vmatpush.bf16.msra.mxu0 %v6871_v9  ;;  %v7580_v9 = vld [vmem:[#allocation5 + $0x1b4] sm:$0xf0]  ;;  %v5098_v3 = vld [vmem:[#allocation5 + $0x48] sm:$0xf] }
 0x13d   :  { %4101 = vmatpush.bf16.msra.mxu1 %v6999_v14  ;;  %v5530_v14 = vld [vmem:[#allocation5 + $0x3a8] sm:$0xf]  ;;  %v5275_v17 = vor.u32 %v7580_v9, %v5274_v10  ;;  %v7600_v10 = vld [vmem:[#allocation5 + $0x254] sm:$0xf0] }
 0x13e   :  { %4114 = vmatpush.bf16.msra.mxu2 %v7127_v15  ;;  %v7644_v15 = vld [vmem:[#allocation5 + $0x3b4] sm:$0xf0]  ;;  %v5354_v8 = vld [vmem:[#allocation5 + $0x248] sm:$0xf] }
 0x13f   :  { %4127 = vmatpush.bf16.msra.mxu3 %v7255_v24  ;;  %v5130_v24 = vld [vmem:[#allocation5 + $0x88] sm:$0xf]  ;;  %v5531_v34 = vor.u32 %v7644_v15, %v5530_v14  ;;  %v7632_v12 = vld [vmem:[#allocation5 + $0x354] sm:$0xf0] }
 0x140   :  { %4089 = vmatpush.bf16.msra.mxu0 %v6855_v47  ;;  %v3883_v45 = vpop.f32.mrf.mxu0  ;;  %v7640_v47 = vld [vmem:[#allocation5 + $0x394] sm:$0xf0]  ;;  %v5131_v49 = vor.u32 %v7544_v26, %v5130_v24  ;;  %v5482_v9 = vld [vmem:[#allocation5 + $0x348] sm:$0xf]  ;;  %v5355_v24 = vor.u32 %v7600_v10, %v5354_v8 }
 0x141   :  { %4102 = vmatpush.bf16.msra.mxu1 %v6983_v51  ;;  %v3884_v48 = vadd.f32 %v3883_v45, %v8520_v0  ;;  %v3896_v50 = vpop.f32.mrf.mxu1  ;;  %v5259_v51 = vor.u32 %v7576_v37, %v5258_v27  ;;  %v716_v0 = vperm.slane %v8165_v63, 1  ;;  %v5082_v26 = vld [vmem:[#allocation5 + $0x28] sm:$0xf]  ;;  %v7532_v27 = vld [vmem:[#allocation5 + $0x34] sm:$0xf0] }
 0x142   :  { %4115 = vmatpush.bf16.msra.mxu2 %v7111_v52  ;;  %v5387_v52 = vor.u32 %v7608_v43, %v5386_v40  ;;  %v5483_v40 = vor.u32 %v7632_v12, %v5482_v9  ;;  %v7564_v43 = vld [vmem:[#allocation5 + $0x134] sm:$0xf0]  ;;  %v5338_v45 = vld [vmem:[#allocation5 + $0x228] sm:$0xf] }
 0x143   :  { %4128 = vmatpush.bf16.msra.mxu3 %v7239_v55  ;;  %4090 = vmatmul.bf16.vlgmr.msra.gmra.mxu0 %v8481_v28  ;;  %v5242_v55 = vld [vmem:[#allocation5 + $0x168] sm:$0xf]  ;;  %v7592_v59 = vld [vmem:[#allocation5 + $0x214] sm:$0xf0] }
 0x144   :  { %4134 = vmatpush.bf16.msrb.mxu0 %v5179_v56  ;;  %4103 = vmatmul.bf16.vlgmr.msra.gmra.mxu1 %v8485_v35  ;;  %v5515_v56 = vor.u32 %v7640_v47, %v5514_v46  ;;  %v7596_v46 = vld [vmem:[#allocation5 + $0x234] sm:$0xf0]  ;;  %v5466_v47 = vld [vmem:[#allocation5 + $0x328] sm:$0xf] }
 0x145   :  { %4147 = vmatpush.bf16.msrb.mxu1 %v5307_v57  ;;  %4116 = vmatmul.bf16.vlgmr.msra.gmra.mxu2 %v8491_v32  ;;  %v8527_v57 = vadd.f32 %v3896_v50, %v3884_v48  ;;  %v7628_v48 = vld [vmem:[#allocation5 + $0x334] sm:$0xf0]  ;;  %v5066_v50 = vld [vmem:[#allocation5 + $0x8] sm:$0xf]  ;;  %v5339_v53 = vor.u32 %v7596_v46, %v5338_v45 }
 0x146   :  { %4160 = vmatpush.bf16.msrb.mxu2 %v5435_v58  ;;  %4129 = vmatmul.bf16.vlgmr.msra.gmra.mxu3 %v8493_v39  ;;  %v7572_v58 = vld [vmem:[#allocation5 + $0x174] sm:$0xf0]  ;;  %v5194_v54 = vld [vmem:[#allocation5 + $0x108] sm:$0xf] }
 0x147   :  { %4173 = vmatpush.bf16.msrb.mxu3 %v5563_v62  ;;  %v7636_v62 = vld [vmem:[#allocation5 + $0x374] sm:$0xf0]  ;;  %v5243_v1 = vor.u32 %v7572_v58, %v5242_v55  ;;  %v5467_v58 = vor.u32 %v7628_v48, %v5466_v47  ;;  %v5450_v60 = vld [vmem:[#allocation5 + $0x308] sm:$0xf]  ;;  %vm4602_vm0 = vcmp.gt.f32.partialorder %v8527_v57, 0.0 }
 0x148   :  { %4135 = vmatpush.bf16.msrb.mxu0 %v5163_v4  ;;  %v7536_v4 = vld [vmem:[#allocation5 + $0x54] sm:$0xf0]  ;;  %v3885_v15 = vpop.f32.mrf.mxu0  ;;  %v5690_v63 = vld [vmem:[#allocation5 + $0x4e8] sm:$0xf] }
 0x149   :  { %4148 = vmatpush.bf16.msrb.mxu1 %v5291_v5  ;;  %v5226_v5 = vld [vmem:[#allocation5 + $0x148] sm:$0xf]  ;;  %v3922_v14 = vpop.f32.mrf.mxu3  ;;  %v7560_v55 = vld [vmem:[#allocation5 + $0x114] sm:$0xf0] }
 0x14a   :  { %4161 = vmatpush.bf16.msrb.mxu2 %v5419_v6  ;;  %v5499_v6 = vor.u32 %v7636_v62, %v5498_v61  ;;  %v7624_v61 = vld [vmem:[#allocation5 + $0x314] sm:$0xf0]  ;;  %v6074_v8 = vld [vmem:[#allocation5 + $0x7e8] sm:$0xf] }
 0x14b   :  { %4174 = vmatpush.bf16.msrb.mxu3 %v5547_v11  ;;  %v3909_v11 = vpop.f32.mrf.mxu2  ;;  %v7780_v10 = vld [vmem:[#allocation5 + $0x7f4] sm:$0xf0]  ;;  %v5658_v46 = vld [vmem:[#allocation5 + $0x4a8] sm:$0xf] }
 0x14c   :  { %4136 = vmatpush.bf16.msrb.mxu0 %v5147_v16  ;;  %v3910_v13 = vadd.f32 %v3909_v11, %v716_v0  ;;  %v5099_v16 = vor.u32 %v7536_v4, %v5098_v3  ;;  %v7684_v0 = vld [vmem:[#allocation5 + $0x4f4] sm:$0xf0]  ;;  %v5946_v4 = vld [vmem:[#allocation5 + $0x6e8] sm:$0xf]  ;;  %v5451_v11 = vor.u32 %v7624_v61, %v5450_v60 }
 0x14d   :  { %4149 = vmatpush.bf16.msrb.mxu1 %v5275_v17  ;;  %v3898_v17 = vpop.f32.mrf.mxu1  ;;  %v7716_v3 = vld [vmem:[#allocation5 + $0x5f4] sm:$0xf0]  ;;  %v5691_v9 = vor.u32 %v7684_v0, %v5690_v63  ;;  %v5786_v48 = vld [vmem:[#allocation5 + $0x5a8] sm:$0xf] }
 0x14e   :  { %4162 = vmatpush.bf16.msrb.mxu2 %v5403_v21  ;;  %v5227_v21 = vor.u32 %v7568_v7, %v5226_v5  ;;  %v8529_v37 = vadd.f32 %v3922_v14, %v3910_v13  ;;  %v7748_v5 = vld [vmem:[#allocation5 + $0x6f4] sm:$0xf0]  ;;  %v5674_v14 = vld [vmem:[#allocation5 + $0x4c8] sm:$0xf]  ;;  %v6075_v17 = vor.u32 %v7780_v10, %v6074_v8 }
 0x14f   :  { %4175 = vmatpush.bf16.msrb.mxu3 %v5531_v34  ;;  %v5210_v34 = vld [vmem:[#allocation5 + $0x128] sm:$0xf]  ;;  %v5947_v13 = vor.u32 %v7748_v5, %v5946_v4  ;;  %v7680_v15 = vld [vmem:[#allocation5 + $0x4d4] sm:$0xf0] }
 0x150   :  { %4137 = vmatpush.bf16.msrb.mxu0 %v5131_v49  ;;  %v5083_v49 = vor.u32 %v7532_v27, %v5082_v26  ;;  %v7744_v26 = vld [vmem:[#allocation5 + $0x6d4] sm:$0xf0]  ;;  %v6058_v27 = vld [vmem:[#allocation5 + $0x7c8] sm:$0xf] }
 0x151   :  { %4150 = vmatpush.bf16.msrb.mxu1 %v5259_v51  ;;  %v7528_v51 = vld [vmem:[#allocation5 + $0x14] sm:$0xf0]  ;;  %v5770_v61 = vld [vmem:[#allocation5 + $0x588] sm:$0xf] }
 0x152   :  { %4163 = vmatpush.bf16.msrb.mxu2 %v5387_v52  ;;  %v5211_v52 = vor.u32 %v7564_v43, %v5210_v34  ;;  %v7776_v34 = vld [vmem:[#allocation5 + $0x7d4] sm:$0xf0]  ;;  %v5898_v0 = vld [vmem:[#allocation5 + $0x688] sm:$0xf] }
 0x153   :  { %4176 = vmatpush.bf16.msrb.mxu3 %v5515_v56  ;;  %v5322_v56 = vld [vmem:[#allocation5 + $0x208] sm:$0xf]  ;;  %v3911_v62 = vpop.f32.mrf.mxu2  ;;  %v7676_v47 = vld [vmem:[#allocation5 + $0x4b4] sm:$0xf0] }
 0x154   :  { %4138 = vmatpush.bf16.msrb.mxu0 %v5115_v36  ;;  %v5818_v36 = vld [vmem:[#allocation5 + $0x5e8] sm:$0xf]  ;;  %v5323_v7 = vor.u32 %v7592_v59, %v5322_v56  ;;  %v7672_v60 = vld [vmem:[#allocation5 + $0x494] sm:$0xf0] }
 0x155   :  { %4151 = vmatpush.bf16.msrb.mxu1 %v5243_v1  ;;  %v3924_v1 = vpop.f32.mrf.mxu3  ;;  %v5819_v12 = vor.u32 %v7716_v3, %v5818_v36  ;;  %v5642_v59 = vld [vmem:[#allocation5 + $0x488] sm:$0xf]  ;;  %v7704_v63 = vld [vmem:[#allocation5 + $0x594] sm:$0xf0] }
 0x156   :  { %4164 = vmatpush.bf16.msrb.mxu2 %v5371_v2  ;;  %v5067_v2 = vor.u32 %v7528_v51, %v5066_v50  ;;  %v7708_v50 = vld [vmem:[#allocation5 + $0x5b4] sm:$0xf0]  ;;  %v5914_v51 = vld [vmem:[#allocation5 + $0x6a8] sm:$0xf]  ;;  %v5643_v3 = vor.u32 %v7672_v60, %v5642_v59  ;;  %v5771_v5 = vor.u32 %v7704_v63, %v5770_v61 }
 0x157   :  { %4177 = vmatpush.bf16.msrb.mxu3 %v5499_v6  ;;  %v5195_v6 = vor.u32 %v7560_v55, %v5194_v54  ;;  %v7772_v54 = vld [vmem:[#allocation5 + $0x7b4] sm:$0xf0]  ;;  %v5659_v55 = vor.u32 %v7676_v47, %v5658_v46  ;;  %v5787_v56 = vor.u32 %v7708_v50, %v5786_v48  ;;  %v6026_v1 = vld [vmem:[#allocation5 + $0x788] sm:$0xf] }
 0x158   :  { %4139 = vmatpush.bf16.msrb.mxu0 %v5099_v16  ;;  %v5802_v16 = vld [vmem:[#allocation5 + $0x5c8] sm:$0xf]  ;;  %v7736_v36 = vld [vmem:[#allocation5 + $0x694] sm:$0xf0] }
 0x159   :  { %4152 = vmatpush.bf16.msrb.mxu1 %v5227_v21  ;;  %v7712_v21 = vld [vmem:[#allocation5 + $0x5d4] sm:$0xf0]  ;;  %v5754_v10 = vld [vmem:[#allocation5 + $0x568] sm:$0xf] }
 0x15a   :  { %4165 = vmatpush.bf16.msrb.mxu2 %v5355_v24  ;;  %v5930_v24 = vld [vmem:[#allocation5 + $0x6c8] sm:$0xf]  ;;  %v5803_v43 = vor.u32 %v7712_v21, %v5802_v16  ;;  %v7668_v8 = vld [vmem:[#allocation5 + $0x474] sm:$0xf0] }
 0x15b   :  { %4178 = vmatpush.bf16.msrb.mxu3 %v5483_v40  ;;  %v5675_v40 = vor.u32 %v7680_v15, %v5674_v14  ;;  %v5931_v45 = vor.u32 %v7744_v26, %v5930_v24  ;;  %v5882_v14 = vld [vmem:[#allocation5 + $0x668] sm:$0xf]  ;;  %v7732_v15 = vld [vmem:[#allocation5 + $0x674] sm:$0xf0] }
 0x15c   :  { %4140 = vmatpush.bf16.msrb.mxu0 %v5083_v49  ;;  %v6059_v49 = vor.u32 %v7776_v34, %v6058_v27  ;;  %v6010_v16 = vld [vmem:[#allocation5 + $0x768] sm:$0xf]  ;;  %v5883_v27 = vor.u32 %v7732_v15, %v5882_v14  ;;  %v7696_v46 = vld [vmem:[#allocation5 + $0x554] sm:$0xf0] }
 0x15d   :  { %4153 = vmatpush.bf16.msrb.mxu1 %v5211_v52  ;;  %v7740_v52 = vld [vmem:[#allocation5 + $0x6b4] sm:$0xf0]  ;;  %v5610_v34 = vld [vmem:[#allocation5 + $0x448] sm:$0xf] }
 0x15e   :  { %4166 = vmatpush.bf16.msrb.mxu2 %v5339_v53  ;;  %v6042_v53 = vld [vmem:[#allocation5 + $0x7a8] sm:$0xf]  ;;  %v7728_v48 = vld [vmem:[#allocation5 + $0x654] sm:$0xf0] }
 0x15f   :  { %4179 = vmatpush.bf16.msrb.mxu3 %v5467_v58  ;;  %v5915_v58 = vor.u32 %v7740_v52, %v5914_v51  ;;  %v6043_v62 = vor.u32 %v7772_v54, %v6042_v53  ;;  %v5866_v47 = vld [vmem:[#allocation5 + $0x648] sm:$0xf]  ;;  %v7760_v52 = vld [vmem:[#allocation5 + $0x754] sm:$0xf0] }
 0x160   :  { %4141 = vmatpush.bf16.msrb.mxu0 %v5067_v2  ;;  %v7768_v2 = vld [vmem:[#allocation5 + $0x794] sm:$0xf0]  ;;  %v3935_v4 = vpop.f32.mrf.mxu0  ;;  %v5994_v51 = vld [vmem:[#allocation5 + $0x748] sm:$0xf] }
 0x161   :  { %4154 = vmatpush.bf16.msrb.mxu1 %v5195_v6  ;;  %v5899_v6 = vor.u32 %v7736_v36, %v5898_v0  ;;  %v5594_v59 = vld [vmem:[#allocation5 + $0x428] sm:$0xf]  ;;  %v7660_v60 = vld [vmem:[#allocation5 + $0x434] sm:$0xf0]  ;;  %v5995_v63 = vor.u32 %v7760_v52, %v5994_v51 }
 0x162   :  { %4167 = vmatpush.bf16.msrb.mxu2 %v5323_v7  ;;  %v5626_v7 = vld [vmem:[#allocation5 + $0x468] sm:$0xf]  ;;  %v7692_v0 = vld [vmem:[#allocation5 + $0x534] sm:$0xf0] }
 0x163   :  { %4180 = vmatpush.bf16.msrb.mxu3 %v5451_v11  ;;  %4142 = vmatmul.bf16.vlgmr.msrb.gmra.mxu0 %v8445_v19  ;;  %v3936_v11 = vadd.f32 %v3935_v4, %v8529_v37  ;;  %v5627_v24 = vor.u32 %v7668_v8, %v5626_v7  ;;  %v5722_v61 = vld [vmem:[#allocation5 + $0x528] sm:$0xf]  ;;  %v5595_v4 = vor.u32 %v7660_v60, %v5594_v59  ;;  %v7720_v14 = vld [vmem:[#allocation5 + $0x614] sm:$0xf0] }
 0x164   :  { %4186 = vmatpush.bf16.msra.mxu0 %v5691_v9  ;;  %4155 = vmatmul.bf16.vlgmr.msrb.gmra.mxu1 %v8449_v22  ;;  %v3948_v9 = vpop.f32.mrf.mxu1  ;;  %v5850_v36 = vld [vmem:[#allocation5 + $0x628] sm:$0xf]  ;;  %v5723_v7 = vor.u32 %v7692_v0, %v5722_v61  ;;  %v7872_v60 = vld [vmem:[#allocation5 + $0xad4] sm:$0xf0] }
 0x165   :  { %4199 = vmatpush.bf16.msra.mxu1 %v5819_v12  ;;  %4168 = vmatmul.bf16.vlgmr.msrb.gmra.mxu2 %v8443_v18  ;;  %v6027_v12 = vor.u32 %v7768_v2, %v6026_v1  ;;  %v3949_v21 = vadd.f32 %v3948_v9, %v3936_v11  ;;  %v7724_v1 = vld [vmem:[#allocation5 + $0x634] sm:$0xf0]  ;;  %v5978_v2 = vld [vmem:[#allocation5 + $0x728] sm:$0xf] }
 0x166   :  { %4212 = vmatpush.bf16.msra.mxu2 %v5947_v13  ;;  %4181 = vmatmul.bf16.vlgmr.msrb.gmra.mxu3 %v8447_v20  ;;  %v7700_v13 = vld [vmem:[#allocation5 + $0x574] sm:$0xf0]  ;;  %v5851_v8 = vor.u32 %v7724_v1, %v5850_v36  ;;  %v5834_v9 = vld [vmem:[#allocation5 + $0x608] sm:$0xf] }
 0x167   :  { %4225 = vmatpush.bf16.msra.mxu3 %v6075_v17  ;;  %v7764_v17 = vld [vmem:[#allocation5 + $0x774] sm:$0xf0]  ;;  %v5755_v26 = vor.u32 %v7700_v13, %v5754_v10  ;;  %v5706_v10 = vld [vmem:[#allocation5 + $0x508] sm:$0xf] }
 0x168   :  { %4187 = vmatpush.bf16.msra.mxu0 %v5675_v40  ;;  %v7664_v40 = vld [vmem:[#allocation5 + $0x454] sm:$0xf0]  ;;  %v6011_v37 = vor.u32 %v7764_v17, %v6010_v16  ;;  %v5962_v15 = vld [vmem:[#allocation5 + $0x708] sm:$0xf] }
 0x169   :  { %4200 = vmatpush.bf16.msra.mxu1 %v5803_v43  ;;  %v5738_v43 = vld [vmem:[#allocation5 + $0x548] sm:$0xf]  ;;  %v3974_v50 = vpop.f32.mrf.mxu3  ;;  %v5611_v53 = vor.u32 %v7664_v40, %v5610_v34  ;;  %v7688_v11 = vld [vmem:[#allocation5 + $0x514] sm:$0xf0] }
 0x16a   :  { %4213 = vmatpush.bf16.msra.mxu2 %v5931_v45  ;;  %v3961_v45 = vpop.f32.mrf.mxu2  ;;  %v7752_v16 = vld [vmem:[#allocation5 + $0x714] sm:$0xf0]  ;;  %v6458_v40 = vld [vmem:[#allocation5 + $0xae8] sm:$0xf] }
 0x16b   :  { %4226 = vmatpush.bf16.msra.mxu3 %v6059_v49  ;;  %v3962_v49 = vadd.f32 %v3961_v45, %v3949_v21  ;;  %v6202_v21 = vld [vmem:[#allocation5 + $0x8e8] sm:$0xf]  ;;  %v7844_v34 = vld [vmem:[#allocation5 + $0x9f4] sm:$0xf0]  ;;  %v5707_v45 = vor.u32 %v7688_v11, %v5706_v10 }
 0x16c   :  { %4188 = vmatpush.bf16.msra.mxu0 %v5659_v55  ;;  %v3937_v55 = vpop.f32.mrf.mxu0  ;;  %v6186_v52 = vld [vmem:[#allocation5 + $0x8c8] sm:$0xf]  ;;  %v7900_v10 = vld [vmem:[#allocation5 + $0xbb4] sm:$0xf0] }
 0x16d   :  { %4201 = vmatpush.bf16.msra.mxu1 %v5787_v56  ;;  %v8536_v54 = vadd.f32 %v3974_v50, %v3962_v49  ;;  %v5739_v56 = vor.u32 %v7696_v46, %v5738_v43  ;;  %v7876_v43 = vld [vmem:[#allocation5 + $0xaf4] sm:$0xf0]  ;;  %v6586_v46 = vld [vmem:[#allocation5 + $0xbe8] sm:$0xf] }
 0x16e   :  { %4214 = vmatpush.bf16.msra.mxu2 %v5915_v58  ;;  %v5867_v58 = vor.u32 %v7728_v48, %v5866_v47  ;;  %v7908_v47 = vld [vmem:[#allocation5 + $0xbf4] sm:$0xf0]  ;;  %v5963_v48 = vor.u32 %v7752_v16, %v5962_v15  ;;  %v6459_v51 = vor.u32 %v7876_v43, %v6458_v40  ;;  %v6314_v55 = vld [vmem:[#allocation5 + $0x9c8] sm:$0xf] }
 0x16f   :  { %4227 = vmatpush.bf16.msra.mxu3 %v6043_v62  ;;  %v3950_v62 = vpop.f32.mrf.mxu1  ;;  %v6442_v59 = vld [vmem:[#allocation5 + $0xac8] sm:$0xf] }
 0x170   :  { %4189 = vmatpush.bf16.msra.mxu0 %v5643_v3  ;;  %v7756_v3 = vld [vmem:[#allocation5 + $0x734] sm:$0xf0]  ;;  %v6570_v61 = vld [vmem:[#allocation5 + $0xbc8] sm:$0xf]  ;;  %v6443_v36 = vor.u32 %v7872_v60, %v6442_v59 }
 0x171   :  { %4202 = vmatpush.bf16.msra.mxu1 %v5771_v5  ;;  %v5578_v5 = vld [vmem:[#allocation5 + $0x408] sm:$0xf]  ;;  %v5979_v13 = vor.u32 %v7756_v3, %v5978_v2  ;;  %v3976_v17 = vpop.f32.mrf.mxu3  ;;  %v7904_v62 = vld [vmem:[#allocation5 + $0xbd4] sm:$0xf0] }
 0x172   :  { %4215 = vmatpush.bf16.msra.mxu2 %v5899_v6  ;;  %v7656_v6 = vld [vmem:[#allocation5 + $0x414] sm:$0xf0]  ;;  %v6170_v1 = vld [vmem:[#allocation5 + $0x8a8] sm:$0xf] }
 0x173   :  { %4228 = vmatpush.bf16.msra.mxu3 %v6027_v12  ;;  %v3963_v12 = vpop.f32.mrf.mxu2  ;;  %v7804_v2 = vld [vmem:[#allocation5 + $0x8b4] sm:$0xf0]  ;;  %v6298_v3 = vld [vmem:[#allocation5 + $0x9a8] sm:$0xf] }
 0x174   :  { %4190 = vmatpush.bf16.msra.mxu0 %v5627_v24  ;;  %v7812_v24 = vld [vmem:[#allocation5 + $0x8f4] sm:$0xf0]  ;;  %v6171_v11 = vor.u32 %v7804_v2, %v6170_v1  ;;  %v6282_v15 = vld [vmem:[#allocation5 + $0x988] sm:$0xf] }
 0x175   :  { %4203 = vmatpush.bf16.msra.mxu1 %v5755_v26  ;;  %v6330_v26 = vld [vmem:[#allocation5 + $0x9e8] sm:$0xf]  ;;  %v6203_v49 = vor.u32 %v7812_v24, %v6202_v21  ;;  %v7832_v17 = vld [vmem:[#allocation5 + $0x994] sm:$0xf0] }
 0x176   :  { %4216 = vmatpush.bf16.msra.mxu2 %v5883_v27  ;;  %v5579_v27 = vor.u32 %v7656_v6, %v5578_v5  ;;  %v6331_v50 = vor.u32 %v7844_v34, %v6330_v26  ;;  %v7836_v5 = vld [vmem:[#allocation5 + $0x9b4] sm:$0xf0]  ;;  %v6426_v6 = vld [vmem:[#allocation5 + $0xaa8] sm:$0xf] }
 0x177   :  { %4229 = vmatpush.bf16.msra.mxu3 %v6011_v37  ;;  %v5835_v37 = vor.u32 %v7720_v14, %v5834_v9  ;;  %v6299_v9 = vor.u32 %v7836_v5, %v6298_v3  ;;  %v7800_v14 = vld [vmem:[#allocation5 + $0x894] sm:$0xf0]  ;;  %v6410_v21 = vld [vmem:[#allocation5 + $0xa88] sm:$0xf] }
 0x178   :  { %4191 = vmatpush.bf16.msra.mxu0 %v5611_v53  ;;  %v7808_v53 = vld [vmem:[#allocation5 + $0x8d4] sm:$0xf0]  ;;  %v6378_v2 = vld [vmem:[#allocation5 + $0xa48] sm:$0xf] }
 0x179   :  { %4204 = vmatpush.bf16.msra.mxu1 %v5739_v56  ;;  %v6587_v56 = vor.u32 %v7908_v47, %v6586_v46  ;;  %v7864_v24 = vld [vmem:[#allocation5 + $0xa94] sm:$0xf0]  ;;  %v6138_v47 = vld [vmem:[#allocation5 + $0x868] sm:$0xf] }
 0x17a   :  { %4217 = vmatpush.bf16.msra.mxu2 %v5867_v58  ;;  %v7840_v58 = vld [vmem:[#allocation5 + $0x9d4] sm:$0xf0]  ;;  %v6411_v46 = vor.u32 %v7864_v24, %v6410_v21  ;;  %v6362_v24 = vld [vmem:[#allocation5 + $0xa28] sm:$0xf] }
 0x17b   :  { %4230 = vmatpush.bf16.msra.mxu3 %v5995_v63  ;;  %v6187_v63 = vor.u32 %v7808_v53, %v6186_v52  ;;  %v6315_v0 = vor.u32 %v7840_v58, %v6314_v55  ;;  %v7896_v34 = vld [vmem:[#allocation5 + $0xb94] sm:$0xf0]  ;;  %v6394_v53 = vld [vmem:[#allocation5 + $0xa68] sm:$0xf] }
 0x17c   :  { %4192 = vmatpush.bf16.msra.mxu0 %v5595_v4  ;;  %v6571_v4 = vor.u32 %v7904_v62, %v6570_v61  ;;  %v7828_v52 = vld [vmem:[#allocation5 + $0x974] sm:$0xf0]  ;;  %v6122_v61 = vld [vmem:[#allocation5 + $0x848] sm:$0xf] }
 0x17d   :  { %4205 = vmatpush.bf16.msra.mxu1 %v5723_v7  ;;  %v7868_v7 = vld [vmem:[#allocation5 + $0xab4] sm:$0xf0] }
 0x17e   :  { %4218 = vmatpush.bf16.msra.mxu2 %v5851_v8  ;;  %v6554_v8 = vld [vmem:[#allocation5 + $0xba8] sm:$0xf]  ;;  %v6427_v12 = vor.u32 %v7868_v7, %v6426_v6  ;;  %v7860_v55 = vld [vmem:[#allocation5 + $0xa74] sm:$0xf0] }
 0x17f   :  { %4231 = vmatpush.bf16.msra.mxu3 %v5979_v13  ;;  %v6154_v13 = vld [vmem:[#allocation5 + $0x888] sm:$0xf]  ;;  %v6555_v16 = vor.u32 %v7900_v10, %v6554_v8  ;;  %v7892_v58 = vld [vmem:[#allocation5 + $0xb74] sm:$0xf0]  ;;  %v6395_v60 = vor.u32 %v7860_v55, %v6394_v53 }
 0x180   :  { %4193 = vmatpush.bf16.msra.mxu0 %v5579_v27  ;;  %v3987_v26 = vpop.f32.mrf.mxu0  ;;  %v6538_v27 = vld [vmem:[#allocation5 + $0xb88] sm:$0xf]  ;;  %v6155_v43 = vor.u32 %v7800_v14, %v6154_v13  ;;  %v7792_v62 = vld [vmem:[#allocation5 + $0x854] sm:$0xf0] }
 0x181   :  { %4206 = vmatpush.bf16.msra.mxu1 %v5707_v45  ;;  %v3988_v40 = vadd.f32 %v3987_v26, %v8536_v54  ;;  %v4000_v45 = vpop.f32.mrf.mxu1  ;;  %v7824_v1 = vld [vmem:[#allocation5 + $0x954] sm:$0xf0]  ;;  %v6506_v6 = vld [vmem:[#allocation5 + $0xb48] sm:$0xf]  ;;  %v6123_v10 = vor.u32 %v7792_v62, %v6122_v61 }
 0x182   :  { %4219 = vmatpush.bf16.msra.mxu2 %v5835_v37  ;;  %v6283_v37 = vor.u32 %v7832_v17, %v6282_v15  ;;  %v7856_v3 = vld [vmem:[#allocation5 + $0xa54] sm:$0xf0]  ;;  %v6106_v14 = vld [vmem:[#allocation5 + $0x828] sm:$0xf] }
 0x183   :  { %4232 = vmatpush.bf16.msra.mxu3 %v5963_v48  ;;  %4194 = vmatmul.bf16.vlgmr.msra.gmra.mxu0 %v8457_v41  ;;  %v7796_v48 = vld [vmem:[#allocation5 + $0x874] sm:$0xf0]  ;;  %v6379_v13 = vor.u32 %v7856_v3, %v6378_v2  ;;  %v6970_v62 = vld [vmem:[#allocation5 + $0xee8] sm:$0xf] }
 0x184   :  { %4238 = vmatpush.bf16.msrb.mxu0 %v6203_v49  ;;  %4207 = vmatmul.bf16.vlgmr.msra.gmra.mxu1 %v8461_v44  ;;  %v6266_v49 = vld [vmem:[#allocation5 + $0x968] sm:$0xf]  ;;  %v6139_v59 = vor.u32 %v7796_v48, %v6138_v47  ;;  %v7888_v7 = vld [vmem:[#allocation5 + $0xb54] sm:$0xf0] }
 0x185   :  { %4251 = vmatpush.bf16.msrb.mxu1 %v6331_v50  ;;  %4220 = vmatmul.bf16.vlgmr.msra.gmra.mxu2 %v8455_v38  ;;  %v6539_v50 = vor.u32 %v7896_v34, %v6538_v27  ;;  %v6267_v54 = vor.u32 %v7828_v52, %v6266_v49  ;;  %v7788_v15 = vld [vmem:[#allocation5 + $0x834] sm:$0xf0]  ;;  %v6507_v17 = vor.u32 %v7888_v7, %v6506_v6  ;;  %v6490_v27 = vld [vmem:[#allocation5 + $0xb28] sm:$0xf] }
 0x186   :  { %4264 = vmatpush.bf16.msrb.mxu2 %v6459_v51  ;;  %4233 = vmatmul.bf16.vlgmr.msra.gmra.mxu3 %v8459_v42  ;;  %v4001_v51 = vadd.f32 %v4000_v45, %v3988_v40  ;;  %v7820_v21 = vld [vmem:[#allocation5 + $0x934] sm:$0xf0]  ;;  %v6107_v40 = vor.u32 %v7788_v15, %v6106_v14  ;;  %v6218_v47 = vld [vmem:[#allocation5 + $0x908] sm:$0xf] }
 0x187   :  { %4277 = vmatpush.bf16.msrb.mxu3 %v6587_v56  ;;  %v6522_v56 = vld [vmem:[#allocation5 + $0xb68] sm:$0xf]  ;;  %v7852_v26 = vld [vmem:[#allocation5 + $0xa34] sm:$0xf0] }
 0x188   :  { %4239 = vmatpush.bf16.msrb.mxu0 %v6187_v63  ;;  %v6250_v63 = vld [vmem:[#allocation5 + $0x948] sm:$0xf]  ;;  %v3989_v8 = vpop.f32.mrf.mxu0  ;;  %v7884_v34 = vld [vmem:[#allocation5 + $0xb34] sm:$0xf0] }
 0x189   :  { %4252 = vmatpush.bf16.msrb.mxu1 %v6315_v0  ;;  %v6523_v0 = vor.u32 %v7892_v58, %v6522_v56  ;;  %v4026_v5 = vpop.f32.mrf.mxu3  ;;  %v7784_v45 = vld [vmem:[#allocation5 + $0x814] sm:$0xf0]  ;;  %v6346_v49 = vld [vmem:[#allocation5 + $0xa08] sm:$0xf] }
 0x18a   :  { %4265 = vmatpush.bf16.msrb.mxu2 %v6443_v36  ;;  %v4013_v36 = vpop.f32.mrf.mxu2  ;;  %v7816_v48 = vld [vmem:[#allocation5 + $0x914] sm:$0xf0]  ;;  %v6474_v52 = vld [vmem:[#allocation5 + $0xb08] sm:$0xf] }
 0x18b   :  { %4278 = vmatpush.bf16.msrb.mxu3 %v6571_v4  ;;  %v4014_v4 = vadd.f32 %v4013_v36, %v4001_v51  ;;  %v7848_v51 = vld [vmem:[#allocation5 + $0xa14] sm:$0xf0]  ;;  %v6714_v56 = vld [vmem:[#allocation5 + $0xce8] sm:$0xf] }
 0x18c   :  { %4240 = vmatpush.bf16.msrb.mxu0 %v6171_v11  ;;  %v4002_v11 = vpop.f32.mrf.mxu1  ;;  %v7880_v53 = vld [vmem:[#allocation5 + $0xb14] sm:$0xf0]  ;;  %v6347_v36 = vor.u32 %v7848_v51, %v6346_v49  ;;  %v6698_v7 = vld [vmem:[#allocation5 + $0xcc8] sm:$0xf] }
 0x18d   :  { %4253 = vmatpush.bf16.msrb.mxu1 %v6299_v9  ;;  %v8543_v9 = vadd.f32 %v4026_v5, %v4014_v4  ;;  %v7940_v58 = vld [vmem:[#allocation5 + $0xcf4] sm:$0xf0]  ;;  %v6475_v3 = vor.u32 %v7880_v53, %v6474_v52  ;;  %v7082_v15 = vld [vmem:[#allocation5 + $0xfc8] sm:$0xf] }
 0x18e   :  { %4266 = vmatpush.bf16.msrb.mxu2 %v6427_v12  ;;  %v6251_v12 = vor.u32 %v7824_v1, %v6250_v63  ;;  %v7972_v61 = vld [vmem:[#allocation5 + $0xdf4] sm:$0xf0]  ;;  %v7098_v1 = vld [vmem:[#allocation5 + $0xfe8] sm:$0xf]  ;;  %v6715_v4 = vor.u32 %v7940_v58, %v6714_v56 }
 0x18f   :  { %4279 = vmatpush.bf16.msrb.mxu3 %v6555_v16  ;;  %v6234_v16 = vld [vmem:[#allocation5 + $0x928] sm:$0xf]  ;;  %v8004_v63 = vld [vmem:[#allocation5 + $0xef4] sm:$0xf0] }
 0x190   :  { %4241 = vmatpush.bf16.msrb.mxu0 %v6155_v43  ;;  %v6090_v43 = vld [vmem:[#allocation5 + $0x808] sm:$0xf]  ;;  %v8036_v2 = vld [vmem:[#allocation5 + $0xff4] sm:$0xf0]  ;;  %v6971_v6 = vor.u32 %v8004_v63, %v6970_v62 }
 0x191   :  { %4254 = vmatpush.bf16.msrb.mxu1 %v6283_v37  ;;  %v6235_v37 = vor.u32 %v7820_v21, %v6234_v16  ;;  %v7936_v8 = vld [vmem:[#allocation5 + $0xcd4] sm:$0xf0]  ;;  %v7099_v11 = vor.u32 %v8036_v2, %v7098_v1  ;;  %v6666_v51 = vld [vmem:[#allocation5 + $0xc88] sm:$0xf] }
 0x192   :  { %4267 = vmatpush.bf16.msrb.mxu2 %v6411_v46  ;;  %v6363_v46 = vor.u32 %v7852_v26, %v6362_v24  ;;  %v4015_v55 = vpop.f32.mrf.mxu2  ;;  %v8000_v14 = vld [vmem:[#allocation5 + $0xed4] sm:$0xf0]  ;;  %v6682_v26 = vld [vmem:[#allocation5 + $0xca8] sm:$0xf] }
 0x193   :  { %4280 = vmatpush.bf16.msrb.mxu3 %v6539_v50  ;;  %v6491_v50 = vor.u32 %v7884_v34, %v6490_v27  ;;  %v8032_v16 = vld [vmem:[#allocation5 + $0xfd4] sm:$0xf0]  ;;  %v6810_v34 = vld [vmem:[#allocation5 + $0xda8] sm:$0xf] }
 0x194   :  { %4242 = vmatpush.bf16.msrb.mxu0 %v6139_v59  ;;  %v6842_v59 = vld [vmem:[#allocation5 + $0xde8] sm:$0xf]  ;;  %v7932_v27 = vld [vmem:[#allocation5 + $0xcb4] sm:$0xf0] }
 0x195   :  { %4255 = vmatpush.bf16.msrb.mxu1 %v6267_v54  ;;  %v4028_v54 = vpop.f32.mrf.mxu3  ;;  %v6843_v5 = vor.u32 %v7972_v61, %v6842_v59  ;;  %v7928_v52 = vld [vmem:[#allocation5 + $0xc94] sm:$0xf0]  ;;  %v6794_v53 = vld [vmem:[#allocation5 + $0xd88] sm:$0xf] }
 0x196   :  { %4268 = vmatpush.bf16.msrb.mxu2 %v6395_v60  ;;  %v6091_v60 = vor.u32 %v7784_v45, %v6090_v43  ;;  %v7964_v43 = vld [vmem:[#allocation5 + $0xdb4] sm:$0xf0]  ;;  %v6938_v45 = vld [vmem:[#allocation5 + $0xea8] sm:$0xf]  ;;  %v6667_v63 = vor.u32 %v7928_v52, %v6666_v51 }
 0x197   :  { %4281 = vmatpush.bf16.msrb.mxu3 %v6523_v0  ;;  %v6219_v0 = vor.u32 %v7816_v48, %v6218_v47  ;;  %v8028_v47 = vld [vmem:[#allocation5 + $0xfb4] sm:$0xf0]  ;;  %v6683_v48 = vor.u32 %v7932_v27, %v6682_v26  ;;  %v6811_v49 = vor.u32 %v7964_v43, %v6810_v34  ;;  %v6922_v58 = vld [vmem:[#allocation5 + $0xe88] sm:$0xf] }
 0x198   :  { %4243 = vmatpush.bf16.msrb.mxu0 %v6123_v10  ;;  %v6826_v10 = vld [vmem:[#allocation5 + $0xdc8] sm:$0xf]  ;;  %v7960_v56 = vld [vmem:[#allocation5 + $0xd94] sm:$0xf0] }
 0x199   :  { %4256 = vmatpush.bf16.msrb.mxu1 %v6251_v12  ;;  %v7968_v12 = vld [vmem:[#allocation5 + $0xdd4] sm:$0xf0]  ;;  %v6650_v2 = vld [vmem:[#allocation5 + $0xc68] sm:$0xf] }
 0x19a   :  { %4269 = vmatpush.bf16.msrb.mxu2 %v6379_v13  ;;  %v6954_v13 = vld [vmem:[#allocation5 + $0xec8] sm:$0xf]  ;;  %v6827_v21 = vor.u32 %v7968_v12, %v6826_v10  ;;  %v7992_v59 = vld [vmem:[#allocation5 + $0xe94] sm:$0xf0] }
 0x19b   :  { %4282 = vmatpush.bf16.msrb.mxu3 %v6507_v17  ;;  %v6699_v17 = vor.u32 %v7936_v8, %v6698_v7  ;;  %v6955_v24 = vor.u32 %v8000_v14, %v6954_v13  ;;  %v8024_v61 = vld [vmem:[#allocation5 + $0xf94] sm:$0xf0]  ;;  %v6923_v1 = vor.u32 %v7992_v59, %v6922_v58  ;;  %v6906_v8 = vld [vmem:[#allocation5 + $0xe68] sm:$0xf] }
 0x19c   :  { %4244 = vmatpush.bf16.msrb.mxu0 %v6107_v40  ;;  %v7083_v40 = vor.u32 %v8032_v16, %v7082_v15  ;;  %v7956_v7 = vld [vmem:[#allocation5 + $0xd74] sm:$0xf0]  ;;  %v6634_v15 = vld [vmem:[#allocation5 + $0xc48] sm:$0xf] }
 0x19d   :  { %4257 = vmatpush.bf16.msrb.mxu1 %v6235_v37  ;;  %v7996_v37 = vld [vmem:[#allocation5 + $0xeb4] sm:$0xf0]  ;;  %v6890_v27 = vld [vmem:[#allocation5 + $0xe48] sm:$0xf] }
 0x19e   :  { %4270 = vmatpush.bf16.msrb.mxu2 %v6363_v46  ;;  %v7066_v46 = vld [vmem:[#allocation5 + $0xfa8] sm:$0xf]  ;;  %v7988_v10 = vld [vmem:[#allocation5 + $0xe74] sm:$0xf0] }
 0x19f   :  { %4283 = vmatpush.bf16.msrb.mxu3 %v6491_v50  ;;  %v6939_v50 = vor.u32 %v7996_v37, %v6938_v45  ;;  %v7067_v55 = vor.u32 %v8028_v47, %v7066_v46  ;;  %v8020_v12 = vld [vmem:[#allocation5 + $0xf74] sm:$0xf0]  ;;  %v6907_v14 = vor.u32 %v7988_v10, %v6906_v8  ;;  %v7018_v45 = vld [vmem:[#allocation5 + $0xf48] sm:$0xf] }
 0x1a0   :  { %4245 = vmatpush.bf16.msrb.mxu0 %v6091_v60  ;;  %v4039_v54 = vpop.f32.mrf.mxu0  ;;  %v7050_v60 = vld [vmem:[#allocation5 + $0xf88] sm:$0xf]  ;;  %v7920_v16 = vld [vmem:[#allocation5 + $0xc54] sm:$0xf0] }
 0x1a1   :  { %4258 = vmatpush.bf16.msrb.mxu1 %v6219_v0  ;;  %v4040_v62 = vadd.f32 %v4039_v54, %v8543_v9  ;;  %v4052_v0 = vpop.f32.mrf.mxu1  ;;  %v7952_v26 = vld [vmem:[#allocation5 + $0xd54] sm:$0xf0]  ;;  %v6635_v47 = vor.u32 %v7920_v16, %v6634_v15  ;;  %v6618_v52 = vld [vmem:[#allocation5 + $0xc28] sm:$0xf]  ;;  %v7554_v16 = vld [vmem:[#allocation5 + $0xec] sm:$0xf] }
 0x1a2   :  { %4271 = vmatpush.bf16.msrb.mxu2 %v6347_v36  ;;  %v6795_v36 = vor.u32 %v7960_v56, %v6794_v53  ;;  %v7984_v34 = vld [vmem:[#allocation5 + $0xe54] sm:$0xf0]  ;;  %v6874_v59 = vld [vmem:[#allocation5 + $0xe28] sm:$0xf] }
 0x1a3   :  { %4284 = vmatpush.bf16.msrb.mxu3 %v6475_v3  ;;  %4246 = vmatmul.bf16.vlgmr.msrb.gmra.mxu0 %v8467_v25  ;;  %v7924_v3 = vld [vmem:[#allocation5 + $0xc74] sm:$0xf0]  ;;  %v6891_v51 = vor.u32 %v7984_v34, %v6890_v27  ;;  %v5308_v27 = vld [vmem:[#allocation5 + $0x1f8] sm:$0xf0] }
 0x1a4   :  { %4290 = vmatpush.bf16.msra.mxu0 %v6715_v4  ;;  %4259 = vmatmul.bf16.vlgmr.msrb.gmra.mxu1 %v8471_v30  ;;  %v6778_v4 = vld [vmem:[#allocation5 + $0xd68] sm:$0xf]  ;;  %v6651_v13 = vor.u32 %v7924_v3, %v6650_v2  ;;  %v8016_v37 = vld [vmem:[#allocation5 + $0xf54] sm:$0xf0] }
 0x1a5   :  { %4303 = vmatpush.bf16.msra.mxu1 %v6843_v5  ;;  %4272 = vmatmul.bf16.vlgmr.msrb.gmra.mxu2 %v8469_v29  ;;  %v7051_v5 = vor.u32 %v8024_v61, %v7050_v60  ;;  %v6779_v9 = vor.u32 %v7956_v7, %v6778_v4  ;;  %v7916_v53 = vld [vmem:[#allocation5 + $0xc34] sm:$0xf0]  ;;  %v7019_v56 = vor.u32 %v8016_v37, %v7018_v45  ;;  %v7002_v60 = vld [vmem:[#allocation5 + $0xf28] sm:$0xf] }
 0x1a6   :  { %4316 = vmatpush.bf16.msra.mxu2 %v6971_v6  ;;  %4285 = vmatmul.bf16.vlgmr.msrb.gmra.mxu3 %v8473_v33  ;;  %v4053_v6 = vadd.f32 %v4052_v0, %v4040_v62  ;;  %v7948_v58 = vld [vmem:[#allocation5 + $0xd34] sm:$0xf0]  ;;  %v6619_v62 = vor.u32 %v7916_v53, %v6618_v52  ;;  %v6730_v2 = vld [vmem:[#allocation5 + $0xd08] sm:$0xf]  ;;  %v5164_v52 = vld [vmem:[#allocation5 + $0xd8] sm:$0xf0] }
 0x1a7   :  { %4329 = vmatpush.bf16.msra.mxu3 %v7099_v11  ;;  %v7034_v11 = vld [vmem:[#allocation5 + $0xf68] sm:$0xf]  ;;  %v7980_v54 = vld [vmem:[#allocation5 + $0xe34] sm:$0xf0]  ;;  %v7582_v53 = vld [vmem:[#allocation5 + $0x1cc] sm:$0xf] }
 0x1a8   :  { %4291 = vmatpush.bf16.msra.mxu0 %v6699_v17  ;;  %v6762_v17 = vld [vmem:[#allocation5 + $0xd48] sm:$0xf]  ;;  %v4041_v46 = vpop.f32.mrf.mxu0  ;;  %v8012_v61 = vld [vmem:[#allocation5 + $0xf34] sm:$0xf0] }
 0x1a9   :  { %4304 = vmatpush.bf16.msra.mxu1 %v6827_v21  ;;  %v7035_v21 = vor.u32 %v8020_v12, %v7034_v11  ;;  %v4078_v43 = vpop.f32.mrf.mxu3  ;;  %v7912_v0 = vld [vmem:[#allocation5 + $0xc14] sm:$0xf0]  ;;  %v6858_v4 = vld [vmem:[#allocation5 + $0xe08] sm:$0xf] }
 0x1aa   :  { %4317 = vmatpush.bf16.msra.mxu2 %v6955_v24  ;;  %v4065_v24 = vpop.f32.mrf.mxu2  ;;  %v7944_v3 = vld [vmem:[#allocation5 + $0xd14] sm:$0xf0]  ;;  %v6986_v7 = vld [vmem:[#allocation5 + $0xf08] sm:$0xf] }
 0x1ab   :  { %4330 = vmatpush.bf16.msra.mxu3 %v7083_v40  ;;  %v4066_v40 = vadd.f32 %v4065_v24, %v4053_v6  ;;  %v7976_v6 = vld [vmem:[#allocation5 + $0xe14] sm:$0xf0]  ;;  %v7226_v11 = vld [vmem:[#allocation5 + $0x10e8] sm:$0xf] }
 0x1ac   :  { %4292 = vmatpush.bf16.msra.mxu0 %v6683_v48  ;;  %v4054_v48 = vpop.f32.mrf.mxu1  ;;  %v8008_v8 = vld [vmem:[#allocation5 + $0xf14] sm:$0xf0]  ;;  %v6859_v24 = vor.u32 %v7976_v6, %v6858_v4  ;;  %v7210_v37 = vld [vmem:[#allocation5 + $0x10c8] sm:$0xf] }
 0x1ad   :  { %4305 = vmatpush.bf16.msra.mxu1 %v6811_v49  ;;  %v8550_v49 = vadd.f32 %v4078_v43, %v4066_v40  ;;  %v8068_v12 = vld [vmem:[#allocation5 + $0x10f4] sm:$0xf0]  ;;  %v6987_v34 = vor.u32 %v8008_v8, %v6986_v7  ;;  %v7178_v6 = vld [vmem:[#allocation5 + $0x1088] sm:$0xf] }
 0x1ae   :  { %4318 = vmatpush.bf16.msra.mxu2 %v6939_v50  ;;  %v6763_v50 = vor.u32 %v7952_v26, %v6762_v17  ;;  %v8100_v15 = vld [vmem:[#allocation5 + $0x11f4] sm:$0xf0]  ;;  %v5180_v17 = vld [vmem:[#allocation5 + $0xf8] sm:$0xf0]  ;;  %v7586_v26 = vld [vmem:[#allocation5 + $0x1ec] sm:$0xf]  ;;  %v7227_v40 = vor.u32 %v8068_v12, %v7226_v11 }
 0x1af   :  { %4331 = vmatpush.bf16.msra.mxu3 %v7067_v55  ;;  %v6746_v55 = vld [vmem:[#allocation5 + $0xd28] sm:$0xf]  ;;  %v5183_v45 = vor.u32 %v7554_v16, %v5180_v17  ;;  %v8064_v46 = vld [vmem:[#allocation5 + $0x10d4] sm:$0xf0]  ;;  %v5311_v48 = vor.u32 %v7586_v26, %v5308_v27  ;;  %v7542_v12 = vld [vmem:[#allocation5 + $0x8c] sm:$0xf] }
 0x1b0   :  { %4293 = vmatpush.bf16.msra.mxu0 %v6667_v63  ;;  %v6602_v63 = vld [vmem:[#allocation5 + $0xc08] sm:$0xf]  ;;  %v8056_v7 = vld [vmem:[#allocation5 + $0x1094] sm:$0xf0] }
 0x1b1   :  { %4306 = vmatpush.bf16.msra.mxu1 %v6795_v36  ;;  %v6747_v36 = vor.u32 %v7948_v58, %v6746_v55  ;;  %v5292_v55 = vld [vmem:[#allocation5 + $0x1d8] sm:$0xf0]  ;;  %v7306_v8 = vld [vmem:[#allocation5 + $0x1188] sm:$0xf]  ;;  %v8088_v11 = vld [vmem:[#allocation5 + $0x1194] sm:$0xf0]  ;;  %v7179_v17 = vor.u32 %v8056_v7, %v7178_v6 }
 0x1b2   :  { %4319 = vmatpush.bf16.msra.mxu2 %v6923_v1  ;;  %v6875_v1 = vor.u32 %v7980_v54, %v6874_v59  ;;  %v4067_v10 = vpop.f32.mrf.mxu2  ;;  %v7194_v54 = vld [vmem:[#allocation5 + $0x10a8] sm:$0xf] }
 0x1b3   :  { %4332 = vmatpush.bf16.msra.mxu3 %v7051_v5  ;;  %v7003_v5 = vor.u32 %v8012_v61, %v7002_v60  ;;  %v8060_v60 = vld [vmem:[#allocation5 + $0x10b4] sm:$0xf0]  ;;  %v7322_v61 = vld [vmem:[#allocation5 + $0x11a8] sm:$0xf] }
 0x1b4   :  { %4294 = vmatpush.bf16.msra.mxu0 %v6651_v13  ;;  %v7354_v13 = vld [vmem:[#allocation5 + $0x11e8] sm:$0xf] }
 0x1b5   :  { %4307 = vmatpush.bf16.msra.mxu1 %v6779_v9  ;;  %v4080_v9 = vpop.f32.mrf.mxu3  ;;  %v7355_v43 = vor.u32 %v8100_v15, %v7354_v13  ;;  %v5132_v13 = vld [vmem:[#allocation5 + $0x98] sm:$0xf0]  ;;  %v7162_v27 = vld [vmem:[#allocation5 + $0x1068] sm:$0xf] }
 0x1b6   :  { %4320 = vmatpush.bf16.msra.mxu2 %v6907_v14  ;;  %v6603_v14 = vor.u32 %v7912_v0, %v6602_v63  ;;  %v8092_v63 = vld [vmem:[#allocation5 + $0x11b4] sm:$0xf0]  ;;  %v7546_v0 = vld [vmem:[#allocation5 + $0xac] sm:$0xf]  ;;  %v5260_v15 = vld [vmem:[#allocation5 + $0x198] sm:$0xf0]  ;;  %v5135_v26 = vor.u32 %v7542_v12, %v5132_v13 }
 0x1b7   :  { %4333 = vmatpush.bf16.msra.mxu3 %v7035_v21  ;;  %v6731_v21 = vor.u32 %v7944_v3, %v6730_v2  ;;  %v5276_v2 = vld [vmem:[#allocation5 + $0x1b8] sm:$0xf0]  ;;  %v7195_v3 = vor.u32 %v8060_v60, %v7194_v54  ;;  %v7323_v4 = vor.u32 %v8092_v63, %v7322_v61  ;;  %v8080_v54 = vld [vmem:[#allocation5 + $0x1154] sm:$0xf0]  ;;  %v7534_v60 = vld [vmem:[#allocation5 + $0x4c] sm:$0xf] }
 0x1b8   :  { %4295 = vmatpush.bf16.msra.mxu0 %v6635_v47  ;;  %v7338_v47 = vld [vmem:[#allocation5 + $0x11c8] sm:$0xf]  ;;  %v5100_v61 = vld [vmem:[#allocation5 + $0x58] sm:$0xf0]  ;;  %v8076_v12 = vld [vmem:[#allocation5 + $0x1134] sm:$0xf0] }
 0x1b9   :  { %4308 = vmatpush.bf16.msra.mxu1 %v6763_v50  ;;  %v8096_v50 = vld [vmem:[#allocation5 + $0x11d4] sm:$0xf0]  ;;  %v5103_v6 = vor.u32 %v7534_v60, %v5100_v61  ;;  %v7130_v7 = vld [vmem:[#allocation5 + $0x1028] sm:$0xf]  ;;  %v7530_v13 = vld [vmem:[#allocation5 + $0x2c] sm:$0xf] }
 0x1ba   :  { %4321 = vmatpush.bf16.msra.mxu2 %v6891_v51  ;;  %v7550_v51 = vld [vmem:[#allocation5 + $0xcc] sm:$0xf]  ;;  %v7339_v58 = vor.u32 %v8096_v50, %v7338_v47  ;;  %v5116_v47 = vld [vmem:[#allocation5 + $0x78] sm:$0xf0] }
 0x1bb   :  { %4334 = vmatpush.bf16.msra.mxu3 %v7019_v56  ;;  %v7211_v56 = vor.u32 %v8064_v46, %v7210_v37  ;;  %v5167_v59 = vor.u32 %v7550_v51, %v5164_v52  ;;  %v8084_v37 = vld [vmem:[#allocation5 + $0x1174] sm:$0xf0]  ;;  %v7538_v46 = vld [vmem:[#allocation5 + $0x6c] sm:$0xf]  ;;  %v5244_v50 = vld [vmem:[#allocation5 + $0x178] sm:$0xf0] }
 0x1bc   :  { %4296 = vmatpush.bf16.msra.mxu0 %v6619_v62  ;;  %v5295_v62 = vor.u32 %v7582_v53, %v5292_v55  ;;  %v5119_v52 = vor.u32 %v7538_v46, %v5116_v47  ;;  %v7146_v53 = vld [vmem:[#allocation5 + $0x1048] sm:$0xf]  ;;  %v8048_v55 = vld [vmem:[#allocation5 + $0x1054] sm:$0xf0]  ;;  %v5196_v46 = vld [vmem:[#allocation5 + $0x118] sm:$0xf0] }
 0x1bd   :  { %4309 = vmatpush.bf16.msra.mxu1 %v6747_v36  ;;  %v5148_v36 = vld [vmem:[#allocation5 + $0xb8] sm:$0xf0] }
 0x1be   :  { %4322 = vmatpush.bf16.msra.mxu2 %v6875_v1  ;;  %v7578_v1 = vld [vmem:[#allocation5 + $0x1ac] sm:$0xf]  ;;  %v5820_v60 = vld [vmem:[#allocation5 + $0x5f8] sm:$0xf0] }
 0x1bf   :  { %4335 = vmatpush.bf16.msra.mxu3 %v7003_v5  ;;  %v5151_v5 = vor.u32 %v7546_v0, %v5148_v36  ;;  %v5279_v10 = vor.u32 %v7578_v1, %v5276_v2  ;;  %v7566_v0 = vld [vmem:[#allocation5 + $0x14c] sm:$0xf]  ;;  %v5228_v36 = vld [vmem:[#allocation5 + $0x158] sm:$0xf0]  ;;  %v7147_v2 = vor.u32 %v8048_v55, %v7146_v53 }
 0x1c0   :  { %4297 = vmatpush.bf16.msra.mxu0 %v6603_v14  ;;  %v4091_v9 = vpop.f32.mrf.mxu0  ;;  %v7574_v14 = vld [vmem:[#allocation5 + $0x18c] sm:$0xf]  ;;  %v5564_v53 = vld [vmem:[#allocation5 + $0x3f8] sm:$0xf0] }
 0x1c1   :  { %4310 = vmatpush.bf16.msra.mxu1 %v6731_v21  ;;  %v4092_v16 = vadd.f32 %v4091_v9, %v8550_v49  ;;  %v4104_v21 = vpop.f32.mrf.mxu1  ;;  %v5084_v9 = vld [vmem:[#allocation5 + $0x38] sm:$0xf0]  ;;  %v7682_v55 = vld [vmem:[#allocation5 + $0x4ec] sm:$0xf] }
 0x1c2   :  { %4323 = vmatpush.bf16.msra.mxu2 %v6859_v24  ;;  %v7307_v24 = vor.u32 %v8088_v11, %v7306_v8  ;;  %v8044_v8 = vld [vmem:[#allocation5 + $0x1034] sm:$0xf0]  ;;  %v5231_v11 = vor.u32 %v7566_v0, %v5228_v36  ;;  %v7614_v36 = vld [vmem:[#allocation5 + $0x2cc] sm:$0xf] }
 0x1c3   :  { %4336 = vmatpush.bf16.msra.mxu3 %v6987_v34  ;;  %4298 = vmatmul.bf16.vlgmr.msra.gmra.mxu0 %v8479_v23  ;;  %v8052_v34 = vld [vmem:[#allocation5 + $0x1074] sm:$0xf0] }
 0x1c4   :  { %4342 = vmatpush.bf16.msrb.mxu0 %v7227_v40  ;;  %4311 = vmatmul.bf16.vlgmr.msra.gmra.mxu1 %v8483_v31  ;;  %v7290_v40 = vld [vmem:[#allocation5 + $0x1168] sm:$0xf]  ;;  %v7163_v51 = vor.u32 %v8052_v34, %v7162_v27  ;;  %v8072_v34 = vld [vmem:[#allocation5 + $0x1114] sm:$0xf0] }
 0x1c5   :  { %4355 = vmatpush.bf16.msrb.mxu1 %v7355_v43  ;;  %4324 = vmatmul.bf16.vlgmr.msra.gmra.mxu2 %v8481_v28  ;;  %v5263_v43 = vor.u32 %v7574_v14, %v5260_v15  ;;  %v7291_v49 = vor.u32 %v8084_v37, %v7290_v40  ;;  %v7562_v14 = vld [vmem:[#allocation5 + $0x12c] sm:$0xf]  ;;  %v5212_v15 = vld [vmem:[#allocation5 + $0x138] sm:$0xf0]  ;;  %v7242_v27 = vld [vmem:[#allocation5 + $0x1108] sm:$0xf] }
 0x1c6   :  { %4368 = vmatpush.bf16.msrb.mxu2 %v5183_v45  ;;  %4337 = vmatmul.bf16.vlgmr.msra.gmra.mxu3 %v8485_v35  ;;  %v4105_v45 = vadd.f32 %v4104_v21, %v4092_v16  ;;  %v7131_v16 = vor.u32 %v8044_v8, %v7130_v7  ;;  %v8040_v21 = vld [vmem:[#allocation5 + $0x1014] sm:$0xf0]  ;;  %v7526_v40 = vld [vmem:[#allocation5 + $0xc] sm:$0xf]  ;;  %v5676_v7 = vld [vmem:[#allocation5 + $0x4d8] sm:$0xf0] }
 0x1c7   :  { %4381 = vmatpush.bf16.msrb.mxu3 %v5311_v48  ;;  %v7570_v48 = vld [vmem:[#allocation5 + $0x16c] sm:$0xf] }
 0x1c8   :  { %4343 = vmatpush.bf16.msrb.mxu0 %v7211_v56  ;;  %v7274_v56 = vld [vmem:[#allocation5 + $0x1148] sm:$0xf]  ;;  %v4093_v1 = vpop.f32.mrf.mxu0  ;;  %v7558_v37 = vld [vmem:[#allocation5 + $0x10c] sm:$0xf] }
 0x1c9   :  { %4356 = vmatpush.bf16.msrb.mxu1 %v7339_v58  ;;  %v5247_v58 = vor.u32 %v7570_v48, %v5244_v50  ;;  %v4130_v63 = vpop.f32.mrf.mxu3  ;;  %v7618_v48 = vld [vmem:[#allocation5 + $0x2ec] sm:$0xf]  ;;  %v5436_v50 = vld [vmem:[#allocation5 + $0x2f8] sm:$0xf0]  ;;  %v5199_v61 = vor.u32 %v7558_v37, %v5196_v46 }
 0x1ca   :  { %4369 = vmatpush.bf16.msrb.mxu2 %v5167_v59  ;;  %v4117_v59 = vpop.f32.mrf.mxu2  ;;  %v5420_v1 = vld [vmem:[#allocation5 + $0x2d8] sm:$0xf0]  ;;  %v7710_v8 = vld [vmem:[#allocation5 + $0x5cc] sm:$0xf] }
 0x1cb   :  { %4382 = vmatpush.bf16.msrb.mxu3 %v5295_v62  ;;  %v4118_v62 = vadd.f32 %v4117_v59, %v4105_v45  ;;  %v5068_v45 = vld [vmem:[#allocation5 + $0x18] sm:$0xf0]  ;;  %v7638_v46 = vld [vmem:[#allocation5 + $0x38c] sm:$0xf] }
 0x1cc   :  { %4344 = vmatpush.bf16.msrb.mxu0 %v7195_v3  ;;  %v4106_v3 = vpop.f32.mrf.mxu1  ;;  %v5071_v59 = vor.u32 %v7526_v40, %v5068_v45  ;;  %v7606_v40 = vld [vmem:[#allocation5 + $0x28c] sm:$0xf]  ;;  %v5388_v37 = vld [vmem:[#allocation5 + $0x298] sm:$0xf0] }
 0x1cd   :  { %4357 = vmatpush.bf16.msrb.mxu1 %v7323_v4  ;;  %v8557_v4 = vadd.f32 %v4130_v63, %v4118_v62  ;;  %v5439_v62 = vor.u32 %v7618_v48, %v5436_v50 }
 0x1ce   :  { %4370 = vmatpush.bf16.msrb.mxu2 %v5151_v5  ;;  %v7275_v5 = vor.u32 %v8080_v54, %v7274_v56  ;;  %v5692_v56 = vld [vmem:[#allocation5 + $0x4f8] sm:$0xf0]  ;;  %v7714_v54 = vld [vmem:[#allocation5 + $0x5ec] sm:$0xf] }
 0x1cf   :  { %4383 = vmatpush.bf16.msrb.mxu3 %v5279_v10  ;;  %v7258_v10 = vld [vmem:[#allocation5 + $0x1128] sm:$0xf]  ;;  %v5695_v0 = vor.u32 %v7682_v55, %v5692_v56  ;;  %v5823_v3 = vor.u32 %v7714_v54, %v5820_v60  ;;  %v5391_v55 = vor.u32 %v7606_v40, %v5388_v37  ;;  %v5372_v54 = vld [vmem:[#allocation5 + $0x278] sm:$0xf0]  ;;  %v7634_v60 = vld [vmem:[#allocation5 + $0x36c] sm:$0xf] }
 0x1d0   :  { %4345 = vmatpush.bf16.msrb.mxu0 %v7179_v17  ;;  %v7114_v17 = vld [vmem:[#allocation5 + $0x1008] sm:$0xf]  ;;  %v7594_v37 = vld [vmem:[#allocation5 + $0x22c] sm:$0xf]  ;;  %vm4603_vm1 = vcmp.gt.f32.partialorder %v8557_v4, 0.0 }
 0x1d1   :  { %4358 = vmatpush.bf16.msrb.mxu1 %v7307_v24  ;;  %v7259_v24 = vor.u32 %v8076_v12, %v7258_v10  ;;  %v5804_v10 = vld [vmem:[#allocation5 + $0x5d8] sm:$0xf0] }
 0x1d2   :  { %4371 = vmatpush.bf16.msrb.mxu2 %v5135_v26  ;;  %v5087_v26 = vor.u32 %v7530_v13, %v5084_v9  ;;  %v4119_v47 = vpop.f32.mrf.mxu2  ;;  %v7610_v9 = vld [vmem:[#allocation5 + $0x2ac] sm:$0xf] }
 0x1d3   :  { %4384 = vmatpush.bf16.msrb.mxu3 %v5263_v43  ;;  %v5215_v43 = vor.u32 %v7562_v14, %v5212_v15  ;;  %v5404_v14 = vld [vmem:[#allocation5 + $0x2b8] sm:$0xf0]  ;;  %v7642_v15 = vld [vmem:[#allocation5 + $0x3ac] sm:$0xf]  ;;  %v8166_v47 = vld [vmem:[#allocation7] sm:$0xf] }
 0x1d4   :  { %4346 = vmatpush.bf16.msrb.mxu0 %v7163_v51  ;;  %v7650_v51 = vld [vmem:[#allocation5 + $0x3ec] sm:$0xf]  ;;  %v717_v48 = vperm.slane %v8166_v47, 2 }
 0x1d5   :  { %4359 = vmatpush.bf16.msrb.mxu1 %v7291_v49  ;;  %v4132_v49 = vpop.f32.mrf.mxu3  ;;  %v5567_v63 = vor.u32 %v7650_v51, %v5564_v53  ;;  %v5516_v51 = vld [vmem:[#allocation5 + $0x398] sm:$0xf0]  ;;  %v7702_v53 = vld [vmem:[#allocation5 + $0x58c] sm:$0xf] }
 0x1d6   :  { %4372 = vmatpush.bf16.msrb.mxu2 %v5119_v52  ;;  %v7115_v52 = vor.u32 %v8040_v21, %v7114_v17  ;;  %v5532_v17 = vld [vmem:[#allocation5 + $0x3b8] sm:$0xf0]  ;;  %v7674_v21 = vld [vmem:[#allocation5 + $0x4ac] sm:$0xf] }
 0x1d7   :  { %4385 = vmatpush.bf16.msrb.mxu3 %v5247_v58  ;;  %v7243_v58 = vor.u32 %v8072_v34, %v7242_v27  ;;  %v5788_v27 = vld [vmem:[#allocation5 + $0x5b8] sm:$0xf0]  ;;  %v5407_v34 = vor.u32 %v7610_v9, %v5404_v14  ;;  %v7670_v49 = vld [vmem:[#allocation5 + $0x48c] sm:$0xf] }
 0x1d8   :  { %4347 = vmatpush.bf16.msrb.mxu0 %v7147_v2  ;;  %v7646_v2 = vld [vmem:[#allocation5 + $0x3cc] sm:$0xf]  ;;  %v5484_v14 = vld [vmem:[#allocation5 + $0x358] sm:$0xf0] }
 0x1d9   :  { %4360 = vmatpush.bf16.msrb.mxu1 %v7275_v5  ;;  %v5548_v5 = vld [vmem:[#allocation5 + $0x3d8] sm:$0xf0]  ;;  %v7626_v47 = vld [vmem:[#allocation5 + $0x32c] sm:$0xf] }
 0x1da   :  { %4373 = vmatpush.bf16.msrb.mxu2 %v5103_v6  ;;  %v7678_v6 = vld [vmem:[#allocation5 + $0x4cc] sm:$0xf]  ;;  %v5551_v12 = vor.u32 %v7646_v2, %v5548_v5 }
 0x1db   :  { %4386 = vmatpush.bf16.msrb.mxu3 %v5231_v11  ;;  %v5423_v11 = vor.u32 %v7614_v36, %v5420_v1  ;;  %v5679_v13 = vor.u32 %v7678_v6, %v5676_v7  ;;  %v7666_v36 = vld [vmem:[#allocation5 + $0x46c] sm:$0xf]  ;;  %v5628_v1 = vld [vmem:[#allocation5 + $0x478] sm:$0xf0] }
 0x1dc   :  { %4348 = vmatpush.bf16.msrb.mxu0 %v7131_v16  ;;  %v5807_v16 = vor.u32 %v7710_v8, %v5804_v10  ;;  %v7698_v2 = vld [vmem:[#allocation5 + $0x56c] sm:$0xf]  ;;  %v5631_v8 = vor.u32 %v7666_v36, %v5628_v1  ;;  %v5708_v1 = vld [vmem:[#allocation5 + $0x518] sm:$0xf0] }
 0x1dd   :  { %4361 = vmatpush.bf16.msrb.mxu1 %v7259_v24  ;;  %v5660_v24 = vld [vmem:[#allocation5 + $0x4b8] sm:$0xf0]  ;;  %v7598_v10 = vld [vmem:[#allocation5 + $0x24c] sm:$0xf] }
 0x1de   :  { %4374 = vmatpush.bf16.msrb.mxu2 %v5087_v26  ;;  %v7706_v26 = vld [vmem:[#allocation5 + $0x5ac] sm:$0xf]  ;;  %v5663_v45 = vor.u32 %v7674_v21, %v5660_v24 }
 0x1df   :  { %4387 = vmatpush.bf16.msrb.mxu3 %v5215_v43  ;;  %v5535_v43 = vor.u32 %v7642_v15, %v5532_v17  ;;  %v5791_v50 = vor.u32 %v7706_v26, %v5788_v27  ;;  %v7662_v15 = vld [vmem:[#allocation5 + $0x44c] sm:$0xf]  ;;  %v5740_v26 = vld [vmem:[#allocation5 + $0x558] sm:$0xf0] }
 0x1e0   :  { %4349 = vmatpush.bf16.msrb.mxu0 %v7115_v52  ;;  %v5644_v52 = vld [vmem:[#allocation5 + $0x498] sm:$0xf0]  ;;  %v4143_v56 = vpop.f32.mrf.mxu0  ;;  %v7694_v24 = vld [vmem:[#allocation5 + $0x54c] sm:$0xf] }
 0x1e1   :  { %4362 = vmatpush.bf16.msrb.mxu1 %v7243_v58  ;;  %v5647_v58 = vor.u32 %v7670_v49, %v5644_v52  ;;  %v7658_v49 = vld [vmem:[#allocation5 + $0x42c] sm:$0xf]  ;;  %v5596_v52 = vld [vmem:[#allocation5 + $0x438] sm:$0xf0] }
 0x1e2   :  { %4375 = vmatpush.bf16.msrb.mxu2 %v5071_v59  ;;  %v7602_v59 = vld [vmem:[#allocation5 + $0x26c] sm:$0xf] }
 0x1e3   :  { %4388 = vmatpush.bf16.msrb.mxu3 %v5199_v61  ;;  %4350 = vmatmul.bf16.vlgmr.msrb.gmra.mxu0 %v8491_v32  ;;  %v4144_v61 = vadd.f32 %v4143_v56, %v717_v48  ;;  %v5375_v6 = vor.u32 %v7602_v59, %v5372_v54  ;;  %v7590_v56 = vld [vmem:[#allocation5 + $0x20c] sm:$0xf]  ;;  %v5599_v59 = vor.u32 %v7658_v49, %v5596_v52  ;;  %v5916_v52 = vld [vmem:[#allocation5 + $0x6b8] sm:$0xf0] }
 0x1e4   :  { %4394 = vmatpush.bf16.msra.mxu0 %v5439_v62  ;;  %4363 = vmatmul.bf16.vlgmr.msrb.gmra.mxu1 %v8493_v39  ;;  %v4156_v62 = vpop.f32.mrf.mxu1  ;;  %v7622_v54 = vld [vmem:[#allocation5 + $0x30c] sm:$0xf] }
 0x1e5   :  { %4407 = vmatpush.bf16.msra.mxu1 %v5567_v63  ;;  %4376 = vmatmul.bf16.vlgmr.msrb.gmra.mxu2 %v8445_v19  ;;  %v5772_v19 = vld [vmem:[#allocation5 + $0x598] sm:$0xf0]  ;;  %v4157_v5 = vadd.f32 %v4156_v62, %v4144_v61  ;;  %v7654_v61 = vld [vmem:[#allocation5 + $0x40c] sm:$0xf] }
 0x1e6   :  { %4420 = vmatpush.bf16.msra.mxu2 %v5695_v0  ;;  %4389 = vmatmul.bf16.vlgmr.msrb.gmra.mxu3 %v8449_v22  ;;  %v5519_v22 = vor.u32 %v7638_v46, %v5516_v51  ;;  %v5775_v63 = vor.u32 %v7702_v53, %v5772_v19  ;;  %v5500_v0 = vld [vmem:[#allocation5 + $0x378] sm:$0xf0]  ;;  %v7690_v53 = vld [vmem:[#allocation5 + $0x52c] sm:$0xf] }
 0x1e7   :  { %4433 = vmatpush.bf16.msra.mxu3 %v5823_v3  ;;  %v5756_v3 = vld [vmem:[#allocation5 + $0x578] sm:$0xf0]  ;;  %v5503_v7 = vor.u32 %v7634_v60, %v5500_v0  ;;  %v7686_v36 = vld [vmem:[#allocation5 + $0x50c] sm:$0xf] }
 0x1e8   :  { %4395 = vmatpush.bf16.msra.mxu0 %v5423_v11  ;;  %v5356_v11 = vld [vmem:[#allocation5 + $0x258] sm:$0xf0]  ;;  %v5759_v9 = vor.u32 %v7698_v2, %v5756_v3  ;;  %v4145_v40 = vpop.f32.mrf.mxu0  ;;  %v7746_v3 = vld [vmem:[#allocation5 + $0x6ec] sm:$0xf] }
 0x1e9   :  { %4408 = vmatpush.bf16.msra.mxu1 %v5551_v12  ;;  %v7630_v12 = vld [vmem:[#allocation5 + $0x34c] sm:$0xf]  ;;  %v4182_v21 = vpop.f32.mrf.mxu3  ;;  %v5359_v27 = vor.u32 %v7598_v10, %v5356_v11  ;;  %v5340_v46 = vld [vmem:[#allocation5 + $0x238] sm:$0xf0] }
 0x1ea   :  { %4421 = vmatpush.bf16.msra.mxu2 %v5679_v13  ;;  %v4169_v13 = vpop.f32.mrf.mxu2  ;;  %v5468_v51 = vld [vmem:[#allocation5 + $0x338] sm:$0xf0]  ;;  %v7810_v10 = vld [vmem:[#allocation5 + $0x8ec] sm:$0xf] }
 0x1eb   :  { %4434 = vmatpush.bf16.msra.mxu3 %v5807_v16  ;;  %v5612_v16 = vld [vmem:[#allocation5 + $0x458] sm:$0xf0]  ;;  %v4170_v17 = vadd.f32 %v4169_v13, %v4157_v5  ;;  %v7738_v49 = vld [vmem:[#allocation5 + $0x6ac] sm:$0xf] }
 0x1ec   :  { %4396 = vmatpush.bf16.msra.mxu0 %v5407_v34  ;;  %v4158_v48 = vpop.f32.mrf.mxu1  ;;  %v5724_v19 = vld [vmem:[#allocation5 + $0x538] sm:$0xf0] }
 0x1ed   :  { %4409 = vmatpush.bf16.msra.mxu1 %v5535_v43  ;;  %v8563_v34 = vadd.f32 %v4182_v21, %v4170_v17  ;;  %v5487_v43 = vor.u32 %v7630_v12, %v5484_v14  ;;  %v5452_v60 = vld [vmem:[#allocation5 + $0x318] sm:$0xf0] }
 0x1ee   :  { %4422 = vmatpush.bf16.msra.mxu2 %v5663_v45  ;;  %v5615_v45 = vor.u32 %v7662_v15, %v5612_v16  ;;  %v5580_v0 = vld [vmem:[#allocation5 + $0x418] sm:$0xf0]  ;;  %v5455_v12 = vor.u32 %v7622_v54, %v5452_v60  ;;  %v5711_v15 = vor.u32 %v7686_v36, %v5708_v1  ;;  %v5919_v54 = vor.u32 %v7738_v49, %v5916_v52  ;;  %v7798_v1 = vld [vmem:[#allocation5 + $0x88c] sm:$0xf] }
 0x1ef   :  { %4435 = vmatpush.bf16.msra.mxu3 %v5791_v50  ;;  %v5743_v50 = vor.u32 %v7694_v24, %v5740_v26  ;;  %v5948_v5 = vld [vmem:[#allocation5 + $0x6f8] sm:$0xf0]  ;;  %v5583_v13 = vor.u32 %v7654_v61, %v5580_v0  ;;  %v7742_v24 = vld [vmem:[#allocation5 + $0x6cc] sm:$0xf] }
 0x1f0   :  { %4397 = vmatpush.bf16.msra.mxu0 %v5391_v55  ;;  %v5343_v55 = vor.u32 %v7594_v37, %v5340_v46  ;;  %v6204_v11 = vld [vmem:[#allocation5 + $0x8f8] sm:$0xf0]  ;;  %v5951_v16 = vor.u32 %v7746_v3, %v5948_v5  ;;  %v7838_v46 = vld [vmem:[#allocation5 + $0x9cc] sm:$0xf] }
 0x1f1   :  { %4410 = vmatpush.bf16.msra.mxu1 %v5519_v22  ;;  %v5324_v22 = vld [vmem:[#allocation5 + $0x218] sm:$0xf0]  ;;  %v4184_v2 = vpop.f32.mrf.mxu3  ;;  %v6207_v21 = vor.u32 %v7810_v10, %v6204_v11  ;;  %v7830_v3 = vld [vmem:[#allocation5 + $0x98c] sm:$0xf] }
 0x1f2   :  { %4423 = vmatpush.bf16.msra.mxu2 %v5647_v58  ;;  %v5471_v58 = vor.u32 %v7626_v47, %v5468_v51  ;;  %v4171_v62 = vpop.f32.mrf.mxu2  ;;  %v6332_v14 = vld [vmem:[#allocation5 + $0x9f8] sm:$0xf0]  ;;  %v7762_v10 = vld [vmem:[#allocation5 + $0x76c] sm:$0xf] }
 0x1f3   :  { %4436 = vmatpush.bf16.msra.mxu3 %v5775_v63  ;;  %v5727_v63 = vor.u32 %v7690_v53, %v5724_v19  ;;  %v5932_v26 = vld [vmem:[#allocation5 + $0x6d8] sm:$0xf0]  ;;  %v7770_v53 = vld [vmem:[#allocation5 + $0x7ac] sm:$0xf] }
 0x1f4   :  { %4398 = vmatpush.bf16.msra.mxu0 %v5375_v6  ;;  %v7778_v6 = vld [vmem:[#allocation5 + $0x7ec] sm:$0xf]  ;;  %v6188_v37 = vld [vmem:[#allocation5 + $0x8d8] sm:$0xf0]  ;;  %v5935_v48 = vor.u32 %v7742_v24, %v5932_v26 }
 0x1f5   :  { %4411 = vmatpush.bf16.msra.mxu1 %v5503_v7  ;;  %v5327_v7 = vor.u32 %v7590_v56, %v5324_v22  ;;  %v6316_v47 = vld [vmem:[#allocation5 + $0x9d8] sm:$0xf0]  ;;  %v7802_v56 = vld [vmem:[#allocation5 + $0x8ac] sm:$0xf] }
 0x1f6   :  { %4424 = vmatpush.bf16.msra.mxu2 %v5631_v8  ;;  %v6076_v8 = vld [vmem:[#allocation5 + $0x7f8] sm:$0xf0]  ;;  %v6319_v19 = vor.u32 %v7838_v46, %v6316_v47  ;;  %v7734_v62 = vld [vmem:[#allocation5 + $0x68c] sm:$0xf] }
 0x1f7   :  { %4437 = vmatpush.bf16.msra.mxu3 %v5759_v9  ;;  %v7842_v9 = vld [vmem:[#allocation5 + $0x9ec] sm:$0xf]  ;;  %v6079_v17 = vor.u32 %v7778_v6, %v6076_v8  ;;  %v6172_v22 = vld [vmem:[#allocation5 + $0x8b8] sm:$0xf0] }
 0x1f8   :  { %4399 = vmatpush.bf16.msra.mxu0 %v5359_v27  ;;  %v7774_v27 = vld [vmem:[#allocation5 + $0x7cc] sm:$0xf]  ;;  %v6335_v40 = vor.u32 %v7842_v9, %v6332_v14  ;;  %v6175_v61 = vor.u32 %v7802_v56, %v6172_v22  ;;  %v6028_v36 = vld [vmem:[#allocation5 + $0x798] sm:$0xf0] }
 0x1f9   :  { %4412 = vmatpush.bf16.msra.mxu1 %v5487_v43  ;;  %v6060_v43 = vld [vmem:[#allocation5 + $0x7d8] sm:$0xf0]  ;;  %v7794_v14 = vld [vmem:[#allocation5 + $0x86c] sm:$0xf] }
 0x1fa   :  { %4425 = vmatpush.bf16.msra.mxu2 %v5615_v45  ;;  %v7806_v45 = vld [vmem:[#allocation5 + $0x8cc] sm:$0xf]  ;;  %v6156_v2 = vld [vmem:[#allocation5 + $0x898] sm:$0xf0] }
 0x1fb   :  { %4438 = vmatpush.bf16.msra.mxu3 %v5743_v50  ;;  %v6063_v50 = vor.u32 %v7774_v27, %v6060_v43  ;;  %v6191_v51 = vor.u32 %v7806_v45, %v6188_v37  ;;  %v6159_v6 = vor.u32 %v7798_v1, %v6156_v2  ;;  %v5884_v8 = vld [vmem:[#allocation5 + $0x678] sm:$0xf0]  ;;  %v7758_v45 = vld [vmem:[#allocation5 + $0x74c] sm:$0xf] }
 0x1fc   :  { %4400 = vmatpush.bf16.msra.mxu0 %v5343_v55  ;;  %v6044_v55 = vld [vmem:[#allocation5 + $0x7b8] sm:$0xf0]  ;;  %v7790_v47 = vld [vmem:[#allocation5 + $0x84c] sm:$0xf] }
 0x1fd   :  { %4413 = vmatpush.bf16.msra.mxu1 %v5471_v58  ;;  %v7834_v58 = vld [vmem:[#allocation5 + $0x9ac] sm:$0xf]  ;;  %v6047_v60 = vor.u32 %v7770_v53, %v6044_v55  ;;  %v6012_v9 = vld [vmem:[#allocation5 + $0x778] sm:$0xf0] }
 0x1fe   :  { %4426 = vmatpush.bf16.msra.mxu2 %v5599_v59  ;;  %v6300_v59 = vld [vmem:[#allocation5 + $0x9b8] sm:$0xf0]  ;;  %v6015_v26 = vor.u32 %v7762_v10, %v6012_v9  ;;  %v7822_v49 = vld [vmem:[#allocation5 + $0x94c] sm:$0xf] }
 0x1ff   :  { %4439 = vmatpush.bf16.msra.mxu3 %v5727_v63  ;;  %v5900_v63 = vld [vmem:[#allocation5 + $0x698] sm:$0xf0]  ;;  %v6303_v0 = vor.u32 %v7834_v58, %v6300_v59  ;;  %v7722_v58 = vld [vmem:[#allocation5 + $0x62c] sm:$0xf] }
 0x200   :  { %4401 = vmatpush.bf16.msra.mxu0 %v5327_v7  ;;  %v4195_v5 = vpop.f32.mrf.mxu0  ;;  %v7730_v7 = vld [vmem:[#allocation5 + $0x66c] sm:$0xf]  ;;  %v5868_v43 = vld [vmem:[#allocation5 + $0x658] sm:$0xf0] }
 0x201   :  { %4414 = vmatpush.bf16.msra.mxu1 %v5455_v12  ;;  %v4196_v11 = vadd.f32 %v4195_v5, %v8563_v34  ;;  %v4208_v12 = vpop.f32.mrf.mxu1  ;;  %v5887_v24 = vor.u32 %v7730_v7, %v5884_v8  ;;  %v5996_v46 = vld [vmem:[#allocation5 + $0x758] sm:$0xf0]  ;;  %v7718_v2 = vld [vmem:[#allocation5 + $0x60c] sm:$0xf] }
 0x202   :  { %4427 = vmatpush.bf16.msra.mxu2 %v5583_v13  ;;  %v6252_v52 = vld [vmem:[#allocation5 + $0x958] sm:$0xf0]  ;;  %v5999_v56 = vor.u32 %v7758_v45, %v5996_v46  ;;  %v7750_v5 = vld [vmem:[#allocation5 + $0x70c] sm:$0xf] }
 0x203   :  { %4440 = vmatpush.bf16.msra.mxu3 %v5711_v15  ;;  %4402 = vmatmul.bf16.vlgmr.msra.gmra.mxu0 %v8443_v18  ;;  %v6284_v18 = vld [vmem:[#allocation5 + $0x998] sm:$0xf0]  ;;  %v7874_v9 = vld [vmem:[#allocation5 + $0xaec] sm:$0xf] }
 0x204   :  { %4446 = vmatpush.bf16.msrb.mxu0 %v5951_v16  ;;  %4415 = vmatmul.bf16.vlgmr.msra.gmra.mxu1 %v8447_v20  ;;  %v6287_v13 = vor.u32 %v7830_v3, %v6284_v18  ;;  %v6140_v15 = vld [vmem:[#allocation5 + $0x878] sm:$0xf0]  ;;  %v7826_v16 = vld [vmem:[#allocation5 + $0x96c] sm:$0xf] }
 0x205   :  { %4459 = vmatpush.bf16.msrb.mxu1 %v6079_v17  ;;  %4428 = vmatmul.bf16.vlgmr.msra.gmra.mxu2 %v8457_v41  ;;  %v7766_v41 = vld [vmem:[#allocation5 + $0x78c] sm:$0xf]  ;;  %v6268_v17 = vld [vmem:[#allocation5 + $0x978] sm:$0xf0]  ;;  %v6143_v27 = vor.u32 %v7794_v14, %v6140_v15 }
 0x206   :  { %4472 = vmatpush.bf16.msrb.mxu2 %v6207_v21  ;;  %4441 = vmatmul.bf16.vlgmr.msra.gmra.mxu3 %v8461_v44  ;;  %v5903_v44 = vor.u32 %v7734_v62, %v5900_v63  ;;  %v6031_v20 = vor.u32 %v7766_v41, %v6028_v36  ;;  %v4209_v21 = vadd.f32 %v4208_v12, %v4196_v11  ;;  %v5852_v59 = vld [vmem:[#allocation5 + $0x638] sm:$0xf0]  ;;  %v7786_v63 = vld [vmem:[#allocation5 + $0x82c] sm:$0xf] }
 0x207   :  { %4485 = vmatpush.bf16.msrb.mxu3 %v6335_v40  ;;  %v7726_v40 = vld [vmem:[#allocation5 + $0x64c] sm:$0xf]  ;;  %v6271_v34 = vor.u32 %v7826_v16, %v6268_v17  ;;  %v5980_v62 = vld [vmem:[#allocation5 + $0x738] sm:$0xf0]  ;;  %v5855_v1 = vor.u32 %v7722_v58, %v5852_v59 }
 0x208   :  { %4447 = vmatpush.bf16.msrb.mxu0 %v5935_v48  ;;  %v4221_v37 = vpop.f32.mrf.mxu2  ;;  %v6124_v48 = vld [vmem:[#allocation5 + $0x858] sm:$0xf0]  ;;  %v5871_v53 = vor.u32 %v7726_v40, %v5868_v43  ;;  %v4197_v55 = vpop.f32.mrf.mxu0  ;;  %v7814_v11 = vld [vmem:[#allocation5 + $0x90c] sm:$0xf] }
 0x209   :  { %4460 = vmatpush.bf16.msrb.mxu1 %v6063_v50  ;;  %v4222_v50 = vadd.f32 %v4221_v37, %v4209_v21  ;;  %v6127_v22 = vor.u32 %v7790_v47, %v6124_v48  ;;  %v6108_v41 = vld [vmem:[#allocation5 + $0x838] sm:$0xf0]  ;;  %v7906_v15 = vld [vmem:[#allocation5 + $0xbec] sm:$0xf] }
 0x20a   :  { %4473 = vmatpush.bf16.msrb.mxu2 %v6191_v51  ;;  %v4234_v51 = vpop.f32.mrf.mxu3  ;;  %v6236_v36 = vld [vmem:[#allocation5 + $0x938] sm:$0xf0]  ;;  %v7938_v21 = vld [vmem:[#allocation5 + $0xcec] sm:$0xf] }
 0x20b   :  { %4486 = vmatpush.bf16.msrb.mxu3 %v6319_v19  ;;  %v8570_v19 = vadd.f32 %v4234_v51, %v4222_v50  ;;  %v5836_v3 = vld [vmem:[#allocation5 + $0x618] sm:$0xf0]  ;;  %v7970_v40 = vld [vmem:[#allocation5 + $0xdec] sm:$0xf] }
 0x20c   :  { %4448 = vmatpush.bf16.msrb.mxu0 %v5919_v54  ;;  %v7754_v54 = vld [vmem:[#allocation5 + $0x72c] sm:$0xf]  ;;  %v6092_v10 = vld [vmem:[#allocation5 + $0x818] sm:$0xf0]  ;;  %v5839_v16 = vor.u32 %v7718_v2, %v5836_v3 }
 0x20d   :  { %4461 = vmatpush.bf16.msrb.mxu1 %v6047_v60  ;;  %v4210_v60 = vpop.f32.mrf.mxu1  ;;  %v5983_v18 = vor.u32 %v7754_v54, %v5980_v62  ;;  %v6220_v12 = vld [vmem:[#allocation5 + $0x918] sm:$0xf0]  ;;  %v7870_v47 = vld [vmem:[#allocation5 + $0xacc] sm:$0xf] }
 0x20e   :  { %4474 = vmatpush.bf16.msrb.mxu2 %v6175_v61  ;;  %v6255_v61 = vor.u32 %v7822_v49, %v6252_v52  ;;  %v6460_v14 = vld [vmem:[#allocation5 + $0xaf8] sm:$0xf0]  ;;  %v6223_v45 = vor.u32 %v7814_v11, %v6220_v12  ;;  %v7902_v50 = vld [vmem:[#allocation5 + $0xbcc] sm:$0xf] }
 0x20f   :  { %4487 = vmatpush.bf16.msrb.mxu3 %v6303_v0  ;;  %v7818_v0 = vld [vmem:[#allocation5 + $0x92c] sm:$0xf]  ;;  %v6588_v17 = vld [vmem:[#allocation5 + $0xbf8] sm:$0xf0]  ;;  %v6463_v37 = vor.u32 %v7874_v9, %v6460_v14 }
 0x210   :  { %4449 = vmatpush.bf16.msrb.mxu0 %v5903_v44  ;;  %v6111_v44 = vor.u32 %v7786_v63, %v6108_v41  ;;  %v4223_v7 = vpop.f32.mrf.mxu2  ;;  %v6239_v8 = vor.u32 %v7818_v0, %v6236_v36  ;;  %v6844_v43 = vld [vmem:[#allocation5 + $0xdf8] sm:$0xf0]  ;;  %v7934_v52 = vld [vmem:[#allocation5 + $0xccc] sm:$0xf] }
 0x211   :  { %4462 = vmatpush.bf16.msrb.mxu1 %v6031_v20  ;;  %v5964_v20 = vld [vmem:[#allocation5 + $0x718] sm:$0xf0]  ;;  %v6847_v51 = vor.u32 %v7970_v40, %v6844_v43  ;;  %v7966_v55 = vld [vmem:[#allocation5 + $0xdcc] sm:$0xf] }
 0x212   :  { %4475 = vmatpush.bf16.msrb.mxu2 %v6159_v6  ;;  %v7782_v6 = vld [vmem:[#allocation5 + $0x80c] sm:$0xf]  ;;  %v6444_v48 = vld [vmem:[#allocation5 + $0xad8] sm:$0xf0] }
 0x213   :  { %4488 = vmatpush.bf16.msrb.mxu3 %v6287_v13  ;;  %v4236_v13 = vpop.f32.mrf.mxu3  ;;  %v6572_v49 = vld [vmem:[#allocation5 + $0xbd8] sm:$0xf0]  ;;  %v7866_v54 = vld [vmem:[#allocation5 + $0xaac] sm:$0xf] }
 0x214   :  { %4450 = vmatpush.bf16.msrb.mxu0 %v5887_v24  ;;  %v6716_v24 = vld [vmem:[#allocation5 + $0xcf8] sm:$0xf0]  ;;  %v6575_v58 = vor.u32 %v7902_v50, %v6572_v49  ;;  %v7930_v41 = vld [vmem:[#allocation5 + $0xcac] sm:$0xf] }
 0x215   :  { %4463 = vmatpush.bf16.msrb.mxu1 %v6015_v26  ;;  %v5967_v26 = vor.u32 %v7750_v5, %v5964_v20  ;;  %v6719_v46 = vor.u32 %v7938_v21, %v6716_v24  ;;  %v6428_v60 = vld [vmem:[#allocation5 + $0xab8] sm:$0xf0]  ;;  %v7962_v36 = vld [vmem:[#allocation5 + $0xdac] sm:$0xf] }
 0x216   :  { %4476 = vmatpush.bf16.msrb.mxu2 %v6143_v27  ;;  %v6095_v27 = vor.u32 %v7782_v6, %v6092_v10  ;;  %v6556_v63 = vld [vmem:[#allocation5 + $0xbb8] sm:$0xf0]  ;;  %v6431_v2 = vor.u32 %v7866_v54, %v6428_v60  ;;  %v7894_v5 = vld [vmem:[#allocation5 + $0xb8c] sm:$0xf] }
 0x217   :  { %4489 = vmatpush.bf16.msrb.mxu3 %v6271_v34  ;;  %v6591_v34 = vor.u32 %v7906_v15, %v6588_v17  ;;  %v6684_v0 = vld [vmem:[#allocation5 + $0xcb8] sm:$0xf0]  ;;  %v7926_v7 = vld [vmem:[#allocation5 + $0xc8c] sm:$0xf] }
 0x218   :  { %4451 = vmatpush.bf16.msrb.mxu0 %v5871_v53  ;;  %v6700_v53 = vld [vmem:[#allocation5 + $0xcd8] sm:$0xf0]  ;;  %v7858_v9 = vld [vmem:[#allocation5 + $0xa6c] sm:$0xf] }
 0x219   :  { %4464 = vmatpush.bf16.msrb.mxu1 %v5999_v56  ;;  %v6828_v56 = vld [vmem:[#allocation5 + $0xdd8] sm:$0xf0]  ;;  %v6703_v59 = vor.u32 %v7934_v52, %v6700_v53  ;;  %v7890_v15 = vld [vmem:[#allocation5 + $0xb6c] sm:$0xf] }
 0x21a   :  { %4477 = vmatpush.bf16.msrb.mxu2 %v6127_v22  ;;  %v6447_v22 = vor.u32 %v7870_v47, %v6444_v48  ;;  %v6831_v62 = vor.u32 %v7966_v55, %v6828_v56  ;;  %v6540_v6 = vld [vmem:[#allocation5 + $0xb98] sm:$0xf0]  ;;  %v7922_v21 = vld [vmem:[#allocation5 + $0xc6c] sm:$0xf] }
 0x21b   :  { %4490 = vmatpush.bf16.msrb.mxu3 %v6255_v61  ;;  %v7898_v61 = vld [vmem:[#allocation5 + $0xbac] sm:$0xf]  ;;  %v6796_v10 = vld [vmem:[#allocation5 + $0xd98] sm:$0xf0]  ;;  %v6543_v12 = vor.u32 %v7894_v5, %v6540_v6 }
 0x21c   :  { %4452 = vmatpush.bf16.msrb.mxu0 %v5855_v1  ;;  %v6812_v1 = vld [vmem:[#allocation5 + $0xdb8] sm:$0xf0]  ;;  %v6559_v3 = vor.u32 %v7898_v61, %v6556_v63  ;;  %v7950_v53 = vld [vmem:[#allocation5 + $0xd4c] sm:$0xf] }
 0x21d   :  { %4465 = vmatpush.bf16.msrb.mxu1 %v5983_v18  ;;  %v6687_v18 = vor.u32 %v7930_v41, %v6684_v0  ;;  %v6815_v20 = vor.u32 %v7962_v36, %v6812_v1  ;;  %v6396_v14 = vld [vmem:[#allocation5 + $0xa78] sm:$0xf0]  ;;  %v7850_v60 = vld [vmem:[#allocation5 + $0xa2c] sm:$0xf] }
 0x21e   :  { %4478 = vmatpush.bf16.msrb.mxu2 %v6111_v44  ;;  %v7862_v44 = vld [vmem:[#allocation5 + $0xa8c] sm:$0xf]  ;;  %v6524_v17 = vld [vmem:[#allocation5 + $0xb78] sm:$0xf0]  ;;  %v6399_v40 = vor.u32 %v7858_v9, %v6396_v14 }
 0x21f   :  { %4491 = vmatpush.bf16.msrb.mxu3 %v6239_v8  ;;  %v6652_v24 = vld [vmem:[#allocation5 + $0xc78] sm:$0xf0]  ;;  %v6527_v43 = vor.u32 %v7890_v15, %v6524_v17  ;;  %v7914_v0 = vld [vmem:[#allocation5 + $0xc2c] sm:$0xf] }
 0x220   :  { %4453 = vmatpush.bf16.msrb.mxu0 %v5839_v16  ;;  %v8576_v8 = vpop.f32.mrf.mxu0  ;;  %v6508_v50 = vld [vmem:[#allocation5 + $0xb58] sm:$0xf0]  ;;  %v7946_v1 = vld [vmem:[#allocation5 + $0xd2c] sm:$0xf] }
 0x221   :  { %4466 = vmatpush.bf16.msrb.mxu1 %v5967_v26  ;;  %v8578_v11 = vpop.f32.mrf.mxu1  ;;  %v7954_v26 = vld [vmem:[#allocation5 + $0xd6c] sm:$0xf]  ;;  %v6636_v49 = vld [vmem:[#allocation5 + $0xc58] sm:$0xf0] }
 0x222   :  { %4479 = vmatpush.bf16.msrb.mxu2 %v6095_v27  ;;  %v6780_v27 = vld [vmem:[#allocation5 + $0xd78] sm:$0xf0]  ;;  %v8034_v14 = vld [vmem:[#allocation5 + $0xfec] sm:$0xf] }
 0x223   :  { %4492 = vmatpush.bf16.msrb.mxu3 %v6223_v45  ;;  %4454 = vmatmul.bf16.vlgmr.msrb.gmra.mxu0 %v8455_v38  ;;  %v6412_v38 = vld [vmem:[#allocation5 + $0xa98] sm:$0xf0]  ;;  %v6655_v45 = vor.u32 %v7922_v21, %v6652_v24  ;;  %v6783_v47 = vor.u32 %v7954_v26, %v6780_v27  ;;  %v8066_v21 = vld [vmem:[#allocation5 + $0x10ec] sm:$0xf] }
 0x224   :  { %4498 = vmatpush.bf16.msra.mxu0 %v6463_v37  ;;  %4467 = vmatmul.bf16.vlgmr.msrb.gmra.mxu1 %v8459_v42  ;;  %v7958_v42 = vld [vmem:[#allocation5 + $0xd8c] sm:$0xf]  ;;  %v6764_v55 = vld [vmem:[#allocation5 + $0xd58] sm:$0xf0] }
 0x225   :  { %4511 = vmatpush.bf16.msra.mxu1 %v6591_v34  ;;  %4480 = vmatmul.bf16.vlgmr.msrb.gmra.mxu2 %v8467_v25  ;;  %v6668_v25 = vld [vmem:[#allocation5 + $0xc98] sm:$0xf0]  ;;  %v6799_v16 = vor.u32 %v7958_v42, %v6796_v10  ;;  %v7854_v37 = vld [vmem:[#allocation5 + $0xa4c] sm:$0xf]  ;;  %v6767_v63 = vor.u32 %v7950_v53, %v6764_v55 }
 0x226   :  { %4524 = vmatpush.bf16.msra.mxu2 %v6719_v46  ;;  %4493 = vmatmul.bf16.vlgmr.msrb.gmra.mxu3 %v8471_v30  ;;  %v6415_v30 = vor.u32 %v7862_v44, %v6412_v38  ;;  %v6671_v13 = vor.u32 %v7926_v7, %v6668_v25  ;;  %v6380_v34 = vld [vmem:[#allocation5 + $0xa58] sm:$0xf0]  ;;  %v7886_v46 = vld [vmem:[#allocation5 + $0xb4c] sm:$0xf] }
 0x227   :  { %4537 = vmatpush.bf16.msra.mxu3 %v6847_v51  ;;  %v7918_v51 = vld [vmem:[#allocation5 + $0xc4c] sm:$0xf]  ;;  %v6364_v61 = vld [vmem:[#allocation5 + $0xa38] sm:$0xf0] }
 0x228   :  { %4499 = vmatpush.bf16.msra.mxu0 %v6447_v22  ;;  %v8580_v48 = vpop.f32.mrf.mxu2  ;;  %v4249_v56 = vpop.f32.mrf.mxu0  ;;  %v6383_v22 = vor.u32 %v7854_v37, %v6380_v34  ;;  %v6639_v54 = vor.u32 %v7918_v51, %v6636_v49  ;;  %v6492_v41 = vld [vmem:[#allocation5 + $0xb38] sm:$0xf0]  ;;  %v7910_v7 = vld [vmem:[#allocation5 + $0xc0c] sm:$0xf] }
 0x229   :  { %4512 = vmatpush.bf16.msra.mxu1 %v6575_v58  ;;  %v8582_v52 = vpop.f32.mrf.mxu3  ;;  %v4262_v58 = vpop.f32.mrf.mxu1  ;;  %v6620_v36 = vld [vmem:[#allocation5 + $0xc38] sm:$0xf0]  ;;  %v7942_v10 = vld [vmem:[#allocation5 + $0xd0c] sm:$0xf] }
 0x22a   :  { %4525 = vmatpush.bf16.msra.mxu2 %v6703_v59  ;;  %v6511_v59 = vor.u32 %v7886_v46, %v6508_v50  ;;  %v6348_v44 = vld [vmem:[#allocation5 + $0xa18] sm:$0xf0]  ;;  %v6623_v5 = vor.u32 %v7914_v0, %v6620_v36  ;;  %v8030_v51 = vld [vmem:[#allocation5 + $0xfcc] sm:$0xf] }
 0x22b   :  { %4538 = vmatpush.bf16.msra.mxu3 %v6831_v62  ;;  %v7882_v62 = vld [vmem:[#allocation5 + $0xb2c] sm:$0xf]  ;;  %v6476_v6 = vld [vmem:[#allocation5 + $0xb18] sm:$0xf0] }
 0x22c   :  { %4500 = vmatpush.bf16.msra.mxu0 %v6431_v2  ;;  %v6748_v2 = vld [vmem:[#allocation5 + $0xd38] sm:$0xf0]  ;;  %v6495_v38 = vor.u32 %v7882_v62, %v6492_v41  ;;  %v8062_v55 = vld [vmem:[#allocation5 + $0x10cc] sm:$0xf] }
 0x22d   :  { %4513 = vmatpush.bf16.msra.mxu1 %v6559_v3  ;;  %v6367_v3 = vor.u32 %v7850_v60, %v6364_v61  ;;  %v6751_v25 = vor.u32 %v7946_v1, %v6748_v2  ;;  %v6604_v42 = vld [vmem:[#allocation5 + $0xc18] sm:$0xf0]  ;;  %v7994_v61 = vld [vmem:[#allocation5 + $0xeac] sm:$0xf] }
 0x22e   :  { %4526 = vmatpush.bf16.msra.mxu2 %v6687_v18  ;;  %v7846_v18 = vld [vmem:[#allocation5 + $0xa0c] sm:$0xf]  ;;  %v6972_v9 = vld [vmem:[#allocation5 + $0xef8] sm:$0xf0]  ;;  %v6607_v27 = vor.u32 %v7910_v7, %v6604_v42 }
 0x22f   :  { %4539 = vmatpush.bf16.msra.mxu3 %v6815_v20  ;;  %v7878_v20 = vld [vmem:[#allocation5 + $0xb0c] sm:$0xf]  ;;  %v7100_v17 = vld [vmem:[#allocation5 + $0xff8] sm:$0xf0] }
 0x230   :  { %4501 = vmatpush.bf16.msra.mxu0 %v6415_v30  ;;  %v6732_v30 = vld [vmem:[#allocation5 + $0xd18] sm:$0xf0]  ;;  %v6479_v26 = vor.u32 %v7878_v20, %v6476_v6  ;;  %v7103_v34 = vor.u32 %v8034_v14, %v7100_v17  ;;  %v8058_v36 = vld [vmem:[#allocation5 + $0x10ac] sm:$0xf] }
 0x231   :  { %4514 = vmatpush.bf16.msra.mxu1 %v6543_v12  ;;  %v4275_v12 = vpop.f32.mrf.mxu2  ;;  %v4288_v15 = vpop.f32.mrf.mxu3  ;;  %v7228_v24 = vld [vmem:[#allocation5 + $0x10f8] sm:$0xf0]  ;;  %v8090_v2 = vld [vmem:[#allocation5 + $0x11ac] sm:$0xf] }
 0x232   :  { %4527 = vmatpush.bf16.msra.mxu2 %v6671_v13  ;;  %v8002_v13 = vld [vmem:[#allocation5 + $0xeec] sm:$0xf]  ;;  %v7231_v46 = vor.u32 %v8066_v21, %v7228_v24  ;;  %v6956_v50 = vld [vmem:[#allocation5 + $0xed8] sm:$0xf0] }
 0x233   :  { %4540 = vmatpush.bf16.msra.mxu3 %v6799_v16  ;;  %v6351_v16 = vor.u32 %v7846_v18, %v6348_v44  ;;  %v6975_v37 = vor.u32 %v8002_v13, %v6972_v9  ;;  %v7084_v53 = vld [vmem:[#allocation5 + $0xfd8] sm:$0xf0]  ;;  %v8022_v20 = vld [vmem:[#allocation5 + $0xf8c] sm:$0xf] }
 0x234   :  { %4502 = vmatpush.bf16.msra.mxu0 %v6399_v40  ;;  %v8098_v40 = vld [vmem:[#allocation5 + $0x11ec] sm:$0xf]  ;;  %v7212_v56 = vld [vmem:[#allocation5 + $0x10d8] sm:$0xf0] }
 0x235   :  { %4515 = vmatpush.bf16.msra.mxu1 %v6527_v43  ;;  %v7356_v43 = vld [vmem:[#allocation5 + $0x11f8] sm:$0xf0]  ;;  %v7215_v60 = vor.u32 %v8062_v55, %v7212_v56  ;;  %v7986_v9 = vld [vmem:[#allocation5 + $0xe6c] sm:$0xf] }
 0x236   :  { %4528 = vmatpush.bf16.msra.mxu2 %v6655_v45  ;;  %v6735_v45 = vor.u32 %v7942_v10, %v6732_v30  ;;  %v7359_v49 = vor.u32 %v8098_v40, %v7356_v43  ;;  %v7340_v58 = vld [vmem:[#allocation5 + $0x11d8] sm:$0xf0]  ;;  %v8018_v15 = vld [vmem:[#allocation5 + $0xf6c] sm:$0xf] }
 0x237   :  { %4541 = vmatpush.bf16.msra.mxu3 %v6783_v47  ;;  %v7998_v47 = vld [vmem:[#allocation5 + $0xecc] sm:$0xf]  ;;  %v6940_v62 = vld [vmem:[#allocation5 + $0xeb8] sm:$0xf0] }
 0x238   :  { %4503 = vmatpush.bf16.msra.mxu0 %v6383_v22  ;;  %v8094_v22 = vld [vmem:[#allocation5 + $0x11cc] sm:$0xf]  ;;  %v7068_v0 = vld [vmem:[#allocation5 + $0xfb8] sm:$0xf0]  ;;  %v6943_v18 = vor.u32 %v7994_v61, %v6940_v62 }
 0x239   :  { %4516 = vmatpush.bf16.msra.mxu1 %v6511_v59  ;;  %v6959_v59 = vor.u32 %v7998_v47, %v6956_v50  ;;  %v7343_v41 = vor.u32 %v8094_v22, %v7340_v58  ;;  %v7196_v1 = vld [vmem:[#allocation5 + $0x10b8] sm:$0xf0]  ;;  %v8050_v21 = vld [vmem:[#allocation5 + $0x106c] sm:$0xf]  ;;  %v4248_v47 = vadd.f32 %v8576_v8, %v8570_v19 }
 0x23a   :  { %4529 = vmatpush.bf16.msra.mxu2 %v6639_v54  ;;  %v7087_v54 = vor.u32 %v8030_v51, %v7084_v53  ;;  %v7052_v7 = vld [vmem:[#allocation5 + $0xf98] sm:$0xf0]  ;;  %v8046_v53 = vld [vmem:[#allocation5 + $0x104c] sm:$0xf] }
 0x23b   :  { %4542 = vmatpush.bf16.msra.mxu3 %v6767_v63  ;;  %v8026_v63 = vld [vmem:[#allocation5 + $0xfac] sm:$0xf]  ;;  %v7308_v10 = vld [vmem:[#allocation5 + $0x1198] sm:$0xf0]  ;;  %v7055_v12 = vor.u32 %v8022_v20, %v7052_v7 }
 0x23c   :  { %4504 = vmatpush.bf16.msra.mxu0 %v6367_v3  ;;  %v7324_v3 = vld [vmem:[#allocation5 + $0x11b8] sm:$0xf0]  ;;  %v7071_v44 = vor.u32 %v8026_v63, %v7068_v0  ;;  %v8078_v22 = vld [vmem:[#allocation5 + $0x114c] sm:$0xf] }
 0x23d   :  { %4517 = vmatpush.bf16.msra.mxu1 %v6495_v38  ;;  %v7199_v38 = vor.u32 %v8058_v36, %v7196_v1  ;;  %v7327_v6 = vor.u32 %v8090_v2, %v7324_v3  ;;  %v6908_v14 = vld [vmem:[#allocation5 + $0xe78] sm:$0xf0]  ;;  %v7978_v19 = vld [vmem:[#allocation5 + $0xe2c] sm:$0xf] }
 0x23e   :  { %4530 = vmatpush.bf16.msra.mxu2 %v6623_v5  ;;  %v7990_v5 = vld [vmem:[#allocation5 + $0xe8c] sm:$0xf]  ;;  %v7036_v17 = vld [vmem:[#allocation5 + $0xf78] sm:$0xf0]  ;;  %v6911_v40 = vor.u32 %v7986_v9, %v6908_v14 }
 0x23f   :  { %4543 = vmatpush.bf16.msra.mxu3 %v6751_v25  ;;  %v8054_v25 = vld [vmem:[#allocation5 + $0x108c] sm:$0xf]  ;;  %v7164_v24 = vld [vmem:[#allocation5 + $0x1078] sm:$0xf0]  ;;  %v7039_v43 = vor.u32 %v8018_v15, %v7036_v17 }
 0x240   :  { %4505 = vmatpush.bf16.msra.mxu0 %v6351_v16  ;;  %v8588_v42 = vpop.f32.mrf.mxu0  ;;  %v7148_v55 = vld [vmem:[#allocation5 + $0x1058] sm:$0xf0]  ;;  %v8010_v63 = vld [vmem:[#allocation5 + $0xf2c] sm:$0xf] }
 0x241   :  { %4518 = vmatpush.bf16.msra.mxu1 %v6479_v26  ;;  %v8590_v30 = vpop.f32.mrf.mxu1  ;;  %v8082_v26 = vld [vmem:[#allocation5 + $0x116c] sm:$0xf]  ;;  %v7276_v58 = vld [vmem:[#allocation5 + $0x1158] sm:$0xf0]  ;;  %v7151_v62 = vor.u32 %v8046_v53, %v7148_v55  ;;  %v8121_v53 = vld [vmem:[#allocation8 + $0xa0] sm:$0xff] }
 0x242   :  { %4531 = vmatpush.bf16.msra.mxu2 %v6607_v27  ;;  %v7292_v27 = vld [vmem:[#allocation5 + $0x1178] sm:$0xf0]  ;;  %v7279_v0 = vor.u32 %v8078_v22, %v7276_v58  ;;  %v8042_v1 = vld [vmem:[#allocation5 + $0x102c] sm:$0xf]  ;;  %v8167_v55 = vld [vmem:[#allocation7] sm:$0xf] }
 0x243   :  { %4544 = vmatpush.bf16.msra.mxu3 %v6735_v45  ;;  %4506 = vmatmul.bf16.vlgmr.msra.gmra.mxu0 %v8469_v29  ;;  %v6924_v29 = vld [vmem:[#allocation5 + $0xe98] sm:$0xf0]  ;;  %v7167_v45 = vor.u32 %v8050_v21, %v7164_v24  ;;  %v7295_v50 = vor.u32 %v8082_v26, %v7292_v27  ;;  %v8074_v3 = vld [vmem:[#allocation5 + $0x112c] sm:$0xf]  ;;  %v718_v22 = vperm.slane %v8167_v55, 3 }
 0x244   :  { %4550 = vmatpush.bf16.msrb.mxu0 %v6975_v37  ;;  %4519 = vmatmul.bf16.vlgmr.msra.gmra.mxu1 %v8473_v33  ;;  %v8086_v33 = vld [vmem:[#allocation5 + $0x118c] sm:$0xf]  ;;  %v6876_v8 = vld [vmem:[#allocation5 + $0xe38] sm:$0xf0] }
 0x245   :  { %4563 = vmatpush.bf16.msrb.mxu1 %v7103_v34  ;;  %4532 = vmatmul.bf16.vlgmr.msra.gmra.mxu2 %v8479_v23  ;;  %v7180_v23 = vld [vmem:[#allocation5 + $0x1098] sm:$0xf0]  ;;  %v7311_v16 = vor.u32 %v8086_v33, %v7308_v10  ;;  %v7982_v37 = vld [vmem:[#allocation5 + $0xe4c] sm:$0xf] }
 0x246   :  { %4576 = vmatpush.bf16.msrb.mxu2 %v7231_v46  ;;  %4545 = vmatmul.bf16.vlgmr.msra.gmra.mxu3 %v8483_v31  ;;  %v6927_v31 = vor.u32 %v7990_v5, %v6924_v29  ;;  %v7183_v13 = vor.u32 %v8054_v25, %v7180_v23  ;;  %v6892_v34 = vld [vmem:[#allocation5 + $0xe58] sm:$0xf0]  ;;  %v8014_v46 = vld [vmem:[#allocation5 + $0xf4c] sm:$0xf] }
 0x247   :  { %4589 = vmatpush.bf16.msrb.mxu3 %v7359_v49  ;;  %v7020_v49 = vld [vmem:[#allocation5 + $0xf58] sm:$0xf0]  ;;  %v7974_v20 = vld [vmem:[#allocation5 + $0xe0c] sm:$0xf] }
 0x248   :  { %4551 = vmatpush.bf16.msrb.mxu0 %v6959_v59  ;;  %v8594_v51 = vpop.f32.mrf.mxu2  ;;  %v4301_v59 = vpop.f32.mrf.mxu0  ;;  %v7023_v61 = vor.u32 %v8014_v46, %v7020_v49  ;;  %v7004_v36 = vld [vmem:[#allocation5 + $0xf38] sm:$0xf0]  ;;  %v8006_v7 = vld [vmem:[#allocation5 + $0xf0c] sm:$0xf] }
 0x249   :  { %4564 = vmatpush.bf16.msrb.mxu1 %v7087_v54  ;;  %v8596_v56 = vpop.f32.mrf.mxu3  ;;  %v6895_v54 = vor.u32 %v7982_v37, %v6892_v34  ;;  %v7132_v2 = vld [vmem:[#allocation5 + $0x1038] sm:$0xf0]  ;;  %v7007_v5 = vor.u32 %v8010_v63, %v7004_v36  ;;  %v8038_v23 = vld [vmem:[#allocation5 + $0x100c] sm:$0xf] }
 0x24a   :  { %4577 = vmatpush.bf16.msrb.mxu2 %v7215_v60  ;;  %v4314_v60 = vpop.f32.mrf.mxu1  ;;  %v7135_v29 = vor.u32 %v8042_v1, %v7132_v2  ;;  %v6988_v25 = vld [vmem:[#allocation5 + $0xf18] sm:$0xf0]  ;;  %v8106_v37 = vld [vmem:[#allocation8 + $0x28] sm:$0xff]  ;;  %v8111_v1 = vld [vmem:[#allocation8 + $0x50] sm:$0xff] }
 0x24b   :  { %4590 = vmatpush.bf16.msrb.mxu3 %v7343_v41  ;;  %v4261_v41 = vadd.f32 %v8578_v11, %v4248_v47  ;;  %v7116_v33 = vld [vmem:[#allocation5 + $0x1018] sm:$0xf0]  ;;  %v6991_v14 = vor.u32 %v8006_v7, %v6988_v25  ;;  %v8114_v34 = vld [vmem:[#allocation8 + $0x68] sm:$0xff] }
 0x24c   :  { %4552 = vmatpush.bf16.msrb.mxu0 %v6943_v18  ;;  %v7260_v18 = vld [vmem:[#allocation5 + $0x1138] sm:$0xf0]  ;;  %v7119_v15 = vor.u32 %v8038_v23, %v7116_v33  ;;  %v8122_v47 = vld [vmem:[#allocation8 + $0xa8] sm:$0xff] }
 0x24d   :  { %4565 = vmatpush.bf16.msrb.mxu1 %v7071_v44  ;;  %v4274_v44 = vadd.f32 %v8580_v48, %v4261_v41  ;;  %v7263_v11 = vor.u32 %v8074_v3, %v7260_v18  ;;  %v8108_v21 = vld [vmem:[#allocation8 + $0x38] sm:$0xff]  ;;  %v8118_v23 = vld [vmem:[#allocation8 + $0x88] sm:$0xff] }
 0x24e   :  { %4578 = vmatpush.bf16.msrb.mxu2 %v7199_v38  ;;  %v6879_v38 = vor.u32 %v7978_v19, %v6876_v8  ;;  %v8116_v24 = vld [vmem:[#allocation8 + $0x78] sm:$0xff]  ;;  %v8130_v55 = vld [vmem:[#allocation8 + $0xe8] sm:$0xff] }
 0x24f   :  { %4591 = vmatpush.bf16.msrb.mxu3 %v7327_v6  ;;  %v6860_v6 = vld [vmem:[#allocation5 + $0xe18] sm:$0xf0]  ;;  %v4287_v48 = vadd.f32 %v8582_v52, %v4274_v44  ;;  %v8107_v52 = vld [vmem:[#allocation8 + $0x30] sm:$0xff] }
 0x250   :  { %4553 = vmatpush.bf16.msrb.mxu0 %v6927_v31  ;;  %v4327_v10 = vpop.f32.mrf.mxu2  ;;  %v8070_v31 = vld [vmem:[#allocation5 + $0x110c] sm:$0xf]  ;;  %v6863_v9 = vor.u32 %v7974_v20, %v6860_v6  ;;  %v8124_v26 = vld [vmem:[#allocation8 + $0xb8] sm:$0xff]  ;;  %v8119_v44 = vld [vmem:[#allocation8 + $0x90] sm:$0xff] }
 0x251   :  { %4566 = vmatpush.bf16.msrb.mxu1 %v7055_v12  ;;  %v7244_v12 = vld [vmem:[#allocation5 + $0x1118] sm:$0xf0]  ;;  %v8110_v20 = vld [vmem:[#allocation8 + $0x48] sm:$0xff]  ;;  %v8101_v10 = vld [vmem:[#allocation8] sm:$0xff] }
 0x252   :  { %4579 = vmatpush.bf16.msrb.mxu2 %v7183_v13  ;;  %v4340_v13 = vpop.f32.mrf.mxu3  ;;  %v7247_v17 = vor.u32 %v8070_v31, %v7244_v12  ;;  %v8120_v19 = vld [vmem:[#allocation8 + $0x98] sm:$0xff] }
 0x253   :  { %4592 = vmatpush.bf16.msrb.mxu3 %v7311_v16  ;;  %v4300_v16 = vadd.f32 %v8588_v42, %v4287_v48  ;;  %v4608_v42 = vmul.f32 1.442695, %v8557_v4  ;;  %v8109_v13 = vld [vmem:[#allocation8 + $0x40] sm:$0xff] }
 0x254   :  { %4554 = vmatpush.bf16.msrb.mxu0 %v6911_v40  ;;  %v4606_v40 = vmul.f32 1.442695, %v8527_v57 }
 0x255   :  { %4567 = vmatpush.bf16.msrb.mxu1 %v7039_v43  ;;  %v4313_v27 = vadd.f32 %v8590_v30, %v4300_v16  ;;  %v8115_v43 = vld [vmem:[#allocation8 + $0x70] sm:$0xff] }
 0x256   :  { %4580 = vmatpush.bf16.msrb.mxu2 %v7167_v45  ;;  %v8123_v30 = vld [vmem:[#allocation8 + $0xb0] sm:$0xff]  ;;  %8155 = vpow2.f32 %v4606_v40 }
 0x257   :  { %4593 = vmatpush.bf16.msrb.mxu3 %v7295_v50  ;;  %v4326_v45 = vadd.f32 %v8594_v51, %v4313_v27  ;;  %8157 = vpow2.f32 %v4608_v42 }
 0x258   :  { %4555 = vmatpush.bf16.msrb.mxu0 %v6895_v54  ;;  %v8104_v54 = vld [vmem:[#allocation8 + $0x18] sm:$0xff] }
 0x259   :  { %4568 = vmatpush.bf16.msrb.mxu1 %v7023_v61 }
 0x25a   :  { %4581 = vmatpush.bf16.msrb.mxu2 %v7151_v62 }
 0x25b   :  { %4594 = vmatpush.bf16.msrb.mxu3 %v7279_v0  ;;  %v8103_v0 = vld [vmem:[#allocation8 + $0x10] sm:$0xff] }
 0x25c   :  { %4556 = vmatpush.bf16.msrb.mxu0 %v6879_v38  ;;  %v8156_v49 = vpop.eup %8155 }
 0x25d   :  { %4569 = vmatpush.bf16.msrb.mxu1 %v7007_v5  ;;  %v8158_v58 = vpop.eup %8157  ;;  %v7360_v60 = vadd.f32 -1.0, %v8156_v49  ;;  %v8102_v5 = vld [vmem:[#allocation8 + $0x8] sm:$0xff] }
 0x25e   :  { %4582 = vmatpush.bf16.msrb.mxu2 %v7135_v29  ;;  %v7361_v62 = vadd.f32 -1.0, %v8158_v58 }
 0x25f   :  { %4595 = vmatpush.bf16.msrb.mxu3 %v7263_v11  ;;  %v4618_v3 = vmul.f32 1.6732632, %v7360_v60 }
 0x260   :  { %4557 = vmatpush.bf16.msrb.mxu0 %v6863_v9  ;;  %v4351_v46 = vpop.f32.mrf.mxu0  ;;  %v4619_v18 = vmul.f32 1.6732632, %v7361_v62  ;;  %v8128_v62 = vld [vmem:[#allocation8 + $0xd8] sm:$0xff] }
 0x261   :  { %4570 = vmatpush.bf16.msrb.mxu1 %v6991_v14  ;;  %v4364_v51 = vpop.f32.mrf.mxu1  ;;  %v4622_v6 = vsel %vm4602_vm0, %v8527_v57, %v4618_v3  ;;  %v8117_v57 = vld [vmem:[#allocation8 + $0x80] sm:$0xff] }
 0x262   :  { %4583 = vmatpush.bf16.msrb.mxu2 %v7119_v15  ;;  %v4623_v11 = vsel %vm4603_vm1, %v8557_v4, %v4619_v18  ;;  %v4626_v31 = vmul.f32 1.050701, %v4622_v6  ;;  %v8125_v3 = vld [vmem:[#allocation8 + $0xc0] sm:$0xff] }
 0x263   :  { %4596 = vmatpush.bf16.msrb.mxu3 %v7247_v17  ;;  %4558 = vmatmul.bf16.vlgmr.msrb.gmra.mxu0 %v8481_v28  ;;  %v4339_v28 = vadd.f32 %v8596_v56, %v4326_v45  ;;  %v8112_v56 = vld [vmem:[#allocation8 + $0x58] sm:$0xff]  ;;  %v4627_v48 = vmul.f32 1.050701, %v4623_v11 }
 0x264   :  { %4894 = vmatpush.bf16.msra.mxu0 %v8108_v21  ;;  %4571 = vmatmul.bf16.vlgmr.msrb.gmra.mxu1 %v8485_v35  ;;  %v8105_v35 = vld [vmem:[#allocation8 + $0x20] sm:$0xff]  ;;  %v4630_v14 = vpack.c.bf16 %v4626_v31, %v4626_v31 }
 0x265   :  { %4907 = vmatpush.bf16.msra.mxu1 %v8116_v24  ;;  %4584 = vmatmul.bf16.vlgmr.msrb.gmra.mxu2 %v8491_v32  ;;  %v4352_v50 = vadd.f32 %v4351_v46, %v4339_v28  ;;  %v8113_v32 = vld [vmem:[#allocation8 + $0x60] sm:$0xff]  ;;  %v4631_v15 = vpack.c.bf16 %v4627_v48, %v4627_v48  ;;  %v8139_v48 = vld [vmem:[#allocation11 + $0x30] sm:$0xff] }
 0x266   :  { %4597 = vmatmul.bf16.vlgmr.msrb.gmra.mxu3 %v8493_v39  ;;  %4920 = vmatpush.bf16.msra.mxu2 %v8124_v26 }
 0x267   :  { %v4365_v39 = vadd.f32 %v4364_v51, %v4352_v50 }
 0x268   :  { %4895 = vmatpush.bf16.msra.mxu0 %v8107_v52  ;;  %v4377_v61 = vpop.f32.mrf.mxu2  ;;  %v4353_v41 = vpop.f32.mrf.mxu0 }
 0x269   :  { %4908 = vmatpush.bf16.msra.mxu1 %v8115_v43  ;;  %v4610_v59 = vmul.f32 1.442695, %v4365_v39  ;;  %v4378_v8 = vadd.f32 %v4377_v61, %v718_v22  ;;  %v4390_v63 = vpop.f32.mrf.mxu3  ;;  %v4366_v36 = vpop.f32.mrf.mxu1  ;;  %vm4604_vm2 = vcmp.gt.f32.partialorder %v4365_v39, 0.0 }
 0x26a   :  { %4921 = vmatpush.bf16.msra.mxu2 %v8123_v30 }
 0x26b   :  { %8159 = vpow2.f32 %v4610_v59  ;;  %v4391_v2 = vadd.f32 %v4390_v63, %v4378_v8  ;;  %v8129_v59 = vld [vmem:[#allocation8 + $0xe0] sm:$0xff]  ;;  %v8127_v63 = vld [vmem:[#allocation8 + $0xd0] sm:$0xff] }
 0x26c   :  { %4896 = vmatpush.bf16.msra.mxu0 %v8106_v37 }
 0x26d   :  { %4909 = vmatpush.bf16.msra.mxu1 %v8114_v34 }
 0x26e   :  { %4922 = vmatpush.bf16.msra.mxu2 %v8122_v47 }
 0x270   :  { %4897 = vmatpush.bf16.msra.mxu0 %v8105_v35  ;;  %v4379_v7 = vpop.f32.mrf.mxu2  ;;  %v8132_v35 = vld [vmem:[#allocation8 + $0xf8] sm:$0xff] }
 0x271   :  { %4910 = vmatpush.bf16.msra.mxu1 %v8113_v32  ;;  %v8160_v38 = vpop.eup %8159  ;;  %v4392_v33 = vpop.f32.mrf.mxu3  ;;  %4933 = vmatpush.bf16.msra.mxu3 %v8132_v35 }
 0x272   :  { %4923 = vmatpush.bf16.msra.mxu2 %v8121_v53  ;;  %v7362_v29 = vadd.f32 -1.0, %v8160_v38 }
 0x274   :  { %4898 = vmatpush.bf16.msra.mxu0 %v8104_v54  ;;  %v4620_v25 = vmul.f32 1.6732632, %v7362_v29 }
 0x275   :  { %4911 = vmatpush.bf16.msra.mxu1 %v8112_v56 }
 0x276   :  { %4924 = vmatpush.bf16.msra.mxu2 %v8120_v19  ;;  %v4624_v12 = vsel %vm4604_vm2, %v4365_v39, %v4620_v25  ;;  %v8131_v39 = vld [vmem:[#allocation8 + $0xf0] sm:$0xff] }
 0x277   :  { %v4628_v9 = vmul.f32 1.050701, %v4624_v12  ;;  %4934 = vmatpush.bf16.msra.mxu3 %v8131_v39  ;;  %v8140_v12 = vld [vmem:[#allocation11 + $0x38] sm:$0xff] }
 0x278   :  { %4899 = vmatpush.bf16.msra.mxu0 %v8103_v0 }
 0x279   :  { %4912 = vmatpush.bf16.msra.mxu1 %v8111_v1  ;;  %v4632_v4 = vpack.c.bf16 %v4628_v9, %v4628_v9  ;;  %v8126_v1 = vld [vmem:[#allocation8 + $0xc8] sm:$0xff] }
 0x27a   :  { %4925 = vmatpush.bf16.msra.mxu2 %v8119_v44 }
 0x27b   :  { %4935 = vmatpush.bf16.msra.mxu3 %v8130_v55 }
 0x27c   :  { %4900 = vmatpush.bf16.msra.mxu0 %v8102_v5 }
 0x27d   :  { %4913 = vmatpush.bf16.msra.mxu1 %v8110_v20 }
 0x27e   :  { %4926 = vmatpush.bf16.msra.mxu2 %v8118_v23 }
 0x27f   :  { %4936 = vmatpush.bf16.msra.mxu3 %v8129_v59  ;;  %v8154_v59 = vld [vmem:[#allocation13] ss:$0 sm:$0xff] }
 0x280   :  { %4901 = vmatpush.bf16.msra.mxu0 %v8101_v10  ;;  %v4403_v16 = vpop.f32.mrf.mxu0 }
 0x281   :  { %4914 = vmatpush.bf16.msra.mxu1 %v8109_v13  ;;  %v4404_v17 = vadd.f32 %v4403_v16, %v4391_v2  ;;  %v4416_v21 = vpop.f32.mrf.mxu1 }
 0x282   :  { %4927 = vmatpush.bf16.msra.mxu2 %v8117_v57 }
 0x283   :  { %4902 = vmatmul.bf16.vlgmr.msra.gmra.mxu0 %v4630_v14  ;;  %v4417_v24 = vadd.f32 %v4416_v21, %v4404_v17  ;;  %4937 = vmatpush.bf16.msra.mxu3 %v8128_v62  ;;  %v8138_v14 = vld [vmem:[#allocation11 + $0x28] sm:$0xff]  ;;  %v8153_v17 = vld [vmem:[#allocation10] ss:$0 sm:$0xff] }
 0x284   :  { %4915 = vmatmul.bf16.vlgmr.msra.gmra.mxu1 %v4631_v15  ;;  %5022 = vmatpush.bf16.msrb.mxu0 %v8140_v12 }
 0x285   :  { %4928 = vmatmul.bf16.vlgmr.msra.gmra.mxu2 %v4632_v4 }
 0x287   :  { %4938 = vmatpush.bf16.msra.mxu3 %v8127_v63 }
 0x288   :  { %v4429_v26 = vpop.f32.mrf.mxu2  ;;  %v4405_v43 = vpop.f32.mrf.mxu0  ;;  %5023 = vmatpush.bf16.msrb.mxu0 %v8139_v48 }
 0x289   :  { %v4430_v27 = vadd.f32 %v4429_v26, %v4417_v24  ;;  %v4442_v52 = vpop.f32.mrf.mxu3  ;;  %v4418_v42 = vpop.f32.mrf.mxu1 }
 0x28b   :  { %v4443_v40 = vadd.f32 %v4442_v52, %v4430_v27  ;;  %4939 = vmatpush.bf16.msra.mxu3 %v8126_v1 }
 0x28c   :  { %5024 = vmatpush.bf16.msrb.mxu0 %v8138_v14 }
 0x28f   :  { %4940 = vmatpush.bf16.msra.mxu3 %v8125_v3 }
 0x290   :  { %v4431_v45 = vpop.f32.mrf.mxu2 }
 0x291   :  { %v4444_v30 = vpop.f32.mrf.mxu3 }
 0x2a0   :  { %v4455_v37 = vpop.f32.mrf.mxu0 }
 0x2a1   :  { %v4468_v34 = vpop.f32.mrf.mxu1  ;;  %v4456_v22 = vadd.f32 %v4455_v37, %v4443_v40  ;;  %v8137_v37 = vld [vmem:[#allocation11 + $0x20] sm:$0xff] }
 0x2a2   :  { %5025 = vmatpush.bf16.msrb.mxu0 %v8137_v37 }
 0x2a3   :  { %v4469_v61 = vadd.f32 %v4468_v34, %v4456_v22  ;;  %v8136_v34 = vld [vmem:[#allocation11 + $0x18] sm:$0xff] }
 0x2a6   :  { %5026 = vmatpush.bf16.msrb.mxu0 %v8136_v34 }
 0x2a8   :  { %v4481_v28 = vpop.f32.mrf.mxu2  ;;  %v4457_v47 = vpop.f32.mrf.mxu0 }
 0x2a9   :  { %v4494_v46 = vpop.f32.mrf.mxu3  ;;  %v4470_v50 = vpop.f32.mrf.mxu1  ;;  %v4482_v19 = vadd.f32 %v4481_v28, %v4469_v61  ;;  %v8135_v28 = vld [vmem:[#allocation11 + $0x10] sm:$0xff]  ;;  %v8133_v47 = vld [vmem:[#allocation11] sm:$0xff] }
 0x2aa   :  { %5027 = vmatpush.bf16.msrb.mxu0 %v8135_v28 }
 0x2ab   :  { %v4495_v0 = vadd.f32 %v4494_v46, %v4482_v19  ;;  %v8134_v46 = vld [vmem:[#allocation11 + $0x8] sm:$0xff] }
 0x2ae   :  { %5028 = vmatpush.bf16.msrb.mxu0 %v8134_v46 }
 0x2b0   :  { %v4483_v51 = vpop.f32.mrf.mxu2 }
 0x2b1   :  { %v4496_v32 = vpop.f32.mrf.mxu3 }
 0x2b2   :  { %5029 = vmatpush.bf16.msrb.mxu0 %v8133_v47 }
 0x2c0   :  { %v4507_v49 = vpop.f32.mrf.mxu0 }
 0x2c1   :  { %v4520_v53 = vpop.f32.mrf.mxu1  ;;  %v4508_v36 = vadd.f32 %v4507_v49, %v4495_v0 }
 0x2c3   :  { %v4521_v2 = vadd.f32 %v4520_v53, %v4508_v36 }
 0x2c8   :  { %v4533_v58 = vpop.f32.mrf.mxu2  ;;  %v4509_v56 = vpop.f32.mrf.mxu0 }
 0x2c9   :  { %v4546_v54 = vpop.f32.mrf.mxu3  ;;  %v4522_v60 = vpop.f32.mrf.mxu1  ;;  %v4534_v18 = vadd.f32 %v4533_v58, %v4521_v2 }
 0x2cb   :  { %v4547_v44 = vadd.f32 %v4546_v54, %v4534_v18 }
 0x2d0   :  { %v4535_v8 = vpop.f32.mrf.mxu2 }
 0x2d1   :  { %v4548_v41 = vpop.f32.mrf.mxu3 }
 0x2e0   :  { %v4559_v38 = vpop.f32.mrf.mxu0 }
 0x2e1   :  { %v4572_v5 = vpop.f32.mrf.mxu1  ;;  %v4560_v29 = vadd.f32 %v4559_v38, %v4547_v44 }
 0x2e3   :  { %v4573_v20 = vadd.f32 %v4572_v5, %v4560_v29 }
 0x2e8   :  { %v4585_v6 = vpop.f32.mrf.mxu2  ;;  %v4561_v25 = vpop.f32.mrf.mxu0 }
 0x2e9   :  { %v4586_v7 = vadd.f32 %v4585_v6, %v4573_v20  ;;  %v4598_v11 = vpop.f32.mrf.mxu3  ;;  %v4574_v23 = vpop.f32.mrf.mxu1 }
 0x2eb   :  { %v4599_v33 = vadd.f32 %v4598_v11, %v4586_v7 }
 0x2ed   :  { %v4612_v10 = vmul.f32 1.442695, %v4599_v33  ;;  %vm4605_vm3 = vcmp.gt.f32.partialorder %v4599_v33, 0.0 }
 0x2ef   :  { %8161 = vpow2.f32 %v4612_v10 }
 0x2f0   :  { %v4587_v31 = vpop.f32.mrf.mxu2 }
 0x2f1   :  { %v4600_v13 = vpop.f32.mrf.mxu3 }
 0x2f5   :  { %v8162_v9 = vpop.eup %8161 }
 0x2f6   :  { %v7363_v57 = vadd.f32 -1.0, %v8162_v9 }
 0x2f8   :  { %v4621_v15 = vmul.f32 1.6732632, %v7363_v57 }
 0x2fa   :  { %v4625_v4 = vsel %vm4605_vm3, %v4599_v33, %v4621_v15 }
 0x2fb   :  { %v4629_v16 = vmul.f32 1.050701, %v4625_v4 }
 0x2fd   :  { %v4633_v21 = vpack.c.bf16 %v4629_v16, %v4629_v16 }
 0x2ff   :  { %4941 = vmatmul.bf16.vlgmr.msra.gmra.mxu3 %v4633_v21 }
 0x300   :  { %v4903_v24 = vpop.f32.mrf.mxu0 }
 0x301   :  { %v4904_v26 = vadd.f32 %v8153_v17, %v4903_v24  ;;  %v4916_v27 = vpop.f32.mrf.mxu1 }
 0x303   :  { %v4917_v52 = vadd.f32 %v4916_v27, %v4904_v26 }
 0x308   :  { %v4905_v40 = vpop.f32.mrf.mxu0  ;;  %v4929_v42 = vpop.f32.mrf.mxu2 }
 0x309   :  { %v4918_v43 = vpop.f32.mrf.mxu1  ;;  %v4930_v45 = vadd.f32 %v4929_v42, %v4917_v52 }
 0x310   :  { %v4931_v30 = vpop.f32.mrf.mxu2 }
 0x382   :  { %v4942_v50 = vpop.f32.mrf.mxu3 }
 0x383   :  { %v4943_v35 = vadd.f32 %v4942_v50, %v4930_v45 }
 0x385   :  { %v4947_v51 = vmul.f32 1.442695, %v4943_v35  ;;  %vm4946_vm4 = vcmp.gt.f32.partialorder %v4943_v35, 0.0 }
 0x387   :  { %8163 = vpow2.f32 %v4947_v51 }
 0x38a   :  { %v4944_v32 = vpop.f32.mrf.mxu3 }
 0x38d   :  { %v8164_v39 = vpop.eup %8163 }
 0x38e   :  { %v7492_v49 = vadd.f32 -1.0, %v8164_v39 }
 0x390   :  { %v4950_v53 = vmul.f32 1.6732632, %v7492_v49 }
 0x392   :  { %v4951_v55 = vsel %vm4946_vm4, %v4943_v35, %v4950_v53 }
 0x393   :  { %v4952_v22 = vmul.f32 1.050701, %v4951_v55 }
 0x395   :  { %v4953_v58 = vpack.c.bf16 %v4952_v22, %v4952_v22 }
 0x397   :  { %5030 = vmatmul.bf16.vlgmr.msrb.gmra.mxu0 %v4953_v58 }
 0x414   :  { %v5031_v54 = vpop.f32.mrf.mxu0 }
 0x415   :  { %v5032_v56 = vadd.f32 %v8154_v59, %v5031_v54 }
 0x417   :  { %5035 = vst [vmem:[#allocation14] sm:$0xff] %v5032_v56 }
 0x418   :  { %5046 = dma.vmem_to_hbm [thread:$0]  %s5042_s6, 128, %s5044_s14, [#allocation4]  }
 0x41c   :  { %v5033_v60 = vpop.f32.mrf.mxu0 }
 0x41d   :  { %8368 = dma.done.wait [#allocation4], 128  }
 0x41e   :  { %8369 = vsyncadd [#allocation4], 4294967168 }
 0x41f   :  { %5051 = vsyncpa [#allocation3], 1 }
 0x420   :  { %5052 = vsyncpa [#allocation6], 1 }
 0x421   :  { %5053 = vsyncpa [#allocation9], 1 }
 0x422   :  { %5054 = vsyncpa [#allocation12], 1 }
 0x423   :  { %5055 = vsyncpa [#allocation4], 1 }

</bundles_post_ra>
